<compile_context>
chip_gen: v5e
topology: v5e:2x2
jax: 0.10.0
libtpu: 0.0.40
codegen_flags: <defaults>
</compile_context>

<pallas_src>
import jax
import jax.numpy as jnp
import numpy as np
from jax.experimental import pallas as pl
from jax.experimental.pallas import tpu as pltpu


# ---------------------------------------------------------------------------
# Host-side packing of PyTorch-layout parameters into lane-dense kernel layout
# ---------------------------------------------------------------------------
def _pad2(a, rows, cols):
    a = np.asarray(a, np.float32)
    out = np.zeros((rows, cols), np.float32)
    out[: a.shape[0], : a.shape[1]] = a
    return out


def _pack_params(p, H, HP, SD):
    pk = {}
    pk["wt"] = _pad2(np.asarray(p["theta_w"]).T, 3, HP)
    pk["bt"] = _pad2(np.asarray(p["theta_b"])[None, :], 1, HP)
    pk["wm1"] = _pad2(np.asarray(p["m1_w"]).T, 1, HP)
    pk["bm1"] = _pad2(np.asarray(p["m1_b"])[None, :], 1, HP)
    pk["wm2"] = _pad2(np.asarray(p["m2_w"]).T, 1, HP)
    pk["bm2"] = _pad2(np.asarray(p["m2_b"])[None, :], 1, HP)
    ch = np.asarray(p["ch_w"], np.float32)            # [H, 2H]; cat=(hidden, theta_emb)
    pk["wch_h"] = _pad2(ch[:, :H].T, HP, HP)
    pk["wch_t"] = _pad2(ch[:, H:].T, HP, HP)
    pk["bch"] = _pad2(np.asarray(p["ch_b"])[None, :], 1, HP)
    pk["wa1"] = _pad2(np.asarray(p["a1_w"]).T, HP, HP)
    pk["ba1"] = _pad2(np.asarray(p["a1_b"])[None, :], 1, HP)
    pk["wa2"] = _pad2(np.asarray(p["a2_w"]).T, HP, HP)
    pk["ba2"] = _pad2(np.asarray(p["a2_b"])[None, :], 1, HP)
    # GRU: 128-lane aligned gate blocks (r, z, n)
    wih = np.zeros((HP, 3 * HP), np.float32)
    whh = np.zeros((HP, 3 * HP), np.float32)
    bih = np.zeros((1, 3 * HP), np.float32)
    bhh = np.zeros((1, 3 * HP), np.float32)
    w_ih = np.asarray(p["w_ih"], np.float32)
    w_hh = np.asarray(p["w_hh"], np.float32)
    b_ih = np.asarray(p["b_ih"], np.float32)
    b_hh = np.asarray(p["b_hh"], np.float32)
    for g in range(3):
        wih[:H, g * HP:g * HP + H] = w_ih[g * H:(g + 1) * H, :].T
        whh[:H, g * HP:g * HP + H] = w_hh[g * H:(g + 1) * H, :].T
        bih[0, g * HP:g * HP + H] = b_ih[g * H:(g + 1) * H]
        bhh[0, g * HP:g * HP + H] = b_hh[g * H:(g + 1) * H]
    pk["wih"], pk["whh"], pk["bih"], pk["bhh"] = wih, whh, bih, bhh
    s1 = np.asarray(p["s1_w"], np.float32)             # [2, 2H]; cat=(node_agg, node_msg)
    s2 = np.asarray(p["s2_w"], np.float32)             # cat=(hidden_agg, edge_msg)
    pk["ws1a"] = _pad2(s1[:, :H].T, HP, SD)
    pk["ws1m"] = _pad2(s1[:, H:].T, HP, SD)
    pk["bs1"] = _pad2(np.asarray(p["s1_b"])[None, :], 1, SD)
    pk["ws2h"] = _pad2(s2[:, :H].T, HP, SD)
    pk["ws2e"] = _pad2(s2[:, H:].T, HP, SD)
    pk["bs2"] = _pad2(np.asarray(p["s2_b"])[None, :], 1, SD)
    return pk


# ---------------------------------------------------------------------------
# Wrapper: full NEDMP.forward (single fused kernel runs all propagation steps)
# ---------------------------------------------------------------------------
def nedmp_forward_pallas(inputs, params, number_layers):
    (edge2tnode, nb_matrix, adj_index, cave_index,
     weights, nodes_gamma, seed_list) = inputs
    src = np.asarray(adj_index[0])
    tar = np.asarray(adj_index[1])
    E = int(src.shape[0])
    N = int(max(src.max(), tar.max())) + 1
    NP = ((N + 7) // 8) * 8
    EP = ((E + 7) // 8) * 8
    H = int(np.asarray(params["theta_b"]).shape[0])
    HP = ((H + 127) // 128) * 128
    SD = 128
    OC = 8                     # packed output lanes: Ps, Pi, Pr, rPs, rPr, pad
    T = int(number_layers)

    # ---- dense, zero-padded graph structure ----
    # combined masked-product mask: rows [0,NP) = scatter-by-target,
    #                               rows [NP,NP+EP) = cavity scatter.
    maskc = np.zeros((NP + EP, EP), np.float32)
    maskc[tar, np.arange(E)] = 1.0
    ci = np.asarray(cave_index)
    for e in range(E):
        if ci[e] < E:
            maskc[NP + int(ci[e]), e] = 1.0
    srcm = np.zeros((EP, NP), np.float32)               # gather-by-source
    srcm[np.arange(E), src] = 1.0
    e2t = np.zeros((NP, EP), np.float32)                 # MPNN node aggregation
    e2t[:N, :E] = np.asarray(edge2tnode, np.float32)
    nbm = np.zeros((EP, EP), np.float32)                 # non-backtracking matrix
    nbm[:E, :E] = np.asarray(nb_matrix, np.float32)

    # ---- per-edge / per-node constants (padding values keep pad rows benign) ----
    seeds = np.zeros((N,), np.float32)
    seeds[np.asarray(seed_list)] = 1.0
    ps0 = 1.0 - seeds
    w_np = np.asarray(weights, np.float32)
    g_np = np.asarray(nodes_gamma, np.float32)
    w_e = np.zeros((EP, 1), np.float32)
    w_e[:E, 0] = w_np
    kappa_e = np.zeros((EP, 1), np.float32)
    kappa_e[:E, 0] = (1.0 - w_np) * (1.0 - g_np[src])
    psi0_e = np.zeros((EP, 1), np.float32)
    psi0_e[:E, 0] = ps0[src]
    ps0_n = np.zeros((NP, 1), np.float32)
    ps0_n[:N, 0] = ps0
    gamma_n = np.zeros((NP, 1), np.float32)
    gamma_n[:N, 0] = g_np

    pk = _pack_params(params, H, HP, SD)

    f32 = jnp.float32
    bf = jnp.bfloat16
    kernel_inputs = [
        jnp.asarray(maskc, f32),            # masked-product mask stays f32 (exact)
        jnp.asarray(srcm, f32),
        jnp.asarray(e2t, bf),               # 0/1 structure masks in bf16
        jnp.asarray(nbm, bf),
        jnp.asarray(w_e, f32), jnp.asarray(kappa_e, f32), jnp.asarray(psi0_e, f32),
        jnp.asarray(ps0_n, f32), jnp.asarray(gamma_n, f32),
        jnp.asarray(pk["wt"], f32), jnp.asarray(pk["bt"], f32),
        jnp.asarray(pk["wm1"], f32), jnp.asarray(pk["bm1"], f32),
        jnp.asarray(pk["wm2"], f32), jnp.asarray(pk["bm2"], f32),
        jnp.asarray(pk["wch_h"], bf), jnp.asarray(pk["wch_t"], bf),
        jnp.asarray(pk["bch"], f32),
        jnp.asarray(pk["wa1"], bf), jnp.asarray(pk["ba1"], f32),
        jnp.asarray(pk["wa2"], bf), jnp.asarray(pk["ba2"], f32),
        jnp.asarray(pk["wih"], bf), jnp.asarray(pk["bih"], f32),
        jnp.asarray(pk["whh"], bf), jnp.asarray(pk["bhh"], f32),
        jnp.asarray(pk["ws1a"], bf), jnp.asarray(pk["ws1m"], bf),
        jnp.asarray(pk["bs1"], f32),
        jnp.asarray(pk["ws2h"], bf), jnp.asarray(pk["ws2e"], bf),
        jnp.asarray(pk["bs2"], f32),
    ]

    HI = jax.lax.Precision.HIGHEST

    def kernel(maskc_ref, srcm_ref, e2t_ref, nbm_ref,
               w_ref, kappa_ref, psi0_ref, ps0_ref, gamma_ref,
               wt_ref, bt_ref, wm1_ref, bm1_ref, wm2_ref, bm2_ref,
               wch_h_ref, wch_t_ref, bch_ref,
               wa1_ref, ba1_ref, wa2_ref, ba2_ref,
               wih_ref, bih_ref, whh_ref, bhh_ref,
               ws1a_ref, ws1m_ref, bs1_ref, ws2h_ref, ws2e_ref, bs2_ref,
               out_ref,
               theta_s, phi_s, psij_s, pst_s, pit_s, prt_s, hid_s):

        def fdot(a, b):   # DMP-physics matmuls: f32, full precision
            return jnp.dot(a, b, preferred_element_type=jnp.float32, precision=HI)

        def bdot(a, b):   # NN matmuls: bf16 operands, f32 accumulate
            return jnp.dot(a.astype(jnp.bfloat16), b,
                           preferred_element_type=jnp.float32)

        # scatter(reduce='mul') as ONE masked log/parity matmul + src gather.
        def mulmul(theta):
            logs = jnp.log(jnp.maximum(jnp.abs(theta), 1e-30))
            negs = jnp.where(theta < 0.0, 1.0, 0.0).astype(jnp.float32)
            rhs = jnp.concatenate([logs, negs], axis=1)                 # [EP, 2]
            acc = fdot(maskc_ref[...], rhs)                             # [NP+EP, 2]
            acc_n = acc[0:NP, :]                                        # node products
            acc_c = acc[NP:NP + EP, :]                                  # cavity products
            acc_s = fdot(srcm_ref[...], acc_n)                          # gather by src

            def signed_exp(lg, ng):
                parity = ng - 2.0 * jnp.floor(ng * 0.5)
                return jnp.exp(lg) * (1.0 - 2.0 * parity)

            node_prod = signed_exp(acc_n[:, 0:1], acc_n[:, 1:2])        # [NP,1]
            # theta[src-prod] / theta[cav] done in the log domain (no divide)
            edge_msg = signed_exp(acc_s[:, 0:1] - acc_c[:, 0:1],
                                  acc_s[:, 1:2] - acc_c[:, 1:2])        # [EP,1]
            return node_prod, edge_msg

        def theta_embed(th, ph, ps):          # Linear(3, H) + ReLU (broadcast FMA)
            wt = wt_ref[...]
            return jnp.maximum(
                th * wt[0:1, :] + ph * wt[1:2, :] + ps * wt[2:3, :] + bt_ref[...],
                0.0)

        def gru(x, h):                        # PyTorch GRUCell, gates (r, z, n)
            gi = bdot(x, wih_ref[...]) + bih_ref[...]
            gh = bdot(h, whh_ref[...]) + bhh_ref[...]
            r = jax.nn.sigmoid(gi[:, 0:HP] + gh[:, 0:HP])
            z = jax.nn.sigmoid(gi[:, HP:2 * HP] + gh[:, HP:2 * HP])
            n = jnp.tanh(gi[:, 2 * HP:3 * HP] + r * gh[:, 2 * HP:3 * HP])
            return (1.0 - z) * n + z * h

        def mpnn(th, ph, ps, edge_msg, node_msg, hidden):   # NEDMP_layer.forward
            t_emb = theta_embed(th, ph, ps)                                    # [EP,HP]
            n_emb = jnp.maximum(node_msg * wm1_ref[...] + bm1_ref[...], 0.0)   # [NP,HP]
            e_emb = jnp.maximum(edge_msg * wm2_ref[...] + bm2_ref[...], 0.0)   # [EP,HP]
            # concat-free cat_hidden: split-weight sum of two matmuls
            hmix = jnp.maximum(
                bdot(hidden, wch_h_ref[...]) + bdot(t_emb, wch_t_ref[...])
                + bch_ref[...], 0.0)
            hmix_b = hmix.astype(jnp.bfloat16)
            nagg = jnp.dot(e2t_ref[...], hmix_b, preferred_element_type=jnp.float32)
            nagg = jnp.maximum(bdot(nagg, wa1_ref[...]) + ba1_ref[...], 0.0)
            nres = jax.nn.sigmoid(
                bdot(nagg, ws1a_ref[...]) + bdot(n_emb, ws1m_ref[...]) + bs1_ref[...])
            hagg = jnp.dot(nbm_ref[...], hmix_b, preferred_element_type=jnp.float32)
            hagg = jnp.maximum(bdot(hagg, wa2_ref[...]) + ba2_ref[...], 0.0)
            h_new = gru(hagg, hidden)
            eres = jax.nn.sigmoid(
                bdot(hagg, ws2h_ref[...]) + bdot(e_emb, ws2e_ref[...]) + bs2_ref[...])
            return nres[:, 0:1], nres[:, 1:2], eres[:, 0:1], eres[:, 1:2], h_new

        def write_row(t_idx, pst, pit, prt, rps, rpr):
            pad = jnp.zeros((NP, OC - 5), jnp.float32)
            out_ref[t_idx] = jnp.concatenate([pst, pit, prt, rps, rpr, pad], axis=1)

        # constants, read once
        w = w_ref[...]
        kappa = kappa_ref[...]
        psi0 = psi0_ref[...]
        ps0v = ps0_ref[...]
        gam = gamma_ref[...]

        # ---------------- step 0: NEDMP initialization ----------------
        phi00 = 1.0 - psi0                                  # Phi_ij_0 = seeds[src]
        theta0 = 1.0 - w * phi00 + 1e-20                    # Theta_ij_0 = 1
        node_prod0, edge_msg0 = mulmul(theta0)
        psij0 = psi0 * edge_msg0                            # Ps_ij_t
        phi0 = kappa * phi00 - (psij0 - psi0)               # Ps_ij_{t-1} = Ps_i_0
        pst0 = ps0v * node_prod0
        prt0 = gam * (1.0 - ps0v)                           # Pr_0 + gamma * Pi_0
        pit0 = 1.0 - pst0 - prt0
        theta_s[...] = theta0
        phi_s[...] = phi0
        psij_s[...] = psij0
        pst_s[...] = pst0
        pit_s[...] = pit0
        prt_s[...] = prt0
        hid_s[...] = theta_embed(theta0, phi0, psij0)       # mpnn.init(message)
        zero_n = jnp.zeros((NP, 1), jnp.float32)
        write_row(0, pst0, pit0, prt0, zero_n, zero_n)

        # ---------------- steps 1..T: NEDMP.iteration ----------------
        # TODO(synk): move the delta<5e-5 early-stop gate in-kernel (SMEM flag +
        # pl.when) to skip the converged tail; it is resolved on the host below.
        @pl.loop(1, T + 1)
        def _step(t):
            phi_old = phi_s[...]
            psij_old = psij_s[...]
            pst_old = pst_s[...]
            pit_old = pit_s[...]
            prt_old = prt_s[...]

            theta = theta_s[...] - w * phi_old
            node_prod, edge_msg = mulmul(theta)
            node_msg = node_prod

            nsc, ndl, esc, edl, hid_new = mpnn(theta, phi_old, psij_old,
                                               edge_msg, node_msg, hid_s[...])

            edge_msg = jnp.minimum(edge_msg * esc + edl, 1.0)
            node_msg = jnp.minimum(node_msg * nsc + ndl, 1.0)

            ps_raw = ps0v * node_msg
            rps = jnp.where(ps_raw > pst_old, ps_raw - pst_old, 0.0)
            pst_new = jnp.minimum(ps_raw, pst_old)
            pr_raw = prt_old + gam * pit_old
            rpr = jnp.where(pr_raw < prt_old, prt_old - pr_raw, 0.0)
            prt_new = jnp.maximum(pr_raw, prt_old)
            pit_new = 1.0 - pst_new - prt_new

            psij_new = psi0 * edge_msg
            phi_new = kappa * phi_old - (psij_new - psij_old)

            theta_s[...] = theta
            phi_s[...] = phi_new
            psij_s[...] = psij_new
            pst_s[...] = pst_new
            pit_s[...] = pit_new
            prt_s[...] = prt_new
            hid_s[...] = hid_new

            write_row(t, pst_new, pit_new, prt_new, rps, rpr)

    scratch = [
        pltpu.VMEM((EP, 1), jnp.float32),   # Theta_ij_t
        pltpu.VMEM((EP, 1), jnp.float32),   # Phi_ij_t
        pltpu.VMEM((EP, 1), jnp.float32),   # Ps_ij_t
        pltpu.VMEM((NP, 1), jnp.float32),   # Ps_t
        pltpu.VMEM((NP, 1), jnp.float32),   # Pi_t
        pltpu.VMEM((NP, 1), jnp.float32),   # Pr_t
        pltpu.VMEM((EP, HP), jnp.float32),  # MPNN hidden (GRU state)
    ]

    total_bytes = sum(int(np.prod(a.shape)) * a.dtype.itemsize for a in kernel_inputs)
    total_bytes += (T + 1) * NP * OC * 4 + (3 * EP + 3 * NP + EP * HP) * 4
    vmem_limit = int(min(100 * 1024 * 1024, max(32 * 1024 * 1024, 4 * total_bytes)))

    fn = pl.pallas_call(
        kernel,
        out_shape=jax.ShapeDtypeStruct((T + 1, NP, OC), jnp.float32),
        in_specs=[pl.BlockSpec(memory_space=pltpu.MemorySpace.VMEM)
                  for _ in kernel_inputs],
        out_specs=pl.BlockSpec(memory_space=pltpu.MemorySpace.VMEM),
        scratch_shapes=scratch,
        compiler_params=pltpu.CompilerParams(vmem_limit_bytes=vmem_limit),
    )
    out = np.asarray(jax.block_until_ready(fn(*kernel_inputs)))

    # ---- host bookkeeping mirroring NEDMP.forward ----
    ps = out[:, :N, 0]
    pi = out[:, :N, 1]
    pr = out[:, :N, 2]
    rps = out[:, :N, 3]
    rpr = out[:, :N, 4]
    marg_full = np.stack([ps, pi, pr], axis=2)          # [T+1, N, 3]
    diffs = np.max(np.abs(marg_full[1:] - marg_full[:-1]), axis=(1, 2))
    deltas, steps = [], 0
    for layer in range(T):
        d = float(diffs[layer])
        deltas.append(d)
        steps = layer + 1
        if d < 5e-5:            # early-stop (data dependent) resolved on host
            break
    marg = marg_full[:steps + 1]
    viol = np.concatenate([rps[1:steps + 1].ravel(), rpr[1:steps + 1].ravel()])
    viol = viol[viol > 0]
    regular_loss = float(viol.mean()) if viol.size > 0 else 0.0
    marg = np.where(marg <= 0.0, 1e-20, marg)
    marg = np.where(marg > 1.0, 1.0, marg)
    return jnp.log(jnp.asarray(marg)), deltas, regular_loss


# ---------------------------------------------------------------------------
# Pure-JAX reference mirroring the PyTorch module (independent formulation)
# ---------------------------------------------------------------------------
def _mpnn_ref(hidden, theta_msg, edge_message, node_message, nb_matrix, e2t, p):
    relu = lambda x: jnp.maximum(x, 0.0)
    sig = jax.nn.sigmoid
    H = hidden.shape[1]
    t_emb = relu(theta_msg @ p["theta_w"].T + p["theta_b"])
    n_emb = relu(node_message[:, None] @ p["m1_w"].T + p["m1_b"])
    e_emb = relu(edge_message[:, None] @ p["m2_w"].T + p["m2_b"])
    hmix = relu(jnp.concatenate([hidden, t_emb], axis=1) @ p["ch_w"].T + p["ch_b"])
    n_agg = relu((e2t @ hmix) @ p["a1_w"].T + p["a1_b"])
    n_res = sig(jnp.concatenate([n_agg, n_emb], axis=1) @ p["s1_w"].T + p["s1_b"])
    h_agg = relu((nb_matrix @ hmix) @ p["a2_w"].T + p["a2_b"])
    gi = h_agg @ p["w_ih"].T + p["b_ih"]
    gh = hidden @ p["w_hh"].T + p["b_hh"]
    r = sig(gi[:, :H] + gh[:, :H])
    z = sig(gi[:, H:2 * H] + gh[:, H:2 * H])
    n = jnp.tanh(gi[:, 2 * H:] + r * gh[:, 2 * H:])
    new_hidden = (1.0 - z) * n + z * hidden
    e_res = sig(jnp.concatenate([h_agg, e_emb], axis=1) @ p["s2_w"].T + p["s2_b"])
    return n_res[:, 0], n_res[:, 1], e_res[:, 0], e_res[:, 1], new_hidden


def nedmp_forward_reference(inputs, params, number_layers):
    (edge2tnode, nb_matrix, adj_index, cave_index,
     weights, nodes_gamma, seed_list) = inputs
    edge2tnode = jnp.asarray(edge2tnode, jnp.float32)
    nb_matrix = jnp.asarray(nb_matrix, jnp.float32)
    weights = jnp.asarray(weights, jnp.float32)
    nodes_gamma = jnp.asarray(nodes_gamma, jnp.float32)
    src = np.asarray(adj_index[0])
    tar = np.asarray(adj_index[1])
    cave_index = np.asarray(cave_index)
    E = int(src.shape[0])
    N = int(max(src.max(), tar.max())) + 1
    gamma_e = nodes_gamma[src]
    seeds = jnp.zeros((N,), jnp.float32).at[np.asarray(seed_list)].set(1.0)
    Ps_0 = 1.0 - seeds
    Pi_0 = seeds
    Pr_0 = jnp.zeros((N,), jnp.float32)
    Ps_i_0 = Ps_0[src]
    Phi_0 = 1.0 - Ps_i_0

    def scat_mul(vals, idx, size):
        return jnp.ones((size,), jnp.float32).at[idx].multiply(vals)

    def mulmul(theta):
        node_prod = scat_mul(theta, tar, N)
        return node_prod, node_prod[src] / scat_mul(theta, cave_index, E + 1)[:E]

    theta = 1.0 - weights * Phi_0 + 1e-20
    node_prod0, edge_mul0 = mulmul(theta)
    psij = Ps_i_0 * edge_mul0
    phi = (1.0 - weights) * (1.0 - gamma_e) * Phi_0 - (psij - Ps_i_0)
    Ps_t = Ps_0 * node_prod0
    Pr_t = Pr_0 + nodes_gamma * Pi_0
    Pi_t = 1.0 - Ps_t - Pr_t
    marginals = [jnp.stack([Ps_t, Pi_t, Pr_t], axis=1)]
    hidden = jnp.maximum(jnp.stack([theta, phi, psij], axis=1) @ params["theta_w"].T
                         + params["theta_b"], 0.0)
    regs, deltas = [], []
    for _ in range(int(number_layers)):
        theta = theta - weights * phi
        node_prod, edge_msg = mulmul(theta)
        node_msg = node_prod
        msg = jnp.stack([theta, phi, psij], axis=1)
        nsc, ndl, esc, edl, hidden = _mpnn_ref(hidden, msg, edge_msg, node_msg,
                                               nb_matrix, edge2tnode, params)
        edge_msg = edge_msg * esc + edl
        node_msg = jnp.minimum(node_msg * nsc + ndl, 1.0)
        Ps_raw = Ps_0 * node_msg
        regs.append(jnp.where(Ps_raw > Ps_t, Ps_raw - Ps_t, 0.0))
        Ps_t = jnp.minimum(Ps_raw, Ps_t)
        Pr_raw = Pr_t + nodes_gamma * Pi_t
        regs.append(jnp.where(Pr_raw < Pr_t, Pr_t - Pr_raw, 0.0))
        Pr_t = jnp.maximum(Pr_raw, Pr_t)
        Pi_t = 1.0 - Ps_t - Pr_t
        marginals.append(jnp.stack([Ps_t, Pi_t, Pr_t], axis=1))
        edge_msg = jnp.minimum(edge_msg, 1.0)
        new_psij = Ps_i_0 * edge_msg
        phi = (1.0 - weights) * (1.0 - gamma_e) * phi - (new_psij - psij)
        psij = new_psij
        d = float(jnp.max(jnp.abs(marginals[-1] - marginals[-2])))
        deltas.append(d)
        if d < 5e-5:
            break
    marg = jnp.stack(marginals, axis=0)
    viol = np.concatenate([np.asarray(r).ravel() for r in regs])
    viol = viol[viol > 0]
    regular_loss = float(viol.mean()) if viol.size > 0 else 0.0
    marg = jnp.where(marg <= 0.0, 1e-20, marg)
    marg = jnp.where(marg > 1.0, 1.0, marg)
    return jnp.log(marg), deltas, regular_loss


# ---------------------------------------------------------------------------
# Deterministic synthetic parameters (shapes match the PyTorch module)
# ---------------------------------------------------------------------------
def init_params(key, hid_dim):
    ks = jax.random.split(key, 10)

    def lin(k, out_d, in_d):
        kw, kb = jax.random.split(k)
        w = (1.0 / np.sqrt(in_d)) * jax.random.normal(kw, (out_d, in_d), jnp.float32)
        b = 0.1 * jax.random.normal(kb, (out_d,), jnp.float32)
        return w, b

    H = hid_dim
    p = {}
    p["theta_w"], p["theta_b"] = lin(ks[0], H, 3)
    p["m1_w"], p["m1_b"] = lin(ks[1], H, 1)
    p["m2_w"], p["m2_b"] = lin(ks[2], H, 1)
    p["ch_w"], p["ch_b"] = lin(ks[3], H, 2 * H)
    p["a1_w"], p["a1_b"] = lin(ks[4], H, H)
    p["a2_w"], p["a2_b"] = lin(ks[5], H, H)
    p["w_ih"], p["b_ih"] = lin(ks[6], 3 * H, H)
    p["w_hh"], p["b_hh"] = lin(ks[7], 3 * H, H)
    p["s1_w"], p["s1_b"] = lin(ks[8], 2, 2 * H)
    p["s2_w"], p["s2_b"] = lin(ks[9], 2, 2 * H)
    return p


if __name__ == "__main__":
    key = jax.random.PRNGKey(0)
    k_w, k_g, k_p = jax.random.split(key, 3)

    N = 12                 # nodes
    hid_dim = 32
    number_layers = 4      # propagation steps

    # ring graph with both directions for every undirected edge
    src, tar = [], []
    for i in range(N):
        j = (i + 1) % N
        src += [i, j]
        tar += [j, i]
    src = np.asarray(src, np.int32)
    tar = np.asarray(tar, np.int32)
    E = int(src.shape[0])
    adj_index = np.stack([src, tar], axis=0)

    # cavity index: position of the reverse edge (j->i) for edge (i->j)
    pos = {(int(src[e]), int(tar[e])): e for e in range(E)}
    cave_index = np.asarray(
        [pos.get((int(tar[e]), int(src[e])), E) for e in range(E)], np.int32)

    edge2tnode = np.zeros((N, E), np.float32)
    edge2tnode[tar, np.arange(E)] = 1.0
    # non-backtracking edge adjacency: edge e'=(k->i) feeds edge e=(i->j), k != j
    nb_matrix = ((tar[None, :] == src[:, None]) &
                 (src[None, :] != tar[:, None])).astype(np.float32)

    weights = jax.random.uniform(k_w, (E,), jnp.float32, 0.05, 0.4)
    nodes_gamma = jax.random.uniform(k_g, (N,), jnp.float32, 0.1, 0.5)
    seed_list = np.asarray([0, 5], np.int32)

    params = init_params(k_p, hid_dim)
    graph_inputs = (edge2tnode, nb_matrix, adj_index, cave_index,
                    weights, nodes_gamma, seed_list)

    log_marg_k, deltas_k, regloss_k = nedmp_forward_pallas(
        graph_inputs, params, number_layers)
    log_marg_k = jax.block_until_ready(log_marg_k)

    log_marg_r, deltas_r, regloss_r = nedmp_forward_reference(
        graph_inputs, params, number_layers)

    assert len(deltas_k) == len(deltas_r), "step counts differ"
    # kernel runs the MPNN/GRU matmuls in bf16 (f32 accumulate); tolerances
    # below cover the bf16 operand truncation vs. the f32 reference.
    np.testing.assert_allclose(np.exp(np.asarray(log_marg_k)),
                               np.exp(np.asarray(log_marg_r)),
                               rtol=1e-2, atol=8e-3)
    np.testing.assert_allclose(np.asarray(deltas_k), np.asarray(deltas_r),
                               rtol=2e-2, atol=1e-2)
    assert abs(regloss_k - regloss_r) <= max(5e-2, 0.25 * abs(regloss_r))
    print("KERNEL_OK")
</pallas_src>

<mosaic_0001>
module attributes {stable_mosaic.version = 11 : i64} {
  func.func @kernel(%arg0: memref<40x24xf32, #tpu.memory_space<vmem>>, %arg1: memref<24x16xf32, #tpu.memory_space<vmem>>, %arg2: memref<16x24xbf16, #tpu.memory_space<vmem>>, %arg3: memref<24x24xbf16, #tpu.memory_space<vmem>>, %arg4: memref<24x1xf32, #tpu.memory_space<vmem>>, %arg5: memref<24x1xf32, #tpu.memory_space<vmem>>, %arg6: memref<24x1xf32, #tpu.memory_space<vmem>>, %arg7: memref<16x1xf32, #tpu.memory_space<vmem>>, %arg8: memref<16x1xf32, #tpu.memory_space<vmem>>, %arg9: memref<3x128xf32, #tpu.memory_space<vmem>>, %arg10: memref<1x128xf32, #tpu.memory_space<vmem>>, %arg11: memref<1x128xf32, #tpu.memory_space<vmem>>, %arg12: memref<1x128xf32, #tpu.memory_space<vmem>>, %arg13: memref<1x128xf32, #tpu.memory_space<vmem>>, %arg14: memref<1x128xf32, #tpu.memory_space<vmem>>, %arg15: memref<128x128xbf16, #tpu.memory_space<vmem>>, %arg16: memref<128x128xbf16, #tpu.memory_space<vmem>>, %arg17: memref<1x128xf32, #tpu.memory_space<vmem>>, %arg18: memref<128x128xbf16, #tpu.memory_space<vmem>>, %arg19: memref<1x128xf32, #tpu.memory_space<vmem>>, %arg20: memref<128x128xbf16, #tpu.memory_space<vmem>>, %arg21: memref<1x128xf32, #tpu.memory_space<vmem>>, %arg22: memref<128x384xbf16, #tpu.memory_space<vmem>>, %arg23: memref<1x384xf32, #tpu.memory_space<vmem>>, %arg24: memref<128x384xbf16, #tpu.memory_space<vmem>>, %arg25: memref<1x384xf32, #tpu.memory_space<vmem>>, %arg26: memref<128x128xbf16, #tpu.memory_space<vmem>>, %arg27: memref<128x128xbf16, #tpu.memory_space<vmem>>, %arg28: memref<1x128xf32, #tpu.memory_space<vmem>>, %arg29: memref<128x128xbf16, #tpu.memory_space<vmem>>, %arg30: memref<128x128xbf16, #tpu.memory_space<vmem>>, %arg31: memref<1x128xf32, #tpu.memory_space<vmem>>, %arg32: memref<5x16x8xf32, #tpu.memory_space<vmem>>, %arg33: memref<24x1xf32, #tpu.memory_space<vmem>>, %arg34: memref<24x1xf32, #tpu.memory_space<vmem>>, %arg35: memref<24x1xf32, #tpu.memory_space<vmem>>, %arg36: memref<16x1xf32, #tpu.memory_space<vmem>>, %arg37: memref<16x1xf32, #tpu.memory_space<vmem>>, %arg38: memref<16x1xf32, #tpu.memory_space<vmem>>, %arg39: memref<24x128xf32, #tpu.memory_space<vmem>>) attributes {dimension_semantics = [], scalar_prefetch = 0 : i64, scratch_operands = 7 : i64, tpu.core_type = #tpu.core_type<tc>} {
    %c0 = arith.constant 0 : index
    %c0_0 = arith.constant 0 : index
    %0 = vector.load %arg4[%c0, %c0_0] : memref<24x1xf32, #tpu.memory_space<vmem>>, vector<24x1xf32>
    %c0_1 = arith.constant 0 : index
    %c0_2 = arith.constant 0 : index
    %1 = vector.load %arg5[%c0_1, %c0_2] : memref<24x1xf32, #tpu.memory_space<vmem>>, vector<24x1xf32>
    %c0_3 = arith.constant 0 : index
    %c0_4 = arith.constant 0 : index
    %2 = vector.load %arg6[%c0_3, %c0_4] : memref<24x1xf32, #tpu.memory_space<vmem>>, vector<24x1xf32>
    %c0_5 = arith.constant 0 : index
    %c0_6 = arith.constant 0 : index
    %3 = vector.load %arg7[%c0_5, %c0_6] : memref<16x1xf32, #tpu.memory_space<vmem>>, vector<16x1xf32>
    %c0_7 = arith.constant 0 : index
    %c0_8 = arith.constant 0 : index
    %4 = vector.load %arg8[%c0_7, %c0_8] : memref<16x1xf32, #tpu.memory_space<vmem>>, vector<16x1xf32>
    %cst = arith.constant 1.000000e+00 : f32
    %5 = vector.broadcast %cst : f32 to vector<24x1xf32>
    %6 = arith.subf %5, %2 : vector<24x1xf32>
    %7 = arith.mulf %0, %6 : vector<24x1xf32>
    %cst_9 = arith.constant 1.000000e+00 : f32
    %8 = vector.broadcast %cst_9 : f32 to vector<24x1xf32>
    %9 = arith.subf %8, %7 : vector<24x1xf32>
    %cst_10 = arith.constant 9.99999968E-21 : f32
    %10 = vector.broadcast %cst_10 : f32 to vector<24x1xf32>
    %11 = arith.addf %9, %10 : vector<24x1xf32>
    %12 = math.absf %11 : vector<24x1xf32>
    %cst_11 = arith.constant 1.000000e-30 : f32
    %13 = vector.broadcast %cst_11 : f32 to vector<24x1xf32>
    %14 = arith.maximumf %12, %13 : vector<24x1xf32>
    %15 = math.log %14 : vector<24x1xf32>
    %cst_12 = arith.constant 0.000000e+00 : f32
    %16 = vector.broadcast %cst_12 : f32 to vector<24x1xf32>
    %17 = arith.cmpf olt, %11, %16 : vector<24x1xf32>
    %cst_13 = arith.constant 1.000000e+00 : f32
    %cst_14 = arith.constant 0.000000e+00 : f32
    %18 = vector.broadcast %cst_13 : f32 to vector<24x1xf32>
    %19 = vector.broadcast %cst_14 : f32 to vector<24x1xf32>
    %20 = arith.select %17, %18, %19 : vector<24x1xi1>, vector<24x1xf32>
    %21 = tpu.concatenate %15, %20 in 1 : vector<24x1xf32>, vector<24x1xf32> -> vector<24x2xf32>
    %c0_15 = arith.constant 0 : index
    %c0_16 = arith.constant 0 : index
    %22 = vector.load %arg0[%c0_15, %c0_16] : memref<40x24xf32, #tpu.memory_space<vmem>>, vector<40x24xf32>
    %cst_17 = arith.constant dense<0.000000e+00> : vector<40x2xf32>
    %23 = tpu.matmul %22, %21, %cst_17 {dimension_numbers = #tpu.dot_dimension_numbers<[1], [0], [0], [1], [0, 0, 1, 1], [], []>, precision = #tpu.contract_precision<fp32>} : vector<40x24xf32>, vector<24x2xf32>, vector<40x2xf32> -> vector<40x2xf32>
    %24 = vector.extract_strided_slice %23 {offsets = [0, 0], sizes = [16, 2], strides = [1, 1]} : vector<40x2xf32> to vector<16x2xf32>
    %25 = vector.extract_strided_slice %23 {offsets = [16, 0], sizes = [24, 2], strides = [1, 1]} : vector<40x2xf32> to vector<24x2xf32>
    %c0_18 = arith.constant 0 : index
    %c0_19 = arith.constant 0 : index
    %26 = vector.load %arg1[%c0_18, %c0_19] : memref<24x16xf32, #tpu.memory_space<vmem>>, vector<24x16xf32>
    %cst_20 = arith.constant dense<0.000000e+00> : vector<24x2xf32>
    %27 = tpu.matmul %26, %24, %cst_20 {dimension_numbers = #tpu.dot_dimension_numbers<[1], [0], [0], [1], [0, 0, 1, 1], [], []>, precision = #tpu.contract_precision<fp32>} : vector<24x16xf32>, vector<16x2xf32>, vector<24x2xf32> -> vector<24x2xf32>
    %28 = vector.extract_strided_slice %24 {offsets = [0, 0], sizes = [16, 1], strides = [1, 1]} : vector<16x2xf32> to vector<16x1xf32>
    %29 = vector.extract_strided_slice %24 {offsets = [0, 1], sizes = [16, 1], strides = [1, 1]} : vector<16x2xf32> to vector<16x1xf32>
    %cst_21 = arith.constant 5.000000e-01 : f32
    %30 = vector.broadcast %cst_21 : f32 to vector<16x1xf32>
    %31 = arith.mulf %29, %30 : vector<16x1xf32>
    %32 = math.floor %31 : vector<16x1xf32>
    %cst_22 = arith.constant 2.000000e+00 : f32
    %33 = vector.broadcast %cst_22 : f32 to vector<16x1xf32>
    %34 = arith.mulf %33, %32 : vector<16x1xf32>
    %35 = arith.subf %29, %34 : vector<16x1xf32>
    %36 = math.exp %28 : vector<16x1xf32>
    %cst_23 = arith.constant 2.000000e+00 : f32
    %37 = vector.broadcast %cst_23 : f32 to vector<16x1xf32>
    %38 = arith.mulf %37, %35 : vector<16x1xf32>
    %cst_24 = arith.constant 1.000000e+00 : f32
    %39 = vector.broadcast %cst_24 : f32 to vector<16x1xf32>
    %40 = arith.subf %39, %38 : vector<16x1xf32>
    %41 = arith.mulf %36, %40 : vector<16x1xf32>
    %42 = vector.extract_strided_slice %27 {offsets = [0, 0], sizes = [24, 1], strides = [1, 1]} : vector<24x2xf32> to vector<24x1xf32>
    %43 = vector.extract_strided_slice %25 {offsets = [0, 0], sizes = [24, 1], strides = [1, 1]} : vector<24x2xf32> to vector<24x1xf32>
    %44 = arith.subf %42, %43 : vector<24x1xf32>
    %45 = vector.extract_strided_slice %27 {offsets = [0, 1], sizes = [24, 1], strides = [1, 1]} : vector<24x2xf32> to vector<24x1xf32>
    %46 = vector.extract_strided_slice %25 {offsets = [0, 1], sizes = [24, 1], strides = [1, 1]} : vector<24x2xf32> to vector<24x1xf32>
    %47 = arith.subf %45, %46 : vector<24x1xf32>
    %cst_25 = arith.constant 5.000000e-01 : f32
    %48 = vector.broadcast %cst_25 : f32 to vector<24x1xf32>
    %49 = arith.mulf %47, %48 : vector<24x1xf32>
    %50 = math.floor %49 : vector<24x1xf32>
    %cst_26 = arith.constant 2.000000e+00 : f32
    %51 = vector.broadcast %cst_26 : f32 to vector<24x1xf32>
    %52 = arith.mulf %51, %50 : vector<24x1xf32>
    %53 = arith.subf %47, %52 : vector<24x1xf32>
    %54 = math.exp %44 : vector<24x1xf32>
    %cst_27 = arith.constant 2.000000e+00 : f32
    %55 = vector.broadcast %cst_27 : f32 to vector<24x1xf32>
    %56 = arith.mulf %55, %53 : vector<24x1xf32>
    %cst_28 = arith.constant 1.000000e+00 : f32
    %57 = vector.broadcast %cst_28 : f32 to vector<24x1xf32>
    %58 = arith.subf %57, %56 : vector<24x1xf32>
    %59 = arith.mulf %54, %58 : vector<24x1xf32>
    %60 = arith.mulf %2, %59 : vector<24x1xf32>
    %61 = arith.mulf %1, %6 : vector<24x1xf32>
    %62 = arith.subf %60, %2 : vector<24x1xf32>
    %63 = arith.subf %61, %62 : vector<24x1xf32>
    %64 = arith.mulf %3, %41 : vector<16x1xf32>
    %cst_29 = arith.constant 1.000000e+00 : f32
    %65 = vector.broadcast %cst_29 : f32 to vector<16x1xf32>
    %66 = arith.subf %65, %3 : vector<16x1xf32>
    %67 = arith.mulf %4, %66 : vector<16x1xf32>
    %cst_30 = arith.constant 1.000000e+00 : f32
    %68 = vector.broadcast %cst_30 : f32 to vector<16x1xf32>
    %69 = arith.subf %68, %64 : vector<16x1xf32>
    %70 = arith.subf %69, %67 : vector<16x1xf32>
    %c0_31 = arith.constant 0 : index
    %c0_32 = arith.constant 0 : index
    %71 = vector.load %arg33[%c0_31, %c0_32] : memref<24x1xf32, #tpu.memory_space<vmem>>, vector<24x1xf32>
    tpu.vector_store %arg33[%c0_31, %c0_32], %11 {strides = array<i32>} : memref<24x1xf32, #tpu.memory_space<vmem>>, vector<24x1xf32>,
    %c0_33 = arith.constant 0 : index
    %c0_34 = arith.constant 0 : index
    %72 = vector.load %arg34[%c0_33, %c0_34] : memref<24x1xf32, #tpu.memory_space<vmem>>, vector<24x1xf32>
    tpu.vector_store %arg34[%c0_33, %c0_34], %63 {strides = array<i32>} : memref<24x1xf32, #tpu.memory_space<vmem>>, vector<24x1xf32>,
    %c0_35 = arith.constant 0 : index
    %c0_36 = arith.constant 0 : index
    %73 = vector.load %arg35[%c0_35, %c0_36] : memref<24x1xf32, #tpu.memory_space<vmem>>, vector<24x1xf32>
    tpu.vector_store %arg35[%c0_35, %c0_36], %60 {strides = array<i32>} : memref<24x1xf32, #tpu.memory_space<vmem>>, vector<24x1xf32>,
    %c0_37 = arith.constant 0 : index
    %c0_38 = arith.constant 0 : index
    %74 = vector.load %arg36[%c0_37, %c0_38] : memref<16x1xf32, #tpu.memory_space<vmem>>, vector<16x1xf32>
    tpu.vector_store %arg36[%c0_37, %c0_38], %64 {strides = array<i32>} : memref<16x1xf32, #tpu.memory_space<vmem>>, vector<16x1xf32>,
    %c0_39 = arith.constant 0 : index
    %c0_40 = arith.constant 0 : index
    %75 = vector.load %arg37[%c0_39, %c0_40] : memref<16x1xf32, #tpu.memory_space<vmem>>, vector<16x1xf32>
    tpu.vector_store %arg37[%c0_39, %c0_40], %70 {strides = array<i32>} : memref<16x1xf32, #tpu.memory_space<vmem>>, vector<16x1xf32>,
    %c0_41 = arith.constant 0 : index
    %c0_42 = arith.constant 0 : index
    %76 = vector.load %arg38[%c0_41, %c0_42] : memref<16x1xf32, #tpu.memory_space<vmem>>, vector<16x1xf32>
    tpu.vector_store %arg38[%c0_41, %c0_42], %67 {strides = array<i32>} : memref<16x1xf32, #tpu.memory_space<vmem>>, vector<16x1xf32>,
    %c0_43 = arith.constant 0 : index
    %c0_44 = arith.constant 0 : index
    %77 = vector.load %arg9[%c0_43, %c0_44] : memref<3x128xf32, #tpu.memory_space<vmem>>, vector<3x128xf32>
    %78 = vector.extract_strided_slice %77 {offsets = [0, 0], sizes = [1, 128], strides = [1, 1]} : vector<3x128xf32> to vector<1x128xf32>
    %79 = vector.broadcast %11 : vector<24x1xf32> to vector<24x128xf32>
    %80 = vector.broadcast %78 : vector<1x128xf32> to vector<24x128xf32>
    %81 = arith.mulf %79, %80 : vector<24x128xf32>
    %82 = vector.extract_strided_slice %77 {offsets = [1, 0], sizes = [1, 128], strides = [1, 1]} : vector<3x128xf32> to vector<1x128xf32>
    %83 = vector.broadcast %63 : vector<24x1xf32> to vector<24x128xf32>
    %84 = vector.broadcast %82 : vector<1x128xf32> to vector<24x128xf32>
    %85 = arith.mulf %83, %84 : vector<24x128xf32>
    %86 = arith.addf %81, %85 : vector<24x128xf32>
    %87 = vector.extract_strided_slice %77 {offsets = [2, 0], sizes = [1, 128], strides = [1, 1]} : vector<3x128xf32> to vector<1x128xf32>
    %88 = vector.broadcast %60 : vector<24x1xf32> to vector<24x128xf32>
    %89 = vector.broadcast %87 : vector<1x128xf32> to vector<24x128xf32>
    %90 = arith.mulf %88, %89 : vector<24x128xf32>
    %91 = arith.addf %86, %90 : vector<24x128xf32>
    %c0_45 = arith.constant 0 : index
    %c0_46 = arith.constant 0 : index
    %92 = vector.load %arg10[%c0_45, %c0_46] : memref<1x128xf32, #tpu.memory_space<vmem>>, vector<1x128xf32>
    %93 = vector.broadcast %92 : vector<1x128xf32> to vector<24x128xf32>
    %94 = arith.addf %91, %93 : vector<24x128xf32>
    %cst_47 = arith.constant 0.000000e+00 : f32
    %95 = vector.broadcast %cst_47 : f32 to vector<24x128xf32>
    %96 = arith.maximumf %94, %95 : vector<24x128xf32>
    %c0_48 = arith.constant 0 : index
    %c0_49 = arith.constant 0 : index
    %97 = vector.load %arg39[%c0_48, %c0_49] : memref<24x128xf32, #tpu.memory_space<vmem>>, vector<24x128xf32>
    tpu.vector_store %arg39[%c0_48, %c0_49], %96 {strides = array<i32>} : memref<24x128xf32, #tpu.memory_space<vmem>>, vector<24x128xf32>,
    %cst_50 = arith.constant 0.000000e+00 : f32
    %98 = vector.broadcast %cst_50 : f32 to vector<16x1xf32>
    %cst_51 = arith.constant 0.000000e+00 : f32
    %99 = vector.broadcast %cst_51 : f32 to vector<16x3xf32>
    %100 = tpu.concatenate %64, %70, %67, %98, %98, %99 in 1 : vector<16x1xf32>, vector<16x1xf32>, vector<16x1xf32>, vector<16x1xf32>, vector<16x1xf32>, vector<16x3xf32> -> vector<16x8xf32>
    %c0_52 = arith.constant 0 : index
    %c0_53 = arith.constant 0 : index
    %c0_54 = arith.constant 0 : index
    %101 = vector.load %arg32[%c0_52, %c0_53, %c0_54] : memref<5x16x8xf32, #tpu.memory_space<vmem>>, vector<1x16x8xf32>
    %102 = vector.shape_cast %101 : vector<1x16x8xf32> to vector<16x8xf32>
    %103 = vector.shape_cast %100 : vector<16x8xf32> to vector<1x16x8xf32>
    tpu.vector_store %arg32[%c0_52, %c0_53, %c0_54], %103 {strides = array<i32>} : memref<5x16x8xf32, #tpu.memory_space<vmem>>, vector<1x16x8xf32>,
    %c0_i32 = arith.constant 0 : i32
    %c4_i32 = arith.constant 4 : i32
    %104 = arith.addi %c0_i32, %c4_i32 : i32
    %c1_i32 = arith.constant 1 : i32
    scf.for %arg40 = %c0_i32 to %104 step %c1_i32  : i32 {
      %c1_i32_56 = arith.constant 1 : i32
      %105 = arith.muli %arg40, %c1_i32_56 : i32
      %c1_i32_57 = arith.constant 1 : i32
      %106 = arith.addi %c1_i32_57, %105 : i32
      %c0_58 = arith.constant 0 : index
      %c0_59 = arith.constant 0 : index
      %107 = vector.load %arg34[%c0_58, %c0_59] : memref<24x1xf32, #tpu.memory_space<vmem>>, vector<24x1xf32>
      %c0_60 = arith.constant 0 : index
      %c0_61 = arith.constant 0 : index
      %108 = vector.load %arg35[%c0_60, %c0_61] : memref<24x1xf32, #tpu.memory_space<vmem>>, vector<24x1xf32>
      %c0_62 = arith.constant 0 : index
      %c0_63 = arith.constant 0 : index
      %109 = vector.load %arg36[%c0_62, %c0_63] : memref<16x1xf32, #tpu.memory_space<vmem>>, vector<16x1xf32>
      %c0_64 = arith.constant 0 : index
      %c0_65 = arith.constant 0 : index
      %110 = vector.load %arg37[%c0_64, %c0_65] : memref<16x1xf32, #tpu.memory_space<vmem>>, vector<16x1xf32>
      %c0_66 = arith.constant 0 : index
      %c0_67 = arith.constant 0 : index
      %111 = vector.load %arg38[%c0_66, %c0_67] : memref<16x1xf32, #tpu.memory_space<vmem>>, vector<16x1xf32>
      %c0_68 = arith.constant 0 : index
      %c0_69 = arith.constant 0 : index
      %112 = vector.load %arg33[%c0_68, %c0_69] : memref<24x1xf32, #tpu.memory_space<vmem>>, vector<24x1xf32>
      %113 = arith.mulf %0, %107 : vector<24x1xf32>
      %114 = arith.subf %112, %113 : vector<24x1xf32>
      %115 = math.absf %114 : vector<24x1xf32>
      %cst_70 = arith.constant 1.000000e-30 : f32
      %116 = vector.broadcast %cst_70 : f32 to vector<24x1xf32>
      %117 = arith.maximumf %115, %116 : vector<24x1xf32>
      %118 = math.log %117 : vector<24x1xf32>
      %cst_71 = arith.constant 0.000000e+00 : f32
      %119 = vector.broadcast %cst_71 : f32 to vector<24x1xf32>
      %120 = arith.cmpf olt, %114, %119 : vector<24x1xf32>
      %cst_72 = arith.constant 1.000000e+00 : f32
      %cst_73 = arith.constant 0.000000e+00 : f32
      %121 = vector.broadcast %cst_72 : f32 to vector<24x1xf32>
      %122 = vector.broadcast %cst_73 : f32 to vector<24x1xf32>
      %123 = arith.select %120, %121, %122 : vector<24x1xi1>, vector<24x1xf32>
      %124 = tpu.concatenate %118, %123 in 1 : vector<24x1xf32>, vector<24x1xf32> -> vector<24x2xf32>
      %c0_74 = arith.constant 0 : index
      %c0_75 = arith.constant 0 : index
      %125 = vector.load %arg0[%c0_74, %c0_75] : memref<40x24xf32, #tpu.memory_space<vmem>>, vector<40x24xf32>
      %cst_76 = arith.constant dense<0.000000e+00> : vector<40x2xf32>
      %126 = tpu.matmul %125, %124, %cst_76 {dimension_numbers = #tpu.dot_dimension_numbers<[1], [0], [0], [1], [0, 0, 1, 1], [], []>, precision = #tpu.contract_precision<fp32>} : vector<40x24xf32>, vector<24x2xf32>, vector<40x2xf32> -> vector<40x2xf32>
      %127 = vector.extract_strided_slice %126 {offsets = [0, 0], sizes = [16, 2], strides = [1, 1]} : vector<40x2xf32> to vector<16x2xf32>
      %128 = vector.extract_strided_slice %126 {offsets = [16, 0], sizes = [24, 2], strides = [1, 1]} : vector<40x2xf32> to vector<24x2xf32>
      %c0_77 = arith.constant 0 : index
      %c0_78 = arith.constant 0 : index
      %129 = vector.load %arg1[%c0_77, %c0_78] : memref<24x16xf32, #tpu.memory_space<vmem>>, vector<24x16xf32>
      %cst_79 = arith.constant dense<0.000000e+00> : vector<24x2xf32>
      %130 = tpu.matmul %129, %127, %cst_79 {dimension_numbers = #tpu.dot_dimension_numbers<[1], [0], [0], [1], [0, 0, 1, 1], [], []>, precision = #tpu.contract_precision<fp32>} : vector<24x16xf32>, vector<16x2xf32>, vector<24x2xf32> -> vector<24x2xf32>
      %131 = vector.extract_strided_slice %127 {offsets = [0, 0], sizes = [16, 1], strides = [1, 1]} : vector<16x2xf32> to vector<16x1xf32>
      %132 = vector.extract_strided_slice %127 {offsets = [0, 1], sizes = [16, 1], strides = [1, 1]} : vector<16x2xf32> to vector<16x1xf32>
      %cst_80 = arith.constant 5.000000e-01 : f32
      %133 = vector.broadcast %cst_80 : f32 to vector<16x1xf32>
      %134 = arith.mulf %132, %133 : vector<16x1xf32>
      %135 = math.floor %134 : vector<16x1xf32>
      %cst_81 = arith.constant 2.000000e+00 : f32
      %136 = vector.broadcast %cst_81 : f32 to vector<16x1xf32>
      %137 = arith.mulf %136, %135 : vector<16x1xf32>
      %138 = arith.subf %132, %137 : vector<16x1xf32>
      %139 = math.exp %131 : vector<16x1xf32>
      %cst_82 = arith.constant 2.000000e+00 : f32
      %140 = vector.broadcast %cst_82 : f32 to vector<16x1xf32>
      %141 = arith.mulf %140, %138 : vector<16x1xf32>
      %cst_83 = arith.constant 1.000000e+00 : f32
      %142 = vector.broadcast %cst_83 : f32 to vector<16x1xf32>
      %143 = arith.subf %142, %141 : vector<16x1xf32>
      %144 = arith.mulf %139, %143 : vector<16x1xf32>
      %145 = vector.extract_strided_slice %130 {offsets = [0, 0], sizes = [24, 1], strides = [1, 1]} : vector<24x2xf32> to vector<24x1xf32>
      %146 = vector.extract_strided_slice %128 {offsets = [0, 0], sizes = [24, 1], strides = [1, 1]} : vector<24x2xf32> to vector<24x1xf32>
      %147 = arith.subf %145, %146 : vector<24x1xf32>
      %148 = vector.extract_strided_slice %130 {offsets = [0, 1], sizes = [24, 1], strides = [1, 1]} : vector<24x2xf32> to vector<24x1xf32>
      %149 = vector.extract_strided_slice %128 {offsets = [0, 1], sizes = [24, 1], strides = [1, 1]} : vector<24x2xf32> to vector<24x1xf32>
      %150 = arith.subf %148, %149 : vector<24x1xf32>
      %cst_84 = arith.constant 5.000000e-01 : f32
      %151 = vector.broadcast %cst_84 : f32 to vector<24x1xf32>
      %152 = arith.mulf %150, %151 : vector<24x1xf32>
      %153 = math.floor %152 : vector<24x1xf32>
      %cst_85 = arith.constant 2.000000e+00 : f32
      %154 = vector.broadcast %cst_85 : f32 to vector<24x1xf32>
      %155 = arith.mulf %154, %153 : vector<24x1xf32>
      %156 = arith.subf %150, %155 : vector<24x1xf32>
      %157 = math.exp %147 : vector<24x1xf32>
      %cst_86 = arith.constant 2.000000e+00 : f32
      %158 = vector.broadcast %cst_86 : f32 to vector<24x1xf32>
      %159 = arith.mulf %158, %156 : vector<24x1xf32>
      %cst_87 = arith.constant 1.000000e+00 : f32
      %160 = vector.broadcast %cst_87 : f32 to vector<24x1xf32>
      %161 = arith.subf %160, %159 : vector<24x1xf32>
      %162 = arith.mulf %157, %161 : vector<24x1xf32>
      %c0_88 = arith.constant 0 : index
      %c0_89 = arith.constant 0 : index
      %163 = vector.load %arg39[%c0_88, %c0_89] : memref<24x128xf32, #tpu.memory_space<vmem>>, vector<24x128xf32>
      %c0_90 = arith.constant 0 : index
      %c0_91 = arith.constant 0 : index
      %164 = vector.load %arg9[%c0_90, %c0_91] : memref<3x128xf32, #tpu.memory_space<vmem>>, vector<3x128xf32>
      %165 = vector.extract_strided_slice %164 {offsets = [0, 0], sizes = [1, 128], strides = [1, 1]} : vector<3x128xf32> to vector<1x128xf32>
      %166 = vector.broadcast %114 : vector<24x1xf32> to vector<24x128xf32>
      %167 = vector.broadcast %165 : vector<1x128xf32> to vector<24x128xf32>
      %168 = arith.mulf %166, %167 : vector<24x128xf32>
      %169 = vector.extract_strided_slice %164 {offsets = [1, 0], sizes = [1, 128], strides = [1, 1]} : vector<3x128xf32> to vector<1x128xf32>
      %170 = vector.broadcast %107 : vector<24x1xf32> to vector<24x128xf32>
      %171 = vector.broadcast %169 : vector<1x128xf32> to vector<24x128xf32>
      %172 = arith.mulf %170, %171 : vector<24x128xf32>
      %173 = arith.addf %168, %172 : vector<24x128xf32>
      %174 = vector.extract_strided_slice %164 {offsets = [2, 0], sizes = [1, 128], strides = [1, 1]} : vector<3x128xf32> to vector<1x128xf32>
      %175 = vector.broadcast %108 : vector<24x1xf32> to vector<24x128xf32>
      %176 = vector.broadcast %174 : vector<1x128xf32> to vector<24x128xf32>
      %177 = arith.mulf %175, %176 : vector<24x128xf32>
      %178 = arith.addf %173, %177 : vector<24x128xf32>
      %c0_92 = arith.constant 0 : index
      %c0_93 = arith.constant 0 : index
      %179 = vector.load %arg10[%c0_92, %c0_93] : memref<1x128xf32, #tpu.memory_space<vmem>>, vector<1x128xf32>
      %180 = vector.broadcast %179 : vector<1x128xf32> to vector<24x128xf32>
      %181 = arith.addf %178, %180 : vector<24x128xf32>
      %cst_94 = arith.constant 0.000000e+00 : f32
      %182 = vector.broadcast %cst_94 : f32 to vector<24x128xf32>
      %183 = arith.maximumf %181, %182 : vector<24x128xf32>
      %c0_95 = arith.constant 0 : index
      %c0_96 = arith.constant 0 : index
      %184 = vector.load %arg11[%c0_95, %c0_96] : memref<1x128xf32, #tpu.memory_space<vmem>>, vector<1x128xf32>
      %185 = vector.broadcast %144 : vector<16x1xf32> to vector<16x128xf32>
      %186 = vector.broadcast %184 : vector<1x128xf32> to vector<16x128xf32>
      %187 = arith.mulf %185, %186 : vector<16x128xf32>
      %c0_97 = arith.constant 0 : index
      %c0_98 = arith.constant 0 : index
      %188 = vector.load %arg12[%c0_97, %c0_98] : memref<1x128xf32, #tpu.memory_space<vmem>>, vector<1x128xf32>
      %189 = vector.broadcast %188 : vector<1x128xf32> to vector<16x128xf32>
      %190 = arith.addf %187, %189 : vector<16x128xf32>
      %cst_99 = arith.constant 0.000000e+00 : f32
      %191 = vector.broadcast %cst_99 : f32 to vector<16x128xf32>
      %192 = arith.maximumf %190, %191 : vector<16x128xf32>
      %c0_100 = arith.constant 0 : index
      %c0_101 = arith.constant 0 : index
      %193 = vector.load %arg13[%c0_100, %c0_101] : memref<1x128xf32, #tpu.memory_space<vmem>>, vector<1x128xf32>
      %194 = vector.broadcast %162 : vector<24x1xf32> to vector<24x128xf32>
      %195 = vector.broadcast %193 : vector<1x128xf32> to vector<24x128xf32>
      %196 = arith.mulf %194, %195 : vector<24x128xf32>
      %c0_102 = arith.constant 0 : index
      %c0_103 = arith.constant 0 : index
      %197 = vector.load %arg14[%c0_102, %c0_103] : memref<1x128xf32, #tpu.memory_space<vmem>>, vector<1x128xf32>
      %198 = vector.broadcast %197 : vector<1x128xf32> to vector<24x128xf32>
      %199 = arith.addf %196, %198 : vector<24x128xf32>
      %cst_104 = arith.constant 0.000000e+00 : f32
      %200 = vector.broadcast %cst_104 : f32 to vector<24x128xf32>
      %201 = arith.maximumf %199, %200 : vector<24x128xf32>
      %c0_105 = arith.constant 0 : index
      %c0_106 = arith.constant 0 : index
      %202 = vector.load %arg15[%c0_105, %c0_106] : memref<128x128xbf16, #tpu.memory_space<vmem>>, vector<128x128xbf16>
      %203 = arith.truncf %163 : vector<24x128xf32> to vector<24x128xbf16>
      %cst_107 = arith.constant dense<0.000000e+00> : vector<24x128xf32>
      %204 = tpu.matmul %203, %202, %cst_107 {dimension_numbers = #tpu.dot_dimension_numbers<[1], [0], [0], [1], [0, 0, 1, 1], [], []>} : vector<24x128xbf16>, vector<128x128xbf16>, vector<24x128xf32> -> vector<24x128xf32>
      %c0_108 = arith.constant 0 : index
      %c0_109 = arith.constant 0 : index
      %205 = vector.load %arg16[%c0_108, %c0_109] : memref<128x128xbf16, #tpu.memory_space<vmem>>, vector<128x128xbf16>
      %206 = arith.truncf %183 : vector<24x128xf32> to vector<24x128xbf16>
      %cst_110 = arith.constant dense<0.000000e+00> : vector<24x128xf32>
      %207 = tpu.matmul %206, %205, %cst_110 {dimension_numbers = #tpu.dot_dimension_numbers<[1], [0], [0], [1], [0, 0, 1, 1], [], []>} : vector<24x128xbf16>, vector<128x128xbf16>, vector<24x128xf32> -> vector<24x128xf32>
      %208 = arith.addf %204, %207 : vector<24x128xf32>
      %c0_111 = arith.constant 0 : index
      %c0_112 = arith.constant 0 : index
      %209 = vector.load %arg17[%c0_111, %c0_112] : memref<1x128xf32, #tpu.memory_space<vmem>>, vector<1x128xf32>
      %210 = vector.broadcast %209 : vector<1x128xf32> to vector<24x128xf32>
      %211 = arith.addf %208, %210 : vector<24x128xf32>
      %cst_113 = arith.constant 0.000000e+00 : f32
      %212 = vector.broadcast %cst_113 : f32 to vector<24x128xf32>
      %213 = arith.maximumf %211, %212 : vector<24x128xf32>
      %214 = arith.truncf %213 : vector<24x128xf32> to vector<24x128xbf16>
      %c0_114 = arith.constant 0 : index
      %c0_115 = arith.constant 0 : index
      %215 = vector.load %arg2[%c0_114, %c0_115] : memref<16x24xbf16, #tpu.memory_space<vmem>>, vector<16x24xbf16>
      %cst_116 = arith.constant dense<0.000000e+00> : vector<16x128xf32>
      %216 = tpu.matmul %215, %214, %cst_116 {dimension_numbers = #tpu.dot_dimension_numbers<[1], [0], [0], [1], [0, 0, 1, 1], [], []>} : vector<16x24xbf16>, vector<24x128xbf16>, vector<16x128xf32> -> vector<16x128xf32>
      %c0_117 = arith.constant 0 : index
      %c0_118 = arith.constant 0 : index
      %217 = vector.load %arg18[%c0_117, %c0_118] : memref<128x128xbf16, #tpu.memory_space<vmem>>, vector<128x128xbf16>
      %218 = arith.truncf %216 : vector<16x128xf32> to vector<16x128xbf16>
      %cst_119 = arith.constant dense<0.000000e+00> : vector<16x128xf32>
      %219 = tpu.matmul %218, %217, %cst_119 {dimension_numbers = #tpu.dot_dimension_numbers<[1], [0], [0], [1], [0, 0, 1, 1], [], []>} : vector<16x128xbf16>, vector<128x128xbf16>, vector<16x128xf32> -> vector<16x128xf32>
      %c0_120 = arith.constant 0 : index
      %c0_121 = arith.constant 0 : index
      %220 = vector.load %arg19[%c0_120, %c0_121] : memref<1x128xf32, #tpu.memory_space<vmem>>, vector<1x128xf32>
      %221 = vector.broadcast %220 : vector<1x128xf32> to vector<16x128xf32>
      %222 = arith.addf %219, %221 : vector<16x128xf32>
      %cst_122 = arith.constant 0.000000e+00 : f32
      %223 = vector.broadcast %cst_122 : f32 to vector<16x128xf32>
      %224 = arith.maximumf %222, %223 : vector<16x128xf32>
      %c0_123 = arith.constant 0 : index
      %c0_124 = arith.constant 0 : index
      %225 = vector.load %arg26[%c0_123, %c0_124] : memref<128x128xbf16, #tpu.memory_space<vmem>>, vector<128x128xbf16>
      %226 = arith.truncf %224 : vector<16x128xf32> to vector<16x128xbf16>
      %cst_125 = arith.constant dense<0.000000e+00> : vector<16x128xf32>
      %227 = tpu.matmul %226, %225, %cst_125 {dimension_numbers = #tpu.dot_dimension_numbers<[1], [0], [0], [1], [0, 0, 1, 1], [], []>} : vector<16x128xbf16>, vector<128x128xbf16>, vector<16x128xf32> -> vector<16x128xf32>
      %c0_126 = arith.constant 0 : index
      %c0_127 = arith.constant 0 : index
      %228 = vector.load %arg27[%c0_126, %c0_127] : memref<128x128xbf16, #tpu.memory_space<vmem>>, vector<128x128xbf16>
      %229 = arith.truncf %192 : vector<16x128xf32> to vector<16x128xbf16>
      %cst_128 = arith.constant dense<0.000000e+00> : vector<16x128xf32>
      %230 = tpu.matmul %229, %228, %cst_128 {dimension_numbers = #tpu.dot_dimension_numbers<[1], [0], [0], [1], [0, 0, 1, 1], [], []>} : vector<16x128xbf16>, vector<128x128xbf16>, vector<16x128xf32> -> vector<16x128xf32>
      %231 = arith.addf %227, %230 : vector<16x128xf32>
      %c0_129 = arith.constant 0 : index
      %c0_130 = arith.constant 0 : index
      %232 = vector.load %arg28[%c0_129, %c0_130] : memref<1x128xf32, #tpu.memory_space<vmem>>, vector<1x128xf32>
      %233 = vector.broadcast %232 : vector<1x128xf32> to vector<16x128xf32>
      %234 = arith.addf %231, %233 : vector<16x128xf32>
      %235 = arith.negf %234 : vector<16x128xf32>
      %236 = math.exp %235 : vector<16x128xf32>
      %cst_131 = arith.constant 1.000000e+00 : f32
      %237 = vector.broadcast %cst_131 : f32 to vector<16x128xf32>
      %238 = arith.addf %237, %236 : vector<16x128xf32>
      %239 = arith.divf %237, %238 : vector<16x128xf32>
      %c0_132 = arith.constant 0 : index
      %c0_133 = arith.constant 0 : index
      %240 = vector.load %arg3[%c0_132, %c0_133] : memref<24x24xbf16, #tpu.memory_space<vmem>>, vector<24x24xbf16>
      %cst_134 = arith.constant dense<0.000000e+00> : vector<24x128xf32>
      %241 = tpu.matmul %240, %214, %cst_134 {dimension_numbers = #tpu.dot_dimension_numbers<[1], [0], [0], [1], [0, 0, 1, 1], [], []>} : vector<24x24xbf16>, vector<24x128xbf16>, vector<24x128xf32> -> vector<24x128xf32>
      %c0_135 = arith.constant 0 : index
      %c0_136 = arith.constant 0 : index
      %242 = vector.load %arg20[%c0_135, %c0_136] : memref<128x128xbf16, #tpu.memory_space<vmem>>, vector<128x128xbf16>
      %243 = arith.truncf %241 : vector<24x128xf32> to vector<24x128xbf16>
      %cst_137 = arith.constant dense<0.000000e+00> : vector<24x128xf32>
      %244 = tpu.matmul %243, %242, %cst_137 {dimension_numbers = #tpu.dot_dimension_numbers<[1], [0], [0], [1], [0, 0, 1, 1], [], []>} : vector<24x128xbf16>, vector<128x128xbf16>, vector<24x128xf32> -> vector<24x128xf32>
      %c0_138 = arith.constant 0 : index
      %c0_139 = arith.constant 0 : index
      %245 = vector.load %arg21[%c0_138, %c0_139] : memref<1x128xf32, #tpu.memory_space<vmem>>, vector<1x128xf32>
      %246 = vector.broadcast %245 : vector<1x128xf32> to vector<24x128xf32>
      %247 = arith.addf %244, %246 : vector<24x128xf32>
      %cst_140 = arith.constant 0.000000e+00 : f32
      %248 = vector.broadcast %cst_140 : f32 to vector<24x128xf32>
      %249 = arith.maximumf %247, %248 : vector<24x128xf32>
      %c0_141 = arith.constant 0 : index
      %c0_142 = arith.constant 0 : index
      %250 = vector.load %arg22[%c0_141, %c0_142] : memref<128x384xbf16, #tpu.memory_space<vmem>>, vector<128x384xbf16>
      %251 = arith.truncf %249 : vector<24x128xf32> to vector<24x128xbf16>
      %cst_143 = arith.constant dense<0.000000e+00> : vector<24x384xf32>
      %252 = tpu.matmul %251, %250, %cst_143 {dimension_numbers = #tpu.dot_dimension_numbers<[1], [0], [0], [1], [0, 0, 1, 1], [], []>} : vector<24x128xbf16>, vector<128x384xbf16>, vector<24x384xf32> -> vector<24x384xf32>
      %c0_144 = arith.constant 0 : index
      %c0_145 = arith.constant 0 : index
      %253 = vector.load %arg23[%c0_144, %c0_145] : memref<1x384xf32, #tpu.memory_space<vmem>>, vector<1x384xf32>
      %254 = vector.broadcast %253 : vector<1x384xf32> to vector<24x384xf32>
      %255 = arith.addf %252, %254 : vector<24x384xf32>
      %c0_146 = arith.constant 0 : index
      %c0_147 = arith.constant 0 : index
      %256 = vector.load %arg24[%c0_146, %c0_147] : memref<128x384xbf16, #tpu.memory_space<vmem>>, vector<128x384xbf16>
      %257 = arith.truncf %163 : vector<24x128xf32> to vector<24x128xbf16>
      %cst_148 = arith.constant dense<0.000000e+00> : vector<24x384xf32>
      %258 = tpu.matmul %257, %256, %cst_148 {dimension_numbers = #tpu.dot_dimension_numbers<[1], [0], [0], [1], [0, 0, 1, 1], [], []>} : vector<24x128xbf16>, vector<128x384xbf16>, vector<24x384xf32> -> vector<24x384xf32>
      %c0_149 = arith.constant 0 : index
      %c0_150 = arith.constant 0 : index
      %259 = vector.load %arg25[%c0_149, %c0_150] : memref<1x384xf32, #tpu.memory_space<vmem>>, vector<1x384xf32>
      %260 = vector.broadcast %259 : vector<1x384xf32> to vector<24x384xf32>
      %261 = arith.addf %258, %260 : vector<24x384xf32>
      %262 = vector.extract_strided_slice %255 {offsets = [0, 0], sizes = [24, 128], strides = [1, 1]} : vector<24x384xf32> to vector<24x128xf32>
      %263 = vector.extract_strided_slice %261 {offsets = [0, 0], sizes = [24, 128], strides = [1, 1]} : vector<24x384xf32> to vector<24x128xf32>
      %264 = arith.addf %262, %263 : vector<24x128xf32>
      %265 = arith.negf %264 : vector<24x128xf32>
      %266 = math.exp %265 : vector<24x128xf32>
      %cst_151 = arith.constant 1.000000e+00 : f32
      %267 = vector.broadcast %cst_151 : f32 to vector<24x128xf32>
      %268 = arith.addf %267, %266 : vector<24x128xf32>
      %269 = arith.divf %267, %268 : vector<24x128xf32>
      %270 = vector.extract_strided_slice %255 {offsets = [0, 128], sizes = [24, 128], strides = [1, 1]} : vector<24x384xf32> to vector<24x128xf32>
      %271 = vector.extract_strided_slice %261 {offsets = [0, 128], sizes = [24, 128], strides = [1, 1]} : vector<24x384xf32> to vector<24x128xf32>
      %272 = arith.addf %270, %271 : vector<24x128xf32>
      %273 = arith.negf %272 : vector<24x128xf32>
      %274 = math.exp %273 : vector<24x128xf32>
      %cst_152 = arith.constant 1.000000e+00 : f32
      %275 = vector.broadcast %cst_152 : f32 to vector<24x128xf32>
      %276 = arith.addf %275, %274 : vector<24x128xf32>
      %277 = arith.divf %275, %276 : vector<24x128xf32>
      %278 = vector.extract_strided_slice %255 {offsets = [0, 256], sizes = [24, 128], strides = [1, 1]} : vector<24x384xf32> to vector<24x128xf32>
      %279 = vector.extract_strided_slice %261 {offsets = [0, 256], sizes = [24, 128], strides = [1, 1]} : vector<24x384xf32> to vector<24x128xf32>
      %280 = arith.mulf %269, %279 : vector<24x128xf32>
      %281 = arith.addf %278, %280 : vector<24x128xf32>
      %282 = math.tanh %281 : vector<24x128xf32>
      %cst_153 = arith.constant 1.000000e+00 : f32
      %283 = vector.broadcast %cst_153 : f32 to vector<24x128xf32>
      %284 = arith.subf %283, %277 : vector<24x128xf32>
      %285 = arith.mulf %284, %282 : vector<24x128xf32>
      %286 = arith.mulf %277, %163 : vector<24x128xf32>
      %287 = arith.addf %285, %286 : vector<24x128xf32>
      %c0_154 = arith.constant 0 : index
      %c0_155 = arith.constant 0 : index
      %288 = vector.load %arg29[%c0_154, %c0_155] : memref<128x128xbf16, #tpu.memory_space<vmem>>, vector<128x128xbf16>
      %289 = arith.truncf %249 : vector<24x128xf32> to vector<24x128xbf16>
      %cst_156 = arith.constant dense<0.000000e+00> : vector<24x128xf32>
      %290 = tpu.matmul %289, %288, %cst_156 {dimension_numbers = #tpu.dot_dimension_numbers<[1], [0], [0], [1], [0, 0, 1, 1], [], []>} : vector<24x128xbf16>, vector<128x128xbf16>, vector<24x128xf32> -> vector<24x128xf32>
      %c0_157 = arith.constant 0 : index
      %c0_158 = arith.constant 0 : index
      %291 = vector.load %arg30[%c0_157, %c0_158] : memref<128x128xbf16, #tpu.memory_space<vmem>>, vector<128x128xbf16>
      %292 = arith.truncf %201 : vector<24x128xf32> to vector<24x128xbf16>
      %cst_159 = arith.constant dense<0.000000e+00> : vector<24x128xf32>
      %293 = tpu.matmul %292, %291, %cst_159 {dimension_numbers = #tpu.dot_dimension_numbers<[1], [0], [0], [1], [0, 0, 1, 1], [], []>} : vector<24x128xbf16>, vector<128x128xbf16>, vector<24x128xf32> -> vector<24x128xf32>
      %294 = arith.addf %290, %293 : vector<24x128xf32>
      %c0_160 = arith.constant 0 : index
      %c0_161 = arith.constant 0 : index
      %295 = vector.load %arg31[%c0_160, %c0_161] : memref<1x128xf32, #tpu.memory_space<vmem>>, vector<1x128xf32>
      %296 = vector.broadcast %295 : vector<1x128xf32> to vector<24x128xf32>
      %297 = arith.addf %294, %296 : vector<24x128xf32>
      %298 = arith.negf %297 : vector<24x128xf32>
      %299 = math.exp %298 : vector<24x128xf32>
      %cst_162 = arith.constant 1.000000e+00 : f32
      %300 = vector.broadcast %cst_162 : f32 to vector<24x128xf32>
      %301 = arith.addf %300, %299 : vector<24x128xf32>
      %302 = arith.divf %300, %301 : vector<24x128xf32>
      %303 = vector.extract_strided_slice %239 {offsets = [0, 0], sizes = [16, 1], strides = [1, 1]} : vector<16x128xf32> to vector<16x1xf32>
      %304 = vector.extract_strided_slice %239 {offsets = [0, 1], sizes = [16, 1], strides = [1, 1]} : vector<16x128xf32> to vector<16x1xf32>
      %305 = vector.extract_strided_slice %302 {offsets = [0, 0], sizes = [24, 1], strides = [1, 1]} : vector<24x128xf32> to vector<24x1xf32>
      %306 = vector.extract_strided_slice %302 {offsets = [0, 1], sizes = [24, 1], strides = [1, 1]} : vector<24x128xf32> to vector<24x1xf32>
      %307 = arith.mulf %162, %305 : vector<24x1xf32>
      %308 = arith.addf %307, %306 : vector<24x1xf32>
      %cst_163 = arith.constant 1.000000e+00 : f32
      %309 = vector.broadcast %cst_163 : f32 to vector<24x1xf32>
      %310 = arith.minimumf %308, %309 : vector<24x1xf32>
      %311 = arith.mulf %144, %303 : vector<16x1xf32>
      %312 = arith.addf %311, %304 : vector<16x1xf32>
      %cst_164 = arith.constant 1.000000e+00 : f32
      %313 = vector.broadcast %cst_164 : f32 to vector<16x1xf32>
      %314 = arith.minimumf %312, %313 : vector<16x1xf32>
      %315 = arith.mulf %3, %314 : vector<16x1xf32>
      %316 = arith.cmpf ogt, %315, %109 : vector<16x1xf32>
      %317 = arith.subf %315, %109 : vector<16x1xf32>
      %cst_165 = arith.constant 0.000000e+00 : f32
      %318 = vector.broadcast %cst_165 : f32 to vector<16x1xf32>
      %319 = arith.select %316, %317, %318 : vector<16x1xi1>, vector<16x1xf32>
      %320 = arith.minimumf %315, %109 : vector<16x1xf32>
      %321 = arith.mulf %4, %110 : vector<16x1xf32>
      %322 = arith.addf %111, %321 : vector<16x1xf32>
      %323 = arith.cmpf olt, %322, %111 : vector<16x1xf32>
      %324 = arith.subf %111, %322 : vector<16x1xf32>
      %cst_166 = arith.constant 0.000000e+00 : f32
      %325 = vector.broadcast %cst_166 : f32 to vector<16x1xf32>
      %326 = arith.select %323, %324, %325 : vector<16x1xi1>, vector<16x1xf32>
      %327 = arith.maximumf %322, %111 : vector<16x1xf32>
      %cst_167 = arith.constant 1.000000e+00 : f32
      %328 = vector.broadcast %cst_167 : f32 to vector<16x1xf32>
      %329 = arith.subf %328, %320 : vector<16x1xf32>
      %330 = arith.subf %329, %327 : vector<16x1xf32>
      %331 = arith.mulf %2, %310 : vector<24x1xf32>
      %332 = arith.mulf %1, %107 : vector<24x1xf32>
      %333 = arith.subf %331, %108 : vector<24x1xf32>
      %334 = arith.subf %332, %333 : vector<24x1xf32>
      %c0_168 = arith.constant 0 : index
      %c0_169 = arith.constant 0 : index
      %335 = vector.load %arg33[%c0_168, %c0_169] : memref<24x1xf32, #tpu.memory_space<vmem>>, vector<24x1xf32>
      tpu.vector_store %arg33[%c0_168, %c0_169], %114 {strides = array<i32>} : memref<24x1xf32, #tpu.memory_space<vmem>>, vector<24x1xf32>,
      %c0_170 = arith.constant 0 : index
      %c0_171 = arith.constant 0 : index
      %336 = vector.load %arg34[%c0_170, %c0_171] : memref<24x1xf32, #tpu.memory_space<vmem>>, vector<24x1xf32>
      tpu.vector_store %arg34[%c0_170, %c0_171], %334 {strides = array<i32>} : memref<24x1xf32, #tpu.memory_space<vmem>>, vector<24x1xf32>,
      %c0_172 = arith.constant 0 : index
      %c0_173 = arith.constant 0 : index
      %337 = vector.load %arg35[%c0_172, %c0_173] : memref<24x1xf32, #tpu.memory_space<vmem>>, vector<24x1xf32>
      tpu.vector_store %arg35[%c0_172, %c0_173], %331 {strides = array<i32>} : memref<24x1xf32, #tpu.memory_space<vmem>>, vector<24x1xf32>,
      %c0_174 = arith.constant 0 : index
      %c0_175 = arith.constant 0 : index
      %338 = vector.load %arg36[%c0_174, %c0_175] : memref<16x1xf32, #tpu.memory_space<vmem>>, vector<16x1xf32>
      tpu.vector_store %arg36[%c0_174, %c0_175], %320 {strides = array<i32>} : memref<16x1xf32, #tpu.memory_space<vmem>>, vector<16x1xf32>,
      %c0_176 = arith.constant 0 : index
      %c0_177 = arith.constant 0 : index
      %339 = vector.load %arg37[%c0_176, %c0_177] : memref<16x1xf32, #tpu.memory_space<vmem>>, vector<16x1xf32>
      tpu.vector_store %arg37[%c0_176, %c0_177], %330 {strides = array<i32>} : memref<16x1xf32, #tpu.memory_space<vmem>>, vector<16x1xf32>,
      %c0_178 = arith.constant 0 : index
      %c0_179 = arith.constant 0 : index
      %340 = vector.load %arg38[%c0_178, %c0_179] : memref<16x1xf32, #tpu.memory_space<vmem>>, vector<16x1xf32>
      tpu.vector_store %arg38[%c0_178, %c0_179], %327 {strides = array<i32>} : memref<16x1xf32, #tpu.memory_space<vmem>>, vector<16x1xf32>,
      %c0_180 = arith.constant 0 : index
      %c0_181 = arith.constant 0 : index
      %341 = vector.load %arg39[%c0_180, %c0_181] : memref<24x128xf32, #tpu.memory_space<vmem>>, vector<24x128xf32>
      tpu.vector_store %arg39[%c0_180, %c0_181], %287 {strides = array<i32>} : memref<24x128xf32, #tpu.memory_space<vmem>>, vector<24x128xf32>,
      %cst_182 = arith.constant 0.000000e+00 : f32
      %342 = vector.broadcast %cst_182 : f32 to vector<16x3xf32>
      %343 = tpu.concatenate %320, %330, %327, %319, %326, %342 in 1 : vector<16x1xf32>, vector<16x1xf32>, vector<16x1xf32>, vector<16x1xf32>, vector<16x1xf32>, vector<16x3xf32> -> vector<16x8xf32>
      %344 = arith.index_cast %106 : i32 to index
      %c0_183 = arith.constant 0 : index
      %c0_184 = arith.constant 0 : index
      %345 = vector.load %arg32[%344, %c0_183, %c0_184] : memref<5x16x8xf32, #tpu.memory_space<vmem>>, vector<1x16x8xf32>
      %346 = vector.shape_cast %345 : vector<1x16x8xf32> to vector<16x8xf32>
      %347 = vector.shape_cast %343 : vector<16x8xf32> to vector<1x16x8xf32>
      tpu.vector_store %arg32[%344, %c0_183, %c0_184], %347 {strides = array<i32>} : memref<5x16x8xf32, #tpu.memory_space<vmem>>, vector<1x16x8xf32>,
    }
    %c4_i32_55 = arith.constant 4 : i32
    return
  }
}

</mosaic_0001>

<bundles_post_ra>
// kernel: tpu_custom_call.1
= control target key start
LH: loop header
LB: loop body
LE: loop exit
PB: predicated region body
PF: predicated region fallthrough
CT: control target
= control target key end

     0   :  { %s4548_s6 = smov 1   ;;  %s4549_s10 = smov 2   ;;  %s5650_s0 = inlined_call_operand.smem [shape: u32[33], index: -1, kind: input, shape index: {}] }
   0x1   :  { %s4613_s5 = sld [smem:[%s5650_s0]]   ;;  %s4550_s14 = smov 3  }
   0x2   :  { %s4618_s9 = sld [smem:[%s5650_s0 + %s4548_s6]]   ;;  %s4551_s18 = smov 4  }
   0x3   :  { %s4623_s13 = sld [smem:[%s5650_s0 + %s4549_s10]]   ;;  %s4552_s22 = smov 5  }
   0x4   :  { %s4628_s17 = sld [smem:[%s5650_s0 + %s4550_s14]]   ;;  %s4553_s26 = smov 6  }
   0x5   :  { %s4633_s21 = sld [smem:[%s5650_s0 + %s4551_s18]]   ;;  %s4554_s30 = smov 7  }
   0x6   :  { %s4638_s25 = sld [smem:[%s5650_s0 + %s4552_s22]]   ;;  %s4555_s4 = smov 8  }
   0x7   :  { %s4643_s29 = sld [smem:[%s5650_s0 + %s4553_s26]]   ;;  %s4556_s10 = smov 9  }
   0x8   :  { %s4648_s3 = sld [smem:[%s5650_s0 + %s4554_s30]]   ;;  %s4557_s15 = smov 10  }
   0x9   :  { %5653 = sst [smem:[#allocation28_spill]] %s4623_s13  ;;  %s4558_s20 = smov 11  }
   0xa   :  { %5654 = sst [smem:[#allocation29_spill]] %s4628_s17  ;;  %s4559_s26 = smov 12  }
   0xb   :  { %s4653_s8 = sld [smem:[%s5650_s0 + %s4555_s4]]   ;;  %s4560_s1 = smov 13  }
   0xc   :  { %s4658_s14 = sld [smem:[%s5650_s0 + %s4556_s10]]   ;;  %s4561_s7 = smov 14  }
   0xd   :  { %s4663_s19 = sld [smem:[%s5650_s0 + %s4557_s15]]   ;;  %s4562_s15 = smov 15  }
   0xe   :  { %s4668_s24 = sld [smem:[%s5650_s0 + %s4558_s20]]   ;;  %s4563_s22 = smov 16  }
   0xf   :  { %s4673_s30 = sld [smem:[%s5650_s0 + %s4559_s26]]   ;;  %s4564_s28 = smov 17  }
  0x10   :  { %s4678_s6 = sld [smem:[%s5650_s0 + %s4560_s1]]  }
  0x11   :  { %s4683_s12 = sld [smem:[%s5650_s0 + %s4561_s7]]   ;;  %s4565_s7 = smov 18  }
  0x12   :  { %5655 = sst [smem:[#allocation30_spill]] %s4658_s14 }
  0x13   :  { %5656 = sst [smem:[#allocation31_spill]] %s4663_s19 }
  0x14   :  { %5657 = sst [smem:[#allocation32_spill]] %s4668_s24 }
  0x15   :  { %5658 = sst [smem:[#allocation33_spill]] %s4673_s30 }
  0x16   :  { %5659 = sst [smem:[#allocation34_spill]] %s4678_s6 }
  0x17   :  { %5660 = sst [smem:[#allocation35_spill]] %s4683_s12 }
  0x18   :  { %s4688_s20 = sld [smem:[%s5650_s0 + %s4562_s15]]   ;;  %s4566_s15 = smov 19  }
  0x19   :  { %s4693_s27 = sld [smem:[%s5650_s0 + %s4563_s22]]   ;;  %s4567_s22 = smov 20  }
  0x1a   :  { %s4698_s4 = sld [smem:[%s5650_s0 + %s4564_s28]]   ;;  %s4568_s28 = smov 21  }
  0x1b   :  { %s4703_s12 = sld [smem:[%s5650_s0 + %s4565_s7]]   ;;  %s4569_s7 = smov 22  }
  0x1c   :  { %s4708_s6 = sld [smem:[%s5650_s0 + %s4566_s15]]   ;;  %s4570_s15 = smov 23  }
  0x1d   :  { %s4713_s30 = sld [smem:[%s5650_s0 + %s4567_s22]]   ;;  %s4571_s22 = smov 24  }
  0x1e   :  { %5661 = sst [smem:[#allocation36_spill]] %s4688_s20 }
  0x1f   :  { %s4718_s24 = sld [smem:[%s5650_s0 + %s4568_s28]]   ;;  %s4572_s28 = smov 25  }
  0x20   :  { %5662 = sst [smem:[#allocation37_spill]] %s4698_s4 }
  0x21   :  { %s4723_s17 = sld [smem:[%s5650_s0 + %s4569_s7]]   ;;  %s4573_s7 = smov 26  }
  0x22   :  { %5663 = sst [smem:[#allocation38_spill]] %s4708_s6 }
  0x23   :  { %s4728_s6 = sld [smem:[%s5650_s0 + %s4570_s15]]   ;;  %s4574_s15 = smov 27  }
  0x24   :  { %s4733_s13 = sld [smem:[%s5650_s0 + %s4571_s22]]   ;;  %s4575_s22 = smov 28  }
  0x25   :  { %5664 = sst [smem:[#allocation39_spill]] %s4718_s24 }
  0x26   :  { %s4738_s24 = sld [smem:[%s5650_s0 + %s4572_s28]]   ;;  %s4576_s28 = smov 29  }
  0x27   :  { %s4743_s4 = sld [smem:[%s5650_s0 + %s4573_s7]]   ;;  %s4577_s7 = smov 30  }
  0x28   :  { %s4753_s20 = sld [smem:[%s5650_s0 + %s4575_s22]]   ;;  %s4579_s22 = smov 32  }
  0x29   :  { %5665 = sst [smem:[#allocation40_spill]] %s4728_s6 }
  0x2a   :  { %s4748_s6 = sld [smem:[%s5650_s0 + %s4574_s15]]   ;;  %s4578_s15 = smov 31  }
  0x2b   :  { %s4763_s19 = sld [smem:[%s5650_s0 + %s4577_s7]]  }
  0x2c   :  { %5666 = sst [smem:[#allocation41_spill]] %s4738_s24 }
  0x2d   :  { %s4758_s24 = sld [smem:[%s5650_s0 + %s4576_s28]]  }
  0x2e   :  { %5667 = sst [smem:[#allocation42_spill]] %s4753_s20 }
  0x2f   :  { %s4768_s14 = sld [smem:[%s5650_s0 + %s4578_s15]]  }
  0x30   :  { %s4773_s20 = sld [smem:[%s5650_s0 + %s4579_s22]]  }
  0x31   :  { %70 = vsyncpa [#allocation10], 0 }
  0x32   :  { %71 = vsyncpa [#allocation12], 0 }
  0x33   :  { %72 = vsyncpa [#allocation15], 0 }
  0x34   :  { %73 = vsyncpa [#allocation18], 0 }
  0x35   :  { %74 = vsyncpa [#allocation21], 0  ;;  %s126_s28 = sshll.u32 %s4703_s12, 4  ;;  %s4580_s1 = smov [#allocation11]   ;;  %s127_s28 = int_to_ptr.hbm [resolvable:$true] %s126_s28 }
  0x36   :  { %s128_s2 = sshll.u32 %s4580_s1, 4  ;;  %s156_s7 = sshll.u32 %s4723_s17, 4  ;;  %s129_s2 = int_to_ptr.vmem [resolvable:$true] %s128_s2  ;;  %s157_s7 = int_to_ptr.hbm [resolvable:$true] %s156_s7 }
  0x37   :  { %s4314_s10 = sshra.s32 %s127_s28, 4  ;;  %s4318_s0 = scalar_lea.hbm %s4703_s12, 64  ;;  %s4315_s10 = int_to_ptr.hbm [resolvable:$true] %s4314_s10 }
  0x38   :  { %s4316_s11 = scalar_lea.hbm %s4315_s10, 64  ;;  %p4319_p1 = scmp.lt.s32.totalorder %s4315_s10, %s4703_s12 }
  0x39   :  { %p4317_p0 = scmp.ne.s32.totalorder %s4315_s10, %s4316_s11  ;;  %p4320_p2 = scmp.lt.s32.totalorder %s4318_s0, %s4316_s11 }
  0x3b   :  { %p4321_p3 = por %p4320_p2, %p4319_p1 }
  0x3d   :  { %p4322_p4 = pnand %p4321_p3, %p4317_p0 }
  0x3f   :  { %4325 = shalt.err (!%p4322_p4)
}
  0x40   :  { %s4581_s15 = smov 64   ;;  %s4582_s16 = smov 4  }
  0x41   :  { %134 = dma.hbm_to_vmem [thread:$0]  %s127_s28, 1024, %s129_s2, [#allocation12], %s4581_s15, %s4581_s15, %s4582_s16  }
  0x42   :  { %s4583_s18 = smov [#allocation14]   ;;  %s4338_s23 = sshra.s32 %s157_s7, 4  ;;  %s4339_s23 = int_to_ptr.hbm [resolvable:$true] %s4338_s23 }
  0x43   :  { %s158_s22 = sshll.u32 %s4583_s18, 4  ;;  %s4340_s26 = scalar_lea.hbm %s4339_s23, 192  ;;  %s159_s22 = int_to_ptr.vmem [resolvable:$true] %s158_s22 }
  0x44   :  { %p4341_p5 = scmp.ne.s32.totalorder %s4339_s23, %s4340_s26  ;;  %s4342_s12 = scalar_lea.hbm %s4723_s17, 192 }
  0x45   :  { %p4343_p6 = scmp.lt.s32.totalorder %s4339_s23, %s4723_s17  ;;  %p4344_p7 = scmp.lt.s32.totalorder %s4342_s12, %s4340_s26 }
  0x47   :  { %p4345_p8 = por %p4344_p7, %p4343_p6 }
  0x49   :  { %p4346_p9 = pnand %p4345_p8, %p4341_p5 }
  0x4b   :  { %4349 = shalt.err (!%p4346_p9)
}
  0x4c   :  { %s4584_s1 = smov 192   ;;  %s4585_s28 = smov 12  }
  0x4d   :  { %164 = dma.hbm_to_vmem [thread:$0]  %s157_s7, 3072, %s159_s22, [#allocation15], %s4584_s1, %s4584_s1, %s4585_s28  }
  0x4e   :  { %s186_s2 = sshll.u32 %s4743_s4, 4  ;;  %s4586_s10 = smov [#allocation17]   ;;  %s187_s2 = int_to_ptr.hbm [resolvable:$true] %s186_s2 }
  0x4f   :  { %s188_s11 = sshll.u32 %s4586_s10, 4  ;;  %s214_s17 = sshll.u32 %s4758_s24, 4  ;;  %s189_s11 = int_to_ptr.vmem [resolvable:$true] %s188_s11  ;;  %s215_s17 = int_to_ptr.hbm [resolvable:$true] %s214_s17 }
  0x50   :  { %s4362_s0 = sshra.s32 %s187_s2, 4  ;;  %s4366_s23 = scalar_lea.hbm %s4743_s4, 64  ;;  %s4363_s0 = int_to_ptr.hbm [resolvable:$true] %s4362_s0 }
  0x51   :  { %s4364_s18 = scalar_lea.hbm %s4363_s0, 64  ;;  %p4367_p11 = scmp.lt.s32.totalorder %s4363_s0, %s4743_s4 }
  0x52   :  { %p4365_p10 = scmp.ne.s32.totalorder %s4363_s0, %s4364_s18  ;;  %p4368_p12 = scmp.lt.s32.totalorder %s4366_s23, %s4364_s18 }
  0x54   :  { %p4369_p13 = por %p4368_p12, %p4367_p11 }
  0x56   :  { %p4370_p0 = pnand %p4369_p13, %p4365_p10 }
  0x58   :  { %4373 = shalt.err (!%p4370_p0)
}
  0x59   :  { %194 = dma.hbm_to_vmem [thread:$0]  %s187_s2, 1024, %s189_s11, [#allocation18], %s4581_s15, %s4581_s15, %s4582_s16  }
  0x5a   :  { %s4587_s7 = smov [#allocation20]   ;;  %s111_s26 = sshll.u32 %s4693_s27, 4  ;;  %s4795_s26 = int_to_ptr.hbm [resolvable:$true] %s111_s26 }
  0x5b   :  { %s216_s22 = sshll.u32 %s4587_s7, 4  ;;  %s4386_s12 = sshra.s32 %s215_s17, 4  ;;  %s217_s22 = int_to_ptr.vmem [resolvable:$true] %s216_s22  ;;  %s4387_s12 = int_to_ptr.hbm [resolvable:$true] %s4386_s12 }
  0x5c   :  { %s4388_s4 = scalar_lea.hbm %s4387_s12, 64  ;;  %s4390_s10 = scalar_lea.hbm %s4758_s24, 64 }
  0x5d   :  { %p4389_p1 = scmp.ne.s32.totalorder %s4387_s12, %s4388_s4  ;;  %p4391_p2 = scmp.lt.s32.totalorder %s4387_s12, %s4758_s24 }
  0x5e   :  { %p4392_p3 = scmp.lt.s32.totalorder %s4390_s10, %s4388_s4 }
  0x60   :  { %p4393_p4 = por %p4392_p3, %p4391_p2 }
  0x62   :  { %p4394_p5 = pnand %p4393_p4, %p4389_p1 }
  0x64   :  { %4397 = shalt.err (!%p4394_p5)
}
  0x65   :  { %222 = dma.hbm_to_vmem [thread:$0]  %s215_s17, 1024, %s217_s22, [#allocation21], %s4581_s15, %s4581_s15, %s4582_s16  }
  0x66   :  { %s141_s2 = sshll.u32 %s4713_s30, 4  ;;  %s4588_s11 = smov [#allocation9]   ;;  %s4803_s2 = int_to_ptr.hbm [resolvable:$true] %s141_s2 }
  0x67   :  { %s113_s0 = sshll.u32 %s4588_s11, 4  ;;  %s4410_s18 = sshra.s32 %s4795_s26, 4  ;;  %s114_s0 = int_to_ptr.vmem [resolvable:$true] %s113_s0  ;;  %s4411_s18 = int_to_ptr.hbm [resolvable:$true] %s4410_s18 }
  0x68   :  { %s4412_s24 = scalar_lea.hbm %s4411_s18, 64  ;;  %s4414_s23 = scalar_lea.hbm %s4693_s27, 64 }
  0x69   :  { %p4413_p6 = scmp.ne.s32.totalorder %s4411_s18, %s4412_s24  ;;  %p4415_p7 = scmp.lt.s32.totalorder %s4411_s18, %s4693_s27 }
  0x6a   :  { %p4416_p8 = scmp.lt.s32.totalorder %s4414_s23, %s4412_s24 }
  0x6c   :  { %p4417_p9 = por %p4416_p8, %p4415_p7 }
  0x6e   :  { %p4418_p10 = pnand %p4417_p9, %p4413_p6 }
  0x70   :  { %4421 = shalt.err (!%p4418_p10)
}
  0x71   :  { %119 = dma.hbm_to_vmem [thread:$0]  %s4795_s26, 1024, %s114_s0, [#allocation10], %s4581_s15, %s4581_s15, %s4582_s16  }
  0x72   :  { %s4589_s17 = smov [#allocation13]   ;;  %s171_s22 = sshll.u32 %s4733_s13, 4  ;;  %s4813_s22 = int_to_ptr.hbm [resolvable:$true] %s171_s22 }
  0x73   :  { %s143_s7 = sshll.u32 %s4589_s17, 4  ;;  %s4434_s27 = sshra.s32 %s4803_s2, 4  ;;  %s144_s7 = int_to_ptr.vmem [resolvable:$true] %s143_s7  ;;  %s4435_s27 = int_to_ptr.hbm [resolvable:$true] %s4434_s27 }
  0x74   :  { %s4436_s12 = scalar_lea.hbm %s4435_s27, 64  ;;  %s4438_s4 = scalar_lea.hbm %s4713_s30, 64 }
  0x75   :  { %p4437_p11 = scmp.ne.s32.totalorder %s4435_s27, %s4436_s12  ;;  %p4439_p12 = scmp.lt.s32.totalorder %s4435_s27, %s4713_s30 }
  0x76   :  { %p4440_p13 = scmp.lt.s32.totalorder %s4438_s4, %s4436_s12 }
  0x78   :  { %p4441_p0 = por %p4440_p13, %p4439_p12 }
  0x7a   :  { %p4442_p1 = pnand %p4441_p0, %p4437_p11 }
  0x7c   :  { %4445 = shalt.err (!%p4442_p1)
}
  0x7d   :  { %149 = dma.hbm_to_vmem [thread:$0]  %s4803_s2, 1024, %s144_s7, [#allocation12], %s4581_s15, %s4581_s15, %s4582_s16  }
  0x7e   :  { %s199_s26 = sshll.u32 %s4748_s6, 4  ;;  %s4590_s10 = smov [#allocation16]   ;;  %s4823_s26 = int_to_ptr.hbm [resolvable:$true] %s199_s26 }
  0x7f   :  { %s173_s11 = sshll.u32 %s4590_s10, 4  ;;  %s4458_s30 = sshra.s32 %s4813_s22, 4  ;;  %s174_s11 = int_to_ptr.vmem [resolvable:$true] %s173_s11  ;;  %s4459_s30 = int_to_ptr.hbm [resolvable:$true] %s4458_s30 }
  0x80   :  { %s4460_s0 = scalar_lea.hbm %s4459_s30, 192  ;;  %s4462_s18 = scalar_lea.hbm %s4733_s13, 192 }
  0x81   :  { %p4461_p2 = scmp.ne.s32.totalorder %s4459_s30, %s4460_s0  ;;  %p4463_p3 = scmp.lt.s32.totalorder %s4459_s30, %s4733_s13 }
  0x82   :  { %p4464_p4 = scmp.lt.s32.totalorder %s4462_s18, %s4460_s0 }
  0x84   :  { %p4465_p5 = por %p4464_p4, %p4463_p3 }
  0x86   :  { %p4466_p6 = pnand %p4465_p5, %p4461_p2 }
  0x88   :  { %4469 = shalt.err (!%p4466_p6)
}
  0x89   :  { %179 = dma.hbm_to_vmem [thread:$0]  %s4813_s22, 3072, %s174_s11, [#allocation15], %s4584_s1, %s4584_s1, %s4585_s28  }
  0x8a   :  { %s4591_s2 = smov [#allocation19]   ;;  %s227_s23 = sshll.u32 %s4763_s19, 4  ;;  %s228_s23 = int_to_ptr.hbm [resolvable:$true] %s227_s23 }
  0x8b   :  { %s201_s24 = sshll.u32 %s4591_s2, 4  ;;  %s4482_s17 = sshra.s32 %s4823_s26, 4  ;;  %s202_s24 = int_to_ptr.vmem [resolvable:$true] %s201_s24  ;;  %s4483_s17 = int_to_ptr.hbm [resolvable:$true] %s4482_s17 }
  0x8c   :  { %s4484_s13 = scalar_lea.hbm %s4483_s17, 64  ;;  %s4486_s7 = scalar_lea.hbm %s4748_s6, 64 }
  0x8d   :  { %p4485_p7 = scmp.ne.s32.totalorder %s4483_s17, %s4484_s13  ;;  %p4487_p8 = scmp.lt.s32.totalorder %s4483_s17, %s4748_s6 }
  0x8e   :  { %p4488_p9 = scmp.lt.s32.totalorder %s4486_s7, %s4484_s13 }
  0x90   :  { %p4489_p10 = por %p4488_p9, %p4487_p8 }
  0x92   :  { %p4490_p11 = pnand %p4489_p10, %p4485_p7 }
  0x94   :  { %4493 = shalt.err (!%p4490_p11)
}
  0x95   :  { %207 = dma.hbm_to_vmem [thread:$0]  %s4823_s26, 1024, %s202_s24, [#allocation18], %s4581_s15, %s4581_s15, %s4582_s16  }
  0x96   :  { %s4592_s1 = smov [#allocation22]   ;;  %s4506_s22 = sshra.s32 %s228_s23, 4  ;;  %s4507_s22 = int_to_ptr.hbm [resolvable:$true] %s4506_s22 }
  0x97   :  { %s229_s28 = sshll.u32 %s4592_s1, 4  ;;  %s4508_s27 = scalar_lea.hbm %s4507_s22, 64  ;;  %s230_s28 = int_to_ptr.vmem [resolvable:$true] %s229_s28 }
  0x98   :  { %p4509_p12 = scmp.ne.s32.totalorder %s4507_s22, %s4508_s27  ;;  %s4510_s6 = scalar_lea.hbm %s4763_s19, 64 }
  0x99   :  { %p4511_p13 = scmp.lt.s32.totalorder %s4507_s22, %s4763_s19  ;;  %p4512_p0 = scmp.lt.s32.totalorder %s4510_s6, %s4508_s27 }
  0x9b   :  { %p4513_p1 = por %p4512_p0, %p4511_p13 }
  0x9d   :  { %p4514_p2 = pnand %p4513_p1, %p4509_p12 }
  0x9f   :  { %4517 = shalt.err (!%p4514_p2)
}
  0xa0   :  { %235 = dma.hbm_to_vmem [thread:$0]  %s228_s23, 1024, %s230_s28, [#allocation21], %s4581_s15, %s4581_s15, %s4582_s16  }
  0xa1   :  { %4534 = dma.done.wait [#allocation10], 1024  }
  0xa2   :  { %4535 = vsyncadd [#allocation10], 4294966272 }
  0xa3   :  { %4536 = dma.done.wait [#allocation12], 2048  }
  0xa4   :  { %4537 = vsyncadd [#allocation12], 4294965248 }
  0xa5   :  { %4538 = dma.done.wait [#allocation15], 6144  }
  0xa6   :  { %4539 = vsyncadd [#allocation15], 4294961152 }
  0xa7   :  { %4540 = dma.done.wait [#allocation18], 2048  }
  0xa8   :  { %4541 = vsyncadd [#allocation18], 4294965248 }
  0xa9   :  { %4542 = dma.done.wait [#allocation21], 2048  }
  0xaa   :  { %4543 = vsyncadd [#allocation21], 4294965248  ;;  %v4846_v0 = vld [vmem:[%s4633_s21 + $0x8] sm:$0xff]  ;;  %v4849_v1 = vld [vmem:[%s4633_s21 + $0x10] sm:$0xff]  ;;  %vm330_vm0 = vcmask 7168   ;;  %v4593_v18 = vmov 0.0  }
  0xab   :  { %v4852_v2 = vld [vmem:[%s4643_s29 + $0x8] sm:$0xff]  ;;  %v4855_v3 = vld [vmem:[%s4643_s29 + $0x10] sm:$0xff]  ;;  %v4859_v5 = vld [vmem:[%s4633_s21] sm:$0xff]  ;;  %s4594_s21 = smov 1   ;;  %vm339_vm4 = vcmask 195584   ;;  %vm654_vm5 = vcmask 130048  }
  0xac   :  { %v289_v4 = vsub.f32 1.0, %v4852_v2  ;;  %v4862_v6 = vld [vmem:[%s4643_s29] sm:$0xff]  ;;  %v290_v7 = vsub.f32 1.0, %v4855_v3  ;;  %v335_v36 = vld [vmem:[%s4613_s5 + $0x8] sm:$0xff]  ;;  %v336_v52 = vld [vmem:[%s4613_s5 + $0x10] sm:$0xff]  ;;  %s4595_s29 = smov 127  }
  0xad   :  { %v288_v8 = vsub.f32 1.0, %v4862_v6  ;;  %v334_v27 = vld [vmem:[%s4613_s5] sm:$0xff]  ;;  %v344_v40 = vsel %vm339_vm4, %v335_v36, 0  ;;  %v347_v61 = vsel %vm339_vm4, %v336_v52, 0  ;;  %vm1085_vm6 = vcmask 15360   ;;  %s5102_s19 = smov 0  }
  0xae   :  { %v292_v9 = vmul.f32 %v289_v4, %v4846_v0  ;;  %v293_v10 = vmul.f32 %v290_v7, %v4849_v1  ;;  %v338_v28 = vld [vmem:[%s4613_s5 + $0x20] sm:$0xff]  ;;  %v341_v30 = vsel %vm339_vm4, %v334_v27, 0  ;;  %v4913_v48 = vand.u32 4294901760, %v344_v40 }
  0xaf   :  { %v291_v11 = vmul.f32 %v288_v8, %v4859_v5  ;;  %v353_v31 = vsel %vm339_vm4, %v338_v28, 0  ;;  %v4899_v33 = vand.u32 4294901760, %v341_v30  ;;  %vm1088_vm7 = vcmask 23552  }
  0xb0   :  { %v295_v12 = vsub.f32 1.0, %v292_v9  ;;  %v296_v13 = vsub.f32 1.0, %v293_v10  ;;  %v4901_v34 = vand.u32 4294901760, %v353_v31  ;;  %v4925_v58 = vsub.f32 %v344_v40, %v4913_v48 }
  0xb1   :  { %v294_v14 = vsub.f32 1.0, %v291_v11  ;;  %v4905_v38 = vsub.f32 %v341_v30, %v4899_v33  ;;  %vm1091_vm8 = vcmask 31744   ;;  %vm1094_vm9 = vcmask 39936  }
  0xb2   :  { %v4875_v15 = vadd.f32 1e-20, %v295_v12  ;;  %v4877_v16 = vadd.f32 1e-20, %v296_v13  ;;  %v4908_v39 = vsub.f32 %v353_v31, %v4901_v34  ;;  %v384_v13 = vand.u32 4294901760, %v4925_v58 }
  0xb3   :  { %v4882_v17 = vadd.f32 1e-20, %v294_v14  ;;  %v376_v44 = vand.u32 4294901760, %v4905_v38  ;;  %v4930_v14 = vand.u32 4294901760, %v347_v61  ;;  %vm1097_vm10 = vcmask 64512  }
  0xb4   :  { %vm313_vm1 = vcmp.lt.f32.partialorder %v4875_v15, 0.0  ;;  %976 = vst.msk [vmem:[#allocation2 + $0x8] sm:$0xff] %vm330_vm0, %v4875_v15  ;;  %vm314_vm2 = vcmp.lt.f32.partialorder %v4877_v16, 0.0  ;;  %v302_v23 = vand.u32 2147483647, %v4877_v16  ;;  %v408_v47 = vand.u32 4294901760, %v4908_v39 }
  0xb5   :  { %v316_v19 = vsel %vm313_vm1, 1.0, %v4593_v18  ;;  %977 = vst.msk [vmem:[#allocation2 + $0x10] sm:$0xff] %vm330_vm0, %v4877_v16  ;;  %v317_v20 = vsel %vm314_vm2, 1.0, %v4593_v18  ;;  %vm312_vm3 = vcmp.lt.f32.partialorder %v4882_v17, 0.0  ;;  %v301_v24 = vand.u32 2147483647, %v4875_v15 }
  0xb6   :  { %975 = vst.msk [vmem:[#allocation2] sm:$0xff] %vm330_vm0, %v4882_v17  ;;  %v4196_v21 = vpack.i.bf16 %v316_v19, %v317_v20  ;;  %v315_v22 = vsel %vm312_vm3, 1.0, %v4593_v18  ;;  %v305_v25 = vmax.f32 %v302_v23, 1e-30  ;;  %v300_v29 = vand.u32 2147483647, %v4882_v17 }
  0xb7   :  { %v304_v26 = vmax.f32 %v301_v24, 1e-30  ;;  %v377_v55 = vsub.f32 %v4905_v38, %v376_v44  ;;  %v409_v57 = vsub.f32 %v4908_v39, %v408_v47  ;;  %v385_v24 = vsub.f32 %v4925_v58, %v384_v13 }
  0xb8   :  { %4197 = vrot.lane.b32.xlu0 %v4196_v21, %s4594_s21  ;;  %4205 = vlog2.f32 %v305_v25  ;;  %v303_v32 = vmax.f32 %v300_v29, 1e-30  ;;  %v337_v21 = vld [vmem:[%s4613_s5 + $0x18] sm:$0xff]  ;;  %v391_v25 = vsub.f32 %v347_v61, %v4930_v14 }
  0xb9   :  { %4207 = vlog2.f32 %v304_v26  ;;  %v378_v63 = vand.u32 4294901760, %v377_v55  ;;  %v410_v12 = vand.u32 4294901760, %v409_v57  ;;  %v350_v27 = vsel %vm339_vm4, %v337_v21, 0 }
  0xba   :  { %4209 = vlog2.f32 %v303_v32  ;;  %v386_v30 = vand.u32 4294901760, %v385_v24  ;;  %v392_v31 = vand.u32 4294901760, %v391_v25  ;;  %v398_v32 = vand.u32 4294901760, %v350_v27 }
  0xbc   :  { %v393_v36 = vsub.f32 %v391_v25, %v392_v31 }
  0xbe   :  { %v4206_v35 = vpop.eup %4205  ;;  %v394_v40 = vand.u32 4294901760, %v393_v36 }
  0xbf   :  { %v4208_v37 = vpop.eup %4207  ;;  %v311_v41 = vmul.f32 0.6931472, %v4206_v35 }
  0xc0   :  { %321 = vrot.lane.b32.xlu0 %v315_v22, %s4594_s21  ;;  %v309_v42 = vmul.f32 0.6931472, %v4208_v37  ;;  %v4210_v49 = vpop.eup %4209  ;;  %v399_v37 = vsub.f32 %v350_v27, %v398_v32 }
  0xc1   :  { %v307_v56 = vmul.f32 0.6931472, %v4210_v49 }
 0x12a   :  { %v4198_v43 = vpop.permute.xlu0 %4197 }
 0x12b   :  { %v4200_v45 = vunpack.i.h.bf16 %v4198_v43  ;;  %v4199_v46 = vunpack.i.l.bf16 %v4198_v43 }
 0x12d   :  { %v332_v50 = vsel %vm330_vm0, %v309_v42, %v4200_v45  ;;  %v333_v51 = vsel %vm330_vm0, %v311_v41, %v4199_v46  ;;  %v400_v41 = vand.u32 4294901760, %v399_v37 }
 0x12e   :  { %v368_v53 = vand.u32 4294901760, %v333_v51  ;;  %v370_v54 = vand.u32 4294901760, %v332_v50 }
 0x12f   :  { %v401_v42 = vsub.f32 %v399_v37, %v400_v41 }
 0x130   :  { %369 = vmatpush.msra.mxu0 %v368_v53  ;;  %4122 = vmatpush.msra.mxu2 %v368_v53  ;;  %v429_v59 = vsub.f32 %v333_v51, %v368_v53  ;;  %v435_v60 = vsub.f32 %v332_v50, %v370_v54 }
 0x131   :  { %v402_v43 = vand.u32 4294901760, %v401_v42 }
 0x132   :  { %371 = vmatpush.msra.mxu0 %v370_v54  ;;  %4123 = vmatpush.msra.mxu2 %v370_v54  ;;  %v322_v62 = vpop.permute.xlu0 %321  ;;  %v430_v9 = vand.u32 4294901760, %v429_v59  ;;  %v436_v10 = vand.u32 4294901760, %v435_v60 }
 0x133   :  { %v331_v11 = vsel %vm330_vm0, %v307_v56, %v322_v62  ;;  %v652_v62 = vld [vmem:[%s4618_s9 + $0x8] sm:$0xff] }
 0x134   :  { %v372_v18 = vand.u32 4294901760, %v331_v11  ;;  %v431_v19 = vsub.f32 %v429_v59, %v430_v9  ;;  %v437_v20 = vsub.f32 %v435_v60, %v436_v10 }
 0x136   :  { %v441_v22 = vsub.f32 %v331_v11, %v372_v18  ;;  %373 = vmatpush.msra.mxu0 %v372_v18  ;;  %4124 = vmatpush.msra.mxu2 %v372_v18  ;;  %v432_v23 = vand.u32 4294901760, %v431_v19  ;;  %v438_v28 = vand.u32 4294901760, %v437_v20 }
 0x137   :  { %379 = vmatmul.f32.vlgmr.msra.gmra.mxu0 %v378_v63  ;;  %411 = vmatmul.f32.vlgmr.msra.gmra.mxu2 %v410_v12 }
 0x138   :  { %482 = vmatpush.msrb.mxu2 %v429_v59  ;;  %581 = vmatpush.msrb.mxu0 %v430_v9  ;;  %v442_v26 = vand.u32 4294901760, %v441_v22 }
 0x139   :  { %433 = vmatpush.msra.mxu1 %v432_v23  ;;  %4125 = vmatpush.msra.mxu3 %v432_v23 }
 0x13a   :  { %485 = vmatpush.msrb.mxu2 %v435_v60  ;;  %585 = vmatpush.msrb.mxu0 %v436_v10  ;;  %v443_v29 = vsub.f32 %v441_v22, %v442_v26 }
 0x13b   :  { %439 = vmatpush.msra.mxu1 %v438_v28  ;;  %4126 = vmatpush.msra.mxu3 %v438_v28 }
 0x13c   :  { %488 = vmatpush.msrb.mxu2 %v441_v22  ;;  %589 = vmatpush.msrb.mxu0 %v442_v26  ;;  %v444_v35 = vand.u32 4294901760, %v443_v29  ;;  %v653_v26 = vld [vmem:[%s4618_s9 + $0x10] sm:$0xff] }
 0x13e   :  { %445 = vmatpush.msra.mxu1 %v444_v35  ;;  %4127 = vmatpush.msra.mxu3 %v444_v35 }
 0x13f   :  { %387 = vmatmul.f32.gmra.mxu0 %v386_v30  ;;  %447 = vmatmul.f32.vlgmr.msra.gmra.mxu1 %v4899_v33 }
 0x140   :  { %463 = vmatmul.f32.vlgmr.msra.gmra.mxu3 %v4901_v34  ;;  %491 = vmatmul.f32.vlgmr.msrb.gmra.mxu2 %v4905_v38 }
 0x141   :  { %529 = vmatpush.msrb.mxu3 %v368_v53  ;;  %625 = vmatpush.msrb.mxu1 %v368_v53  ;;  %v651_v53 = vld [vmem:[%s4618_s9] sm:$0xff] }
 0x142   :  { %v656_v57 = vsel %vm654_vm5, %v651_v53, 0 }
 0x143   :  { %531 = vmatpush.msrb.mxu3 %v370_v54  ;;  %627 = vmatpush.msrb.mxu1 %v370_v54  ;;  %v682_v60 = vand.u32 4294901760, %v656_v57 }
 0x145   :  { %533 = vmatpush.msrb.mxu3 %v372_v18  ;;  %629 = vmatpush.msrb.mxu1 %v372_v18  ;;  %v4964_v11 = vsub.f32 %v656_v57, %v682_v60 }
 0x147   :  { %395 = vmatmul.f32.gmra.mxu0 %v394_v40  ;;  %451 = vmatmul.f32.gmra.mxu1 %v4913_v48  ;;  %v684_v21 = vand.u32 4294901760, %v4964_v11 }
 0x148   :  { %496 = vmatmul.f32.gmra.mxu2 %v4925_v58  ;;  %537 = vmatmul.f32.vlgmr.msrb.gmra.mxu3 %v376_v44 }
 0x149   :  { %v685_v28 = vsub.f32 %v4964_v11, %v684_v21 }
 0x14f   :  { %403 = vmatmul.f32.gmra.mxu0 %v402_v43  ;;  %455 = vmatmul.f32.gmra.mxu1 %v4930_v14 }
 0x150   :  { %501 = vmatmul.f32.gmra.mxu2 %v391_v25  ;;  %543 = vmatmul.f32.gmra.mxu3 %v384_v13 }
 0x157   :  { %459 = vmatmul.f32.gmra.mxu1 %v398_v32  ;;  %591 = vmatmul.f32.vlgmr.msrb.gmra.mxu0 %v4899_v33 }
 0x158   :  { %506 = vmatmul.f32.gmra.mxu2 %v399_v37  ;;  %549 = vmatmul.f32.gmra.mxu3 %v392_v31  ;;  %v686_v37 = vand.u32 4294901760, %v685_v28 }
 0x15f   :  { %595 = vmatmul.f32.gmra.mxu0 %v4913_v48  ;;  %631 = vmatmul.f32.vlgmr.msrb.gmra.mxu1 %v4899_v33 }
 0x160   :  { %511 = vmatmul.f32.gmra.mxu2 %v4908_v39  ;;  %555 = vmatmul.f32.gmra.mxu3 %v400_v41 }
 0x167   :  { %599 = vmatmul.f32.gmra.mxu0 %v4930_v14  ;;  %635 = vmatmul.f32.gmra.mxu1 %v4913_v48 }
 0x168   :  { %561 = vmatmul.f32.gmra.mxu3 %v408_v47 }
 0x16f   :  { %603 = vmatmul.f32.gmra.mxu0 %v398_v32  ;;  %639 = vmatmul.f32.gmra.mxu1 %v4930_v14  ;;  %v659_v14 = vsel %vm654_vm5, %v652_v62, 0 }
 0x170   :  { %v690_v22 = vand.u32 4294901760, %v659_v14 }
 0x172   :  { %v691_v29 = vsub.f32 %v659_v14, %v690_v22 }
 0x174   :  { %v692_v40 = vand.u32 4294901760, %v691_v29 }
 0x177   :  { %607 = vmatmul.f32.gmra.mxu0 %v4901_v34  ;;  %643 = vmatmul.f32.gmra.mxu1 %v398_v32  ;;  %v662_v32 = vsel %vm654_vm5, %v653_v26, 0 }
 0x17f   :  { %647 = vmatmul.f32.gmra.mxu1 %v4901_v34 }
 0x1b4   :  { %v380_v33 = vpop.f32.mrf.mxu0 }
 0x1ba   :  { %v412_v45 = vpop.f32.mrf.mxu2 }
 0x1bc   :  { %v388_v38 = vpop.f32.mrf.mxu0  ;;  %v448_v44 = vpop.f32.mrf.mxu1 }
 0x1bd   :  { %v449_v34 = vadd.f32 %v448_v44, %v380_v33  ;;  %v698_v33 = vand.u32 4294901760, %v662_v32 }
 0x1c3   :  { %v464_v46 = vpop.f32.mrf.mxu3  ;;  %v492_v52 = vpop.f32.mrf.mxu2 }
 0x1c4   :  { %v4955_v49 = vadd.f32 %v464_v46, %v412_v45  ;;  %v396_v48 = vpop.f32.mrf.mxu0  ;;  %v452_v50 = vpop.f32.mrf.mxu1  ;;  %v493_v59 = vadd.f32 %v492_v52, %v449_v34  ;;  %v693_v45 = vsub.f32 %v691_v29, %v692_v40 }
 0x1c5   :  { %v453_v12 = vadd.f32 %v452_v50, %v388_v38  ;;  %v699_v50 = vsub.f32 %v662_v32, %v698_v33 }
 0x1cb   :  { %v538_v54 = vpop.f32.mrf.mxu3  ;;  %v497_v9 = vpop.f32.mrf.mxu2 }
 0x1cc   :  { %v404_v39 = vpop.f32.mrf.mxu0  ;;  %v456_v47 = vpop.f32.mrf.mxu1  ;;  %v539_v61 = vadd.f32 %v538_v54, %v493_v59  ;;  %v498_v19 = vadd.f32 %v497_v9, %v453_v12  ;;  %v694_v54 = vand.u32 4294901760, %v693_v45  ;;  %v4985_v59 = vld [vmem:[%s4648_s3 + $0x8] sm:$0xff] }
 0x1cd   :  { %v4957_v51 = vadd.f32 %v456_v47, %v396_v48  ;;  %v968_v62 = vsub.f32 1.0, %v4985_v59 }
 0x1d3   :  { %v544_v18 = vpop.f32.mrf.mxu3 }
 0x1d4   :  { %v460_v55 = vpop.f32.mrf.mxu1  ;;  %v592_v58 = vpop.f32.mrf.mxu0  ;;  %v545_v23 = vadd.f32 %v544_v18, %v498_v19 }
 0x1d5   :  { %v4960_v56 = vadd.f32 %v460_v55, %v404_v39  ;;  %v593_v63 = vadd.f32 %v592_v58, %v539_v61  ;;  %v700_v55 = vand.u32 4294901760, %v699_v50  ;;  %v4988_v61 = vld [vmem:[%s4653_s8 + $0x8] sm:$0xff] }
 0x1d7   :  { %v701_v57 = vsub.f32 %v699_v50, %v700_v55 }
 0x1d9   :  { %v702_v58 = vand.u32 4294901760, %v701_v57 }
 0x1db   :  { %v550_v9 = vpop.f32.mrf.mxu3 }
 0x1dc   :  { %v632_v10 = vpop.f32.mrf.mxu1  ;;  %v596_v20 = vpop.f32.mrf.mxu0 }
 0x1dd   :  { %v4966_v13 = vadd.f32 %v632_v10, %v593_v63  ;;  %v597_v25 = vadd.f32 %v596_v20, %v545_v23  ;;  %v4992_v63 = vmul.f32 %v968_v62, %v4988_v61 }
 0x1df   :  { %v680_v24 = vand.u32 4294901760, %v4966_v13  ;;  %989 = vst.msk [vmem:[#allocation7 + $0x8] sm:$0xff] %vm330_vm0, %v4992_v63 }
 0x1e1   :  { %v728_v31 = vsub.f32 %v4966_v13, %v680_v24 }
 0x1e3   :  { %v729_v42 = vand.u32 4294901760, %v728_v31  ;;  %v556_v14 = vpop.f32.mrf.mxu3 }
 0x1e4   :  { %v636_v27 = vpop.f32.mrf.mxu1 }
 0x1e5   :  { %v4975_v30 = vadd.f32 %v636_v27, %v597_v25  ;;  %v730_v48 = vsub.f32 %v728_v31, %v729_v42 }
 0x1e7   :  { %v678_v35 = vand.u32 4294901760, %v4975_v30  ;;  %v886_v36 = vmul.f32 0.5, %v4975_v30  ;;  %v731_v53 = vand.u32 4294901760, %v730_v48  ;;  %v895_v10 = vmul.f32 1.442695, %v4975_v30 }
 0x1e9   :  { %679 = vmatpush.msra.mxu2 %v678_v35  ;;  %869 = vmatpush.msra.mxu1 %v678_v35  ;;  %v722_v41 = vsub.f32 %v4975_v30, %v678_v35  ;;  %v888_v43 = vfloor.f32 %v886_v36  ;;  %4211 = vpow2.f32 %v895_v10 }
 0x1eb   :  { %681 = vmatpush.msra.mxu2 %v680_v24  ;;  %871 = vmatpush.msra.mxu1 %v680_v24  ;;  %v723_v38 = vand.u32 4294901760, %v722_v41  ;;  %v890_v44 = vmul.f32 2.0, %v888_v43  ;;  %v562_v25 = vpop.f32.mrf.mxu3 }
 0x1ec   :  { %873 = vmatmul.f32.vlgmr.msra.gmra.mxu1 %v682_v60  ;;  %687 = vmatmul.f32.vlgmr.msra.gmra.mxu2 %v686_v37  ;;  %v640_v27 = vpop.f32.mrf.mxu1 }
 0x1ed   :  { %762 = vmatpush.msrb.mxu2 %v722_v41  ;;  %836 = vmatpush.msra.mxu0 %v723_v38  ;;  %v724_v46 = vsub.f32 %v722_v41, %v723_v38  ;;  %v892_v39 = vsub.f32 %v4975_v30, %v890_v44 }
 0x1ef   :  { %765 = vmatpush.msrb.mxu2 %v728_v31  ;;  %840 = vmatpush.msra.mxu0 %v729_v42  ;;  %v725_v47 = vand.u32 4294901760, %v724_v46  ;;  %v898_v52 = vmul.f32 2.0, %v892_v39  ;;  %v4212_v18 = vpop.eup %4211 }
 0x1f0   :  { %842 = vmatmul.f32.vlgmr.msra.gmra.mxu0 %v682_v60 }
 0x1f1   :  { %726 = vmatpush.msra.mxu3 %v725_v47  ;;  %v900_v34 = vsub.f32 1.0, %v898_v52 }
 0x1f3   :  { %732 = vmatpush.msra.mxu3 %v731_v53  ;;  %905 = vrot.lane.b32.xlu0 %v900_v34, %s4595_s29 }
 0x1f4   :  { %734 = vmatmul.f32.vlgmr.msra.gmra.mxu3 %v682_v60  ;;  %695 = vmatmul.f32.gmra.mxu2 %v694_v54  ;;  %v502_v60 = vpop.f32.mrf.mxu2  ;;  %v644_v31 = vpop.f32.mrf.mxu1 }
 0x1f5   :  { %797 = vmatpush.msrb.mxu3 %v678_v35  ;;  %877 = vmatmul.f32.gmra.mxu1 %v690_v22  ;;  %v503_v38 = vadd.f32 %v502_v60, %v4957_v51 }
 0x1f7   :  { %799 = vmatpush.msrb.mxu3 %v680_v24  ;;  %v600_v24 = vpop.f32.mrf.mxu0  ;;  %v551_v46 = vadd.f32 %v550_v9, %v503_v38 }
 0x1f8   :  { %846 = vmatmul.f32.gmra.mxu0 %v690_v22 }
 0x1f9   :  { %v601_v39 = vadd.f32 %v600_v24, %v551_v46 }
 0x1fb   :  { %v641_v52 = vadd.f32 %v640_v27, %v601_v39 }
 0x1fc   :  { %738 = vmatmul.f32.gmra.mxu3 %v690_v22  ;;  %703 = vmatmul.f32.gmra.mxu2 %v702_v58  ;;  %v507_v12 = vpop.f32.mrf.mxu2  ;;  %v648_v37 = vpop.f32.mrf.mxu1 }
 0x1fd   :  { %881 = vmatmul.f32.gmra.mxu1 %v698_v33  ;;  %v508_v34 = vadd.f32 %v507_v12, %v4960_v56 }
 0x1ff   :  { %v604_v30 = vpop.f32.mrf.mxu0 }
 0x200   :  { %850 = vmatmul.f32.gmra.mxu0 %v698_v33 }
 0x204   :  { %742 = vmatmul.f32.gmra.mxu3 %v698_v33  ;;  %768 = vmatmul.f32.vlgmr.msrb.gmra.mxu2 %v4964_v11  ;;  %v512_v22 = vpop.f32.mrf.mxu2 }
 0x207   :  { %v608_v36 = vpop.f32.mrf.mxu0 }
 0x20c   :  { %803 = vmatmul.f32.vlgmr.msrb.gmra.mxu3 %v684_v21  ;;  %773 = vmatmul.f32.gmra.mxu2 %v691_v29 }
 0x214   :  { %809 = vmatmul.f32.gmra.mxu3 %v692_v40  ;;  %778 = vmatmul.f32.gmra.mxu2 %v699_v50 }
 0x21c   :  { %815 = vmatmul.f32.gmra.mxu3 %v700_v55 }
 0x265   :  { %v906_v19 = vpop.permute.xlu0 %905 }
 0x266   :  { %v910_v20 = vmul.f32 %v4212_v18, %v906_v19  ;;  %v557_v18 = vadd.f32 %v556_v14, %v508_v34 }
 0x268   :  { %v5001_v23 = vmul.f32 %v910_v20, %v4985_v59  ;;  %v605_v9 = vadd.f32 %v604_v30, %v557_v18  ;;  %v4596_v18 = vmov 0  }
 0x269   :  { %v874_v33 = vpop.f32.mrf.mxu1  ;;  %4202 = vset.pattern.permute.xlu2 %v4596_v18  ;;  %4201 = vset.pattern.permute.xlu1 %v4596_v18 }
 0x26a   :  { %985 = vst.msk [vmem:[#allocation5 + $0x8] sm:$0xff] %vm330_vm0, %v5001_v23  ;;  %v972_v11 = vsub.f32 1.0, %v5001_v23  ;;  %v645_v24 = vadd.f32 %v644_v31, %v605_v9  ;;  %4203 = vset.pattern.permute.xlu0 %v4596_v18 }
 0x26b   :  { %1003 = vperm.xlu0 %4203, %v4877_v16   ;;  %v5043_v16 = vld [vmem:[%s4638_s25 + $0x10] sm:$0xff] }
 0x26c   :  { %v5007_v21 = vsub.f32 %v972_v11, %v4992_v63 }
 0x26d   :  { %v843_v42 = vpop.f32.mrf.mxu0 }
 0x26e   :  { %987 = vst.msk [vmem:[#allocation6 + $0x8] sm:$0xff] %vm330_vm0, %v5007_v21 }
 0x26f   :  { %v688_v26 = vpop.f32.mrf.mxu2 }
 0x272   :  { %v878_v10 = vpop.f32.mrf.mxu1 }
 0x275   :  { %v847_v55 = vpop.f32.mrf.mxu0 }
 0x277   :  { %v735_v28 = vpop.f32.mrf.mxu3  ;;  %v696_v29 = vpop.f32.mrf.mxu2 }
 0x278   :  { %v736_v43 = vadd.f32 %v735_v28, %v688_v26 }
 0x27a   :  { %v882_v38 = vpop.f32.mrf.mxu1 }
 0x27d   :  { %v851_v14 = vpop.f32.mrf.mxu0 }
 0x27f   :  { %v739_v32 = vpop.f32.mrf.mxu3  ;;  %v704_v35 = vpop.f32.mrf.mxu2 }
 0x280   :  { %v740_v53 = vadd.f32 %v739_v32, %v696_v29  ;;  %v513_v29 = vadd.f32 %v512_v22, %v4955_v49 }
 0x287   :  { %v743_v40 = vpop.f32.mrf.mxu3  ;;  %v769_v41 = vpop.f32.mrf.mxu2 }
 0x288   :  { %v770_v44 = vadd.f32 %v769_v41, %v736_v43  ;;  %v744_v26 = vadd.f32 %v743_v40, %v704_v35 }
 0x28f   :  { %v804_v45 = vpop.f32.mrf.mxu3  ;;  %v774_v50 = vpop.f32.mrf.mxu2 }
 0x290   :  { %v805_v48 = vadd.f32 %v804_v45, %v770_v44  ;;  %v775_v58 = vadd.f32 %v774_v50, %v740_v53  ;;  %v885_v50 = vmul.f32 0.5, %v4966_v13 }
 0x292   :  { %v844_v47 = vadd.f32 %v843_v42, %v805_v48  ;;  %v563_v42 = vadd.f32 %v562_v25, %v513_v29  ;;  %v887_v53 = vfloor.f32 %v885_v50 }
 0x294   :  { %v875_v54 = vadd.f32 %v874_v33, %v844_v47  ;;  %v609_v44 = vadd.f32 %v608_v36, %v563_v42  ;;  %v5053_v42 = vld [vmem:[%s4638_s25] sm:$0xff] }
 0x296   :  { %v5013_v57 = vsub.f32 %v875_v54, %v641_v52  ;;  %v649_v45 = vadd.f32 %v648_v37, %v609_v44  ;;  %v889_v37 = vmul.f32 2.0, %v887_v53 }
 0x297   :  { %v810_v62 = vpop.f32.mrf.mxu3  ;;  %v779_v11 = vpop.f32.mrf.mxu2 }
 0x298   :  { %v811_v51 = vadd.f32 %v810_v62, %v775_v58  ;;  %v914_v60 = vmul.f32 0.5, %v5013_v57  ;;  %v780_v12 = vadd.f32 %v779_v11, %v744_v26  ;;  %v891_v58 = vsub.f32 %v4966_v13, %v889_v37 }
 0x299   :  { %v893_v11 = vmul.f32 1.442695, %v4966_v13 }
 0x29a   :  { %v848_v19 = vadd.f32 %v847_v55, %v811_v51  ;;  %v917_v20 = vfloor.f32 %v914_v60  ;;  %v897_v62 = vmul.f32 2.0, %v891_v58  ;;  %v5032_v51 = vld [vmem:[%s4648_s3] sm:$0xff]  ;;  %s4597_s3 = smov 2  }
 0x29b   :  { %v5035_v60 = vld [vmem:[%s4653_s8] sm:$0xff]  ;;  %v967_v9 = vsub.f32 1.0, %v5032_v51  ;;  %s5669_s8 = sld [smem:[#allocation31_spill]] }
 0x29c   :  { %v879_v27 = vadd.f32 %v878_v10, %v848_v19  ;;  %v920_v28 = vmul.f32 2.0, %v917_v20  ;;  %v899_v10 = vsub.f32 1.0, %v897_v62 }
 0x29d   :  { %v969_v19 = vmul.f32 %v967_v9, %v5035_v60 }
 0x29e   :  { %v5017_v56 = vsub.f32 %v879_v27, %v645_v24  ;;  %v923_v32 = vsub.f32 %v5013_v57, %v920_v28  ;;  %v958_v28 = vmul.f32 %v290_v7, %v5043_v16 }
 0x29f   :  { %v816_v41 = vpop.f32.mrf.mxu3  ;;  %988 = vst.msk [vmem:[#allocation7] sm:$0xff] %vm330_vm0, %v969_v19 }
 0x2a0   :  { %v915_v43 = vmul.f32 0.5, %v5017_v56  ;;  %v817_v30 = vadd.f32 %v816_v41, %v780_v12  ;;  %v932_v33 = vmul.f32 2.0, %v923_v32 }
 0x2a1   :  { %v4204_v9 = vld [vmem:[%s5669_s8] ss:$0 sm:$0xff] }
 0x2a2   :  { %v852_v31 = vadd.f32 %v851_v14, %v817_v30  ;;  %v935_v35 = vsub.f32 1.0, %v932_v33  ;;  %v918_v40 = vfloor.f32 %v915_v43 }
 0x2a4   :  { %v883_v46 = vadd.f32 %v882_v38, %v852_v31  ;;  %941 = vrot.lane.b32.xlu1 %v935_v35, %s4595_s29  ;;  %v921_v49 = vmul.f32 2.0, %v918_v40 }
 0x2a6   :  { %v913_v22 = vsub.f32 %v883_v46, %v649_v45  ;;  %v924_v48 = vsub.f32 %v5017_v56, %v921_v49  ;;  %v5069_v46 = vld [vmem:[%s4638_s25 + $0x8] sm:$0xff]  ;;  %s5668_s25 = sld [smem:[#allocation30_spill]] }
 0x2a8   :  { %v933_v25 = vmul.f32 2.0, %v924_v48  ;;  %v916_v39 = vmul.f32 0.5, %v913_v22  ;;  %v930_v20 = vmul.f32 1.442695, %v913_v22 }
 0x2aa   :  { %v936_v47 = vsub.f32 1.0, %v933_v25  ;;  %v919_v52 = vfloor.f32 %v916_v39  ;;  %4213 = vpow2.f32 %v930_v20 }
 0x2ab   :  { %4215 = vpow2.f32 %v893_v11 }
 0x2ac   :  { %943 = vrot.lane.b32.xlu1 %v936_v47, %s4595_s29  ;;  %v922_v36 = vmul.f32 2.0, %v919_v52  ;;  %v990_v53 = vld [vmem:[%s5668_s25] sm:$0x7] }
 0x2ae   :  { %v925_v54 = vsub.f32 %v913_v22, %v922_v36  ;;  %v957_v22 = vmul.f32 %v289_v4, %v5069_v46  ;;  %v1006_v36 = vperm.slane %v990_v53, 0 }
 0x2b0   :  { %v934_v55 = vmul.f32 2.0, %v925_v54  ;;  %v1025_v54 = vperm.slane %v990_v53, 1 }
 0x2b2   :  { %v937_v34 = vsub.f32 1.0, %v934_v55  ;;  %v1047_v55 = vperm.slane %v990_v53, 2 }
 0x2b4   :  { %945 = vrot.lane.b32.xlu2 %v937_v34, %s4595_s29  ;;  %993 = vperm.xlu1 %4201, %v4882_v17   ;;  %v4214_v17 = vpop.eup %4213 }
 0x2b5   :  { %v4216_v29 = vpop.eup %4215 }
 0x2bc   :  { %903 = vrot.lane.b32.xlu2 %v899_v10, %s4595_s29 }
 0x2c4   :  { %998 = vperm.xlu2 %4202, %v4875_v15   ;;  %v926_v15 = vmul.f32 1.442695, %v5013_v57  ;;  %v928_v57 = vmul.f32 1.442695, %v5017_v56  ;;  %v956_v56 = vmul.f32 %v288_v8, %v5053_v42 }
 0x2c6   :  { %4217 = vpow2.f32 %v926_v15 }
 0x2c7   :  { %4219 = vpow2.f32 %v928_v57 }
 0x2cc   :  { %v4218_v32 = vpop.eup %4217 }
 0x2cd   :  { %v4220_v40 = vpop.eup %4219 }
 0x2dd   :  { %v1004_v52 = vpop.permute.xlu0 %1003 }
 0x30e   :  { %v946_v24 = vpop.permute.xlu2 %945 }
 0x30f   :  { %v952_v26 = vmul.f32 %v4214_v17, %v946_v24 }
 0x311   :  { %v955_v27 = vmul.f32 %v952_v26, %v4855_v3 }
 0x313   :  { %983 = vst.msk [vmem:[#allocation4 + $0x10] sm:$0xff] %vm330_vm0, %v955_v27  ;;  %v961_v13 = vsub.f32 %v955_v27, %v4855_v3 }
 0x315   :  { %v964_v12 = vsub.f32 %v958_v28, %v961_v13 }
 0x316   :  { %v942_v41 = vpop.permute.xlu1 %941  ;;  %v904_v14 = vpop.permute.xlu2 %903 }
 0x317   :  { %v950_v43 = vmul.f32 %v4218_v32, %v942_v41  ;;  %v909_v30 = vmul.f32 %v4216_v29, %v904_v14  ;;  %980 = vst.msk [vmem:[#allocation3 + $0x10] sm:$0xff] %vm330_vm0, %v964_v12 }
 0x319   :  { %v953_v7 = vmul.f32 %v950_v43, %v4862_v6  ;;  %v5058_v33 = vmul.f32 %v909_v30, %v5032_v51  ;;  %v1009_v30 = vmul.f32 %v1006_v36, %v1004_v52 }
 0x31b   :  { %981 = vst.msk [vmem:[#allocation4] sm:$0xff] %vm330_vm0, %v953_v7  ;;  %v971_v38 = vsub.f32 1.0, %v5058_v33  ;;  %v959_v44 = vsub.f32 %v953_v7, %v4862_v6 }
 0x31c   :  { %984 = vst.msk [vmem:[#allocation5] sm:$0xff] %vm330_vm0, %v5058_v33 }
 0x31d   :  { %v973_v31 = vsub.f32 %v971_v38, %v969_v19  ;;  %v962_v35 = vsub.f32 %v956_v56, %v959_v44 }
 0x31e   :  { %v944_v45 = vpop.permute.xlu1 %943  ;;  %v999_v4 = vpop.permute.xlu2 %998 }
 0x31f   :  { %v951_v49 = vmul.f32 %v4220_v40, %v944_v45  ;;  %1069 = vrot.lane.b32.xlu2 %v973_v31, %s4594_s21  ;;  %986 = vst.msk [vmem:[#allocation6] sm:$0xff] %vm330_vm0, %v973_v31  ;;  %1012 = vperm.xlu1 %4201, %v962_v35   ;;  %v1008_v58 = vmul.f32 %v1006_v36, %v999_v4 }
 0x320   :  { %978 = vst.msk [vmem:[#allocation3] sm:$0xff] %vm330_vm0, %v962_v35 }
 0x321   :  { %v954_v8 = vmul.f32 %v951_v49, %v4852_v2 }
 0x323   :  { %982 = vst.msk [vmem:[#allocation4 + $0x8] sm:$0xff] %vm330_vm0, %v954_v8  ;;  %1039 = vperm.xlu0 %4203, %v954_v8   ;;  %v960_v48 = vsub.f32 %v954_v8, %v4852_v2 }
 0x325   :  { %v963_v50 = vsub.f32 %v957_v22, %v960_v48 }
 0x326   :  { %v994_v47 = vpop.permute.xlu1 %993 }
 0x327   :  { %1034 = vperm.xlu2 %4202, %v953_v7   ;;  %1044 = vperm.xlu1 %4201, %v955_v27   ;;  %979 = vst.msk [vmem:[#allocation3 + $0x8] sm:$0xff] %vm330_vm0, %v963_v50  ;;  %v1007_v62 = vmul.f32 %v1006_v36, %v994_v47 }
 0x32b   :  { %1071 = vrot.lane.b32.xlu0 %v5007_v21, %s4594_s21 }
 0x32f   :  { %1022 = vperm.xlu1 %4201, %v964_v12   ;;  %1017 = vperm.xlu2 %4202, %v963_v50  }
 0x337   :  { %1077 = vrot.lane.b32.xlu1 %v969_v19, %s4597_s3  ;;  %1079 = vrot.lane.b32.xlu2 %v4992_v63, %s4597_s3 }
 0x379   :  { %v1070_v25 = vpop.permute.xlu2 %1069 }
 0x37a   :  { %v1083_v35 = vsel %vm330_vm0, %v5058_v33, %v1070_v25 }
 0x381   :  { %v1035_v39 = vpop.permute.xlu2 %1034 }
 0x382   :  { %v1048_v18 = vmul.f32 %v1047_v55, %v1035_v39 }
 0x389   :  { %v1018_v37 = vpop.permute.xlu2 %1017 }
 0x38a   :  { %v1027_v21 = vmul.f32 %v1025_v54, %v1018_v37 }
 0x38c   :  { %v1030_v20 = vadd.f32 %v1027_v21, %v1008_v58 }
 0x391   :  { %v1013_v34 = vpop.permute.xlu1 %1012  ;;  %v1080_v57 = vpop.permute.xlu2 %1079 }
 0x392   :  { %v1026_v10 = vmul.f32 %v1025_v54, %v1013_v34 }
 0x394   :  { %v1029_v19 = vadd.f32 %v1026_v10, %v1007_v62 }
 0x395   :  { %v1040_v63 = vpop.permute.xlu0 %1039 }
 0x396   :  { %v1051_v11 = vadd.f32 %v1048_v18, %v1029_v19  ;;  %v1049_v15 = vmul.f32 %v1047_v55, %v1040_v63 }
 0x398   :  { %v1058_v17 = vadd.f32 %v4204_v9, %v1051_v11  ;;  %v1052_v24 = vadd.f32 %v1049_v15, %v1030_v20 }
 0x399   :  { %v1045_v26 = vpop.permute.xlu1 %1044 }
 0x39a   :  { %v1061_v27 = vmax.f32 %v1058_v17, 0.0  ;;  %v1059_v28 = vadd.f32 %v4204_v9, %v1052_v24  ;;  %v1050_v38 = vmul.f32 %v1047_v55, %v1045_v26 }
 0x39c   :  { %1064 = vst [vmem:[#allocation8 + $0x10] sm:$0xff] %v1061_v27  ;;  %v1062_v13 = vmax.f32 %v1059_v28, 0.0 }
 0x39d   :  { %v1072_v29 = vpop.permute.xlu0 %1071 }
 0x39e   :  { %1065 = vst [vmem:[#allocation8] sm:$0xff] %v1062_v13  ;;  %v1084_v12 = vsel %vm330_vm0, %v5001_v23, %v1072_v29 }
 0x39f   :  { %v1087_v32 = vsel %vm1085_vm6, %v1084_v12, %v1080_v57 }
 0x3a0   :  { %v1090_v41 = vsel %vm1088_vm7, %v1087_v32, 0.0 }
 0x3a1   :  { %v1093_v14 = vsel %vm1091_vm8, %v1090_v41, 0.0  ;;  %v1023_v43 = vpop.permute.xlu1 %1022 }
 0x3a2   :  { %v1096_v7 = vsel %vm1094_vm9, %v1093_v14, 0.0  ;;  %v1028_v56 = vmul.f32 %v1025_v54, %v1023_v43 }
 0x3a3   :  { %1099 = vst.msk [vmem:[%s4773_s20 + $0x8] sm:$0xff] %vm1097_vm10, %v1096_v7 }
 0x3a4   :  { %v1031_v44 = vadd.f32 %v1028_v56, %v1009_v30 }
 0x3a6   :  { %v1053_v23 = vadd.f32 %v1050_v38, %v1031_v44 }
 0x3a8   :  { %v1060_v31 = vadd.f32 %v4204_v9, %v1053_v23 }
 0x3a9   :  { %v1078_v40 = vpop.permute.xlu1 %1077 }
 0x3aa   :  { %v1063_v45 = vmax.f32 %v1060_v31, 0.0  ;;  %v1086_v49 = vsel %vm1085_vm6, %v1083_v35, %v1078_v40 }
 0x3ab   :  { %v1089_v8 = vsel %vm1088_vm7, %v1086_v49, 0.0 }
 0x3ac   :  { %1066 = vst [vmem:[#allocation8 + $0x8] sm:$0xff] %v1063_v45  ;;  %v1092_v22 = vsel %vm1091_vm8, %v1089_v8, 0.0 }
 0x3ad   :  { %v1095_v48 = vsel %vm1094_vm9, %v1092_v22, 0.0 }
 0x3ae   :  { %1098 = vst.msk [vmem:[%s4773_s20] sm:$0xff] %vm1097_vm10, %v1095_v48 }
 0x3af LB: > { %v5107_v33 = vld [vmem:[#allocation3 + $0x8] sm:$0xff]  ;;  %v5109_v50 = vld [vmem:[#allocation3 + $0x10] sm:$0xff]  ;;  %v1121_v25 = vld [vmem:[#allocation2 + $0x10] sm:$0xff]  ;;  %v4598_v34 = vmov 0.0   ;;  %s4599_s15 = smov 1   ;;  %s4601_s16 = smov 127   ;;  %s4546_s19 = sphi %s5102_s19, %s1105_s19  }
 0x3b0   : > { %v1120_v4 = vld [vmem:[#allocation2 + $0x8] sm:$0xff]  ;;  %v1123_v39 = vmul.f32 %v5107_v33, %v4846_v0  ;;  %v1124_v47 = vmul.f32 %v5109_v50, %v4849_v1  ;;  %v5115_v52 = vld [vmem:[#allocation3] sm:$0xff]  ;;  %v1119_v53 = vld [vmem:[#allocation2] sm:$0xff]  ;;  %s5670_s12 = sld [smem:[#allocation36_spill]]  ;;  %vm2101_vm14 = vcmask 1043456   ;;  %s4602_s28 = smov 2  }
 0x3b1   : > { %v1122_v36 = vmul.f32 %v5115_v52, %v4859_v5  ;;  %v1161_v20 = vld [vmem:[%s4613_s5] sm:$0xff]  ;;  %v1162_v27 = vld [vmem:[%s4613_s5 + $0x8] sm:$0xff]  ;;  %v1163_v44 = vld [vmem:[%s4613_s5 + $0x10] sm:$0xff]  ;;  %s5671_s4 = sld [smem:[#allocation30_spill]]  ;;  %s4603_s22 = smov 3  }
 0x3b2   : > { %v5119_v54 = vsub.f32 %v1120_v4, %v1123_v39  ;;  %v5121_v37 = vsub.f32 %v1121_v25, %v1124_v47  ;;  %v1167_v15 = vsel %vm339_vm4, %v1161_v20, 0  ;;  %v1170_v57 = vsel %vm339_vm4, %v1162_v27, 0  ;;  %s5672_s26 = sld [smem:[#allocation31_spill]]  ;;  %s4604_s27 = smov 4  }
 0x3b3   : > { %v5127_v55 = vsub.f32 %v1119_v53, %v1122_v36  ;;  %v5141_v24 = vand.u32 4294901760, %v1167_v15  ;;  %v5146_v30 = vand.u32 4294901760, %v1170_v57  ;;  %v1173_v22 = vsel %vm339_vm4, %v1163_v44, 0  ;;  %s5673_s10 = sld [smem:[#allocation37_spill]]  ;;  %s4005_s6 = sshll.u32 %s4546_s19, 4 }
 0x3b4   : > { %vm1141_vm11 = vcmp.lt.f32.partialorder %v5119_v54, 0.0  ;;  %vm1142_vm12 = vcmp.lt.f32.partialorder %v5121_v37, 0.0  ;;  %3423 = vst.msk [vmem:[#allocation2 + $0x8] sm:$0xff] %vm330_vm0, %v5119_v54  ;;  %v1130_v18 = vand.u32 2147483647, %v5121_v37  ;;  %v5154_v36 = vand.u32 4294901760, %v1173_v22  ;;  %s3496_s21 = scalar_lea.vmem %s4773_s20, %s4005_s6 }
 0x3b5   : > { %v1144_v58 = vsel %vm1141_vm11, 1.0, %v4598_v34  ;;  %v1145_v21 = vsel %vm1142_vm12, 1.0, %v4598_v34  ;;  %3424 = vst.msk [vmem:[#allocation2 + $0x10] sm:$0xff] %vm330_vm0, %v5121_v37  ;;  %vm1140_vm13 = vcmp.lt.f32.partialorder %v5127_v55, 0.0  ;;  %v1129_v9 = vand.u32 2147483647, %v5119_v54 }
 0x3b6   : > { %v4221_v62 = vpack.i.bf16 %v1144_v58, %v1145_v21  ;;  %3422 = vst.msk [vmem:[#allocation2] sm:$0xff] %vm330_vm0, %v5127_v55  ;;  %v1143_v10 = vsel %vm1140_vm13, 1.0, %v4598_v34  ;;  %v1133_v19 = vmax.f32 %v1130_v18, 1e-30  ;;  %v1128_v11 = vand.u32 2147483647, %v5127_v55 }
 0x3b7   : > { %v1132_v63 = vmax.f32 %v1129_v9, 1e-30  ;;  %v1201_v13 = vsub.f32 %v1167_v15, %v5141_v24  ;;  %v1209_v45 = vsub.f32 %v1170_v57, %v5146_v30  ;;  %v1165_v57 = vld [vmem:[%s4613_s5 + $0x20] sm:$0xff]  ;;  %s5674_s11 = sld [smem:[#allocation28_spill]]  ;;  %s1105_s19 = sadd.s32 1, %s4546_s19  }
 0x3b8   : > { %4222 = vrot.lane.b32.xlu0 %v4221_v62, %s4599_s15  ;;  %4239 = vlog2.f32 %v1133_v19  ;;  %v1131_v17 = vmax.f32 %v1128_v11, 1e-30  ;;  %v1164_v62 = vld [vmem:[%s4613_s5 + $0x18] sm:$0xff]  ;;  %v1217_v19 = vsub.f32 %v1173_v22, %v5154_v36  ;;  %s5675_s30 = sld [smem:[#allocation29_spill]]  ;;  %p1102_p3 = scmp.ge.s32.totalorder %s1105_s19, 4  }
 0x3b9   : > { %4241 = vlog2.f32 %v1132_v63  ;;  %v1202_v43 = vand.u32 4294901760, %v1201_v13  ;;  %v1210_v53 = vand.u32 4294901760, %v1209_v45  ;;  %v1176_v11 = vsel %vm339_vm4, %v1164_v62, 0  ;;  %s5676_s0 = sld [smem:[#allocation32_spill]] }
 0x3ba   : > { %4243 = vlog2.f32 %v1131_v17  ;;  %v1224_v27 = vand.u32 4294901760, %v1176_v11  ;;  %s5677_s18 = sld [smem:[#allocation33_spill]] }
 0x3bb   : > { %v1203_v40 = vsub.f32 %v1201_v13, %v1202_v43  ;;  %v1211_v9 = vsub.f32 %v1209_v45, %v1210_v53  ;;  %s5678_s2 = sld [smem:[#allocation38_spill]] }
 0x3bc   : > { %s5679_s24 = sld [smem:[#allocation39_spill]] }
 0x3bd   : > { %v1204_v47 = vand.u32 4294901760, %v1203_v40  ;;  %v1212_v17 = vand.u32 4294901760, %v1211_v9  ;;  %s5680_s23 = sld [smem:[#allocation34_spill]] }
 0x3be   : > { %v4240_v26 = vpop.eup %4239  ;;  %s5681_s17 = sld [smem:[#allocation35_spill]] }
 0x3bf   : > { %v4242_v28 = vpop.eup %4241  ;;  %v1139_v29 = vmul.f32 0.6931472, %v4240_v26  ;;  %v1218_v26 = vand.u32 4294901760, %v1217_v19  ;;  %s5682_s13 = sld [smem:[#allocation42_spill]] }
 0x3c0   : > { %1149 = vrot.lane.b32.xlu0 %v1143_v10, %s4599_s15  ;;  %v1137_v12 = vmul.f32 0.6931472, %v4242_v28  ;;  %v4244_v7 = vpop.eup %4243  ;;  %s5683_s7 = sld [smem:[#allocation41_spill]] }
 0x3c1   : > { %v1135_v35 = vmul.f32 0.6931472, %v4244_v7  ;;  %s5684_s1 = sld [smem:[#allocation40_spill]] }
 0x42a   : > { %v4223_v32 = vpop.permute.xlu0 %4222 }
 0x42b   : > { %v4225_v41 = vunpack.i.h.bf16 %v4223_v32  ;;  %v4224_v14 = vunpack.i.l.bf16 %v4223_v32  ;;  %v1179_v32 = vsel %vm339_vm4, %v1165_v57, 0 }
 0x42d   : > { %v1159_v56 = vsel %vm330_vm0, %v1137_v12, %v4225_v41  ;;  %v1160_v38 = vsel %vm330_vm0, %v1139_v29, %v4224_v14  ;;  %v1219_v29 = vsub.f32 %v1217_v19, %v1218_v26  ;;  %v1225_v12 = vsub.f32 %v1176_v11, %v1224_v27 }
 0x42e   : > { %v1194_v23 = vand.u32 4294901760, %v1160_v38  ;;  %v1196_v31 = vand.u32 4294901760, %v1159_v56  ;;  %v1232_v14 = vand.u32 4294901760, %v1179_v32 }
 0x42f   : > { %v1226_v41 = vand.u32 4294901760, %v1225_v12 }
 0x430   : > { %1195 = vmatpush.msra.mxu0 %v1194_v23  ;;  %1355 = vmatpush.msra.mxu3 %v1194_v23  ;;  %v1255_v49 = vsub.f32 %v1160_v38, %v1194_v23  ;;  %v1261_v8 = vsub.f32 %v1159_v56, %v1196_v31  ;;  %v1233_v7 = vsub.f32 %v1179_v32, %v1232_v14 }
 0x432   : > { %1197 = vmatpush.msra.mxu0 %v1196_v31  ;;  %1308 = vmatpush.msra.mxu2 %v1255_v49  ;;  %v1150_v48 = vpop.permute.xlu0 %1149  ;;  %v1256_v4 = vand.u32 4294901760, %v1255_v49  ;;  %v1262_v25 = vand.u32 4294901760, %v1261_v8  ;;  %v1234_v38 = vand.u32 4294901760, %v1233_v7 }
 0x433   : > { %1357 = vmatpush.msra.mxu3 %v1196_v31  ;;  %v1158_v39 = vsel %vm330_vm0, %v1135_v35, %v1150_v48  ;;  %v4600_v35 = vmov 0  }
 0x434   : > { %v1198_v34 = vand.u32 4294901760, %v1158_v39  ;;  %1311 = vmatpush.msra.mxu2 %v1261_v8  ;;  %v1257_v58 = vsub.f32 %v1255_v49, %v1256_v4  ;;  %v1263_v21 = vsub.f32 %v1261_v8, %v1262_v25  ;;  %v1235_v44 = vsub.f32 %v1233_v7, %v1234_v38  ;;  %4226 = vset.pattern.permute.xlu1 %v4600_v35 }
 0x435   : > { %4228 = vset.pattern.permute.xlu0 %v4600_v35  ;;  %1784 = vperm.xlu1 %4226, %v5127_v55  }
 0x436   : > { %v1267_v10 = vsub.f32 %v1158_v39, %v1198_v34  ;;  %1199 = vmatpush.msra.mxu0 %v1198_v34  ;;  %1359 = vmatpush.msra.mxu3 %v1198_v34  ;;  %v1258_v18 = vand.u32 4294901760, %v1257_v58  ;;  %v1264_v63 = vand.u32 4294901760, %v1263_v21 }
 0x437   : > { %1205 = vmatmul.f32.vlgmr.msra.gmra.mxu0 %v1204_v47  ;;  %1363 = vmatmul.f32.vlgmr.msra.gmra.mxu3 %v1202_v43  ;;  %v1227_v43 = vsub.f32 %v1225_v12, %v1226_v41 }
 0x438   : > { %1259 = vmatpush.msrb.mxu0 %v1258_v18  ;;  %4128 = vmatpush.msra.mxu1 %v1258_v18  ;;  %v1268_v20 = vand.u32 4294901760, %v1267_v10 }
 0x439   : > { %1314 = vmatpush.msra.mxu2 %v1267_v10  ;;  %v1228_v56 = vand.u32 4294901760, %v1227_v43  ;;  %4227 = vset.pattern.permute.xlu2 %v4600_v35 }
 0x43a   : > { %1317 = vmatmul.f32.vlgmr.msra.gmra.mxu2 %v1201_v13  ;;  %1265 = vmatpush.msrb.mxu0 %v1264_v63  ;;  %v1269_v15 = vsub.f32 %v1267_v10, %v1268_v20  ;;  %v1220_v13 = vand.u32 4294901760, %v1219_v29  ;;  %v1478_v10 = vld [vmem:[%s4618_s9 + $0x8] sm:$0xff] }
 0x43b   : > { %4129 = vmatpush.msra.mxu1 %v1264_v63  ;;  %1803 = vperm.xlu2 %4227, %v5115_v52   ;;  %v1112_v52 = vld [vmem:[#allocation4 + $0x10] sm:$0xff]  ;;  %v1484_v11 = vsel %vm654_vm5, %v1478_v10, 0 }
 0x43c   : > { %v1270_v28 = vand.u32 4294901760, %v1269_v15 }
 0x43d   : > { %1789 = vperm.xlu1 %4226, %v5119_v54  }
 0x43e   : > { %1271 = vmatpush.msrb.mxu0 %v1270_v28  ;;  %4130 = vmatpush.msra.mxu1 %v1270_v28 }
 0x43f   : > { %1213 = vmatmul.f32.gmra.mxu0 %v1212_v17  ;;  %1277 = vmatmul.f32.vlgmr.msra.gmra.mxu1 %v5146_v30 }
 0x440   : > { %1407 = vmatpush.msra.mxu0 %v1256_v4  ;;  %1451 = vmatpush.msrb.mxu1 %v1194_v23  ;;  %v1236_v23 = vand.u32 4294901760, %v1235_v44  ;;  %v1477_v4 = vld [vmem:[%s4618_s9] sm:$0xff] }
 0x441   : > { %1369 = vmatmul.f32.gmra.mxu3 %v1210_v53  ;;  %v1481_v53 = vsel %vm654_vm5, %v1477_v4, 0 }
 0x442   : > { %1322 = vmatmul.f32.gmra.mxu2 %v1209_v45  ;;  %1411 = vmatpush.msra.mxu0 %v1262_v25 }
 0x443   : > { %1453 = vmatpush.msrb.mxu1 %v1196_v31  ;;  %v1110_v31 = vld [vmem:[#allocation4] sm:$0xff]  ;;  %1808 = vperm.xlu2 %4227, %v5107_v33  }
 0x444   : > { %1415 = vmatpush.msra.mxu0 %v1268_v20  ;;  %1825 = vperm.xlu0 %4228, %v1110_v31  }
 0x445   : > { %1455 = vmatpush.msrb.mxu1 %v1198_v34  ;;  %v5188_v34 = vand.u32 4294901760, %v1481_v53 }
 0x447   : > { %1221 = vmatmul.f32.gmra.mxu0 %v1220_v13  ;;  %1281 = vmatmul.f32.gmra.mxu1 %v5154_v36  ;;  %v1479_v13 = vld [vmem:[%s4618_s9 + $0x10] sm:$0xff] }
 0x449   : > { %1375 = vmatmul.f32.gmra.mxu3 %v1218_v26 }
 0x44a   : > { %1327 = vmatmul.f32.gmra.mxu2 %v1217_v19  ;;  %v5192_v19 = vsub.f32 %v1481_v53, %v5188_v34 }
 0x44b   : > { %1794 = vperm.xlu2 %4227, %v5121_v37  }
 0x44c   : > { %v1509_v26 = vand.u32 4294901760, %v5192_v19 }
 0x44e   : > { %v1510_v43 = vsub.f32 %v5192_v19, %v1509_v26 }
 0x44f   : > { %1229 = vmatmul.f32.gmra.mxu0 %v1228_v56  ;;  %1285 = vmatmul.f32.gmra.mxu1 %v1224_v27 }
 0x451   : > { %1381 = vmatmul.f32.gmra.mxu3 %v1226_v41 }
 0x452   : > { %1332 = vmatmul.f32.gmra.mxu2 %v1225_v12 }
 0x453   : > { %1835 = vperm.xlu2 %4227, %v1112_v52   ;;  %v1511_v52 = vand.u32 4294901760, %v1510_v43  ;;  %v1781_v43 = vld [vmem:[%s5671_s4] sm:$0x7] }
 0x457   : > { %1237 = vmatmul.f32.gmra.mxu0 %v1236_v23  ;;  %1289 = vmatmul.f32.gmra.mxu1 %v1232_v14  ;;  %v1487_v23 = vsel %vm654_vm5, %v1479_v13, 0  ;;  %v4014_v13 = vld [vmem:[%s5670_s12 + $0x30] sm:$0xff] }
 0x459   : > { %1387 = vmatmul.f32.gmra.mxu3 %v1234_v38 }
 0x45a   : > { %1337 = vmatmul.f32.gmra.mxu2 %v1233_v7 }
 0x45f   : > { %1273 = vmatmul.f32.vlgmr.msrb.gmra.mxu0 %v5141_v24  ;;  %1457 = vmatmul.f32.vlgmr.msrb.gmra.mxu1 %v5141_v24 }
 0x467   : > { %1417 = vmatmul.f32.vlgmr.msra.gmra.mxu0 %v5141_v24  ;;  %1461 = vmatmul.f32.gmra.mxu1 %v5146_v30  ;;  %v1111_v24 = vld [vmem:[#allocation4 + $0x8] sm:$0xff] }
 0x468   : > { %1830 = vperm.xlu1 %4226, %v1111_v24  }
 0x46f   : > { %1421 = vmatmul.f32.gmra.mxu0 %v5146_v30  ;;  %1465 = vmatmul.f32.gmra.mxu1 %v5154_v36 }
 0x470   : > { %1813 = vperm.xlu1 %4226, %v5109_v50  }
 0x477   : > { %1425 = vmatmul.f32.gmra.mxu0 %v5154_v36  ;;  %1469 = vmatmul.f32.gmra.mxu1 %v1224_v27 }
 0x47f   : > { %1429 = vmatmul.f32.gmra.mxu0 %v1224_v27  ;;  %1473 = vmatmul.f32.gmra.mxu1 %v1232_v14  ;;  %v5199_v27 = vand.u32 4294901760, %v1484_v11 }
 0x481   : > { %v5207_v7 = vsub.f32 %v1484_v11, %v5199_v27  ;;  %v4022_v11 = vld [vmem:[#allocation9 + $0x30] sm:$0xff] }
 0x487   : > { %1433 = vmatmul.f32.gmra.mxu0 %v1232_v14 }
 0x4b4   : > { %v1206_v55 = vpop.f32.mrf.mxu0 }
 0x4ba   : > { %v1364_v39 = vpop.f32.mrf.mxu3 }
 0x4bc   : > { %v1214_v30 = vpop.f32.mrf.mxu0  ;;  %v1278_v54 = vpop.f32.mrf.mxu1 }
 0x4bd   : > { %v1318_v50 = vpop.f32.mrf.mxu2  ;;  %v1279_v18 = vadd.f32 %v1278_v54, %v1214_v30  ;;  %v5217_v30 = vand.u32 4294901760, %v1487_v23 }
 0x4c4   : > { %v5176_v40 = vpop.f32.mrf.mxu0  ;;  %v5178_v33 = vpop.f32.mrf.mxu1 }
 0x4c5   : > { %v1323_v21 = vpop.f32.mrf.mxu2  ;;  %v1370_v15 = vpop.f32.mrf.mxu3 }
 0x4c6   : > { %v1324_v63 = vadd.f32 %v1323_v21, %v1279_v18 }
 0x4c8   : > { %v1371_v28 = vadd.f32 %v1370_v15, %v1324_v63 }
 0x4cc   : > { %v5180_v45 = vpop.f32.mrf.mxu0  ;;  %v5182_v49 = vpop.f32.mrf.mxu1 }
 0x4d4   : > { %v1238_v37 = vpop.f32.mrf.mxu0  ;;  %v1290_v8 = vpop.f32.mrf.mxu1 }
 0x4d5   : > { %v5184_v22 = vadd.f32 %v1290_v8, %v1238_v37 }
 0x4dc   : > { %v1274_v48 = vpop.f32.mrf.mxu0  ;;  %v1458_v36 = vpop.f32.mrf.mxu1 }
 0x4dd   : > { %v1275_v25 = vadd.f32 %v1274_v48, %v1206_v55  ;;  %v1517_v55 = vand.u32 4294901760, %v5207_v7 }
 0x4df   : > { %v1319_v47 = vadd.f32 %v1318_v50, %v1275_v25  ;;  %v1518_v25 = vsub.f32 %v5207_v7, %v1517_v55 }
 0x4e1   : > { %v1365_v58 = vadd.f32 %v1364_v39, %v1319_v47  ;;  %v5225_v39 = vsub.f32 %v1487_v23, %v5217_v30  ;;  %v4023_v47 = vld [vmem:[#allocation9 + $0x38] sm:$0xff]  ;;  %v1519_v10 = vand.u32 4294901760, %v1518_v25  ;;  %v4012_v23 = vld [vmem:[%s5670_s12 + $0x20] sm:$0xff]  ;;  %v4016_v25 = vld [vmem:[#allocation9] sm:$0xff] }
 0x4e3   : > { %v1525_v18 = vand.u32 4294901760, %v5225_v39 }
 0x4e4   : > { %v1418_v62 = vpop.f32.mrf.mxu0  ;;  %v1462_v32 = vpop.f32.mrf.mxu1 }
 0x4e5   : > { %v1419_v9 = vadd.f32 %v1418_v62, %v1365_v58  ;;  %v1526_v15 = vsub.f32 %v5225_v39, %v1525_v18 }
 0x4e7   : > { %v5194_v20 = vadd.f32 %v1458_v36, %v1419_v9 }
 0x4e9   : > { %v1710_v17 = vmul.f32 0.5, %v5194_v20  ;;  %v1505_v29 = vand.u32 4294901760, %v5194_v20 }
 0x4eb   : > { %v1712_v57 = vfloor.f32 %v1710_v17  ;;  %v1553_v44 = vsub.f32 %v5194_v20, %v1505_v29  ;;  %v4015_v17 = vld [vmem:[%s5670_s12 + $0x38] sm:$0xff] }
 0x4ec   : > { %v1422_v12 = vpop.f32.mrf.mxu0 }
 0x4ed   : > { %v1423_v41 = vadd.f32 %v1422_v12, %v1371_v28  ;;  %v1714_v14 = vmul.f32 2.0, %v1712_v57  ;;  %v1554_v8 = vand.u32 4294901760, %v1553_v44  ;;  %v1785_v28 = vpop.permute.xlu1 %1784  ;;  %v4021_v57 = vld [vmem:[#allocation9 + $0x28] sm:$0xff]  ;;  %v1527_v12 = vand.u32 4294901760, %v1526_v15 }
 0x4ef   : > { %v5209_v56 = vadd.f32 %v1462_v32, %v1423_v41  ;;  %v1716_v38 = vsub.f32 %v5194_v20, %v1714_v14  ;;  %v1555_v58 = vsub.f32 %v1553_v44, %v1554_v8  ;;  %v4020_v32 = vld [vmem:[#allocation9 + $0x20] sm:$0xff]  ;;  %v4019_v41 = vld [vmem:[#allocation9 + $0x18] sm:$0xff] }
 0x4f0   : > { %v4013_v14 = vld [vmem:[%s5670_s12 + $0x28] sm:$0xff] }
 0x4f1   : > { %v1503_v31 = vand.u32 4294901760, %v5209_v56  ;;  %v1722_v35 = vmul.f32 2.0, %v1716_v38  ;;  %v1711_v24 = vmul.f32 0.5, %v5209_v56  ;;  %v1556_v63 = vand.u32 4294901760, %v1555_v58 }
 0x4f2   : > { %v1797_v38 = vperm.slane %v1781_v43, 0 }
 0x4f3   : > { %1504 = vmatpush.msrb.mxu2 %v1503_v31  ;;  %1694 = vmatpush.msra.mxu1 %v1503_v31  ;;  %v1724_v54 = vsub.f32 1.0, %v1722_v35  ;;  %v1547_v37 = vsub.f32 %v5209_v56, %v1503_v31  ;;  %v1713_v50 = vfloor.f32 %v1711_v24  ;;  %v4017_v24 = vld [vmem:[#allocation9 + $0x8] sm:$0xff] }
 0x4f5   : > { %1728 = vrot.lane.b32.xlu0 %v1724_v54, %s4601_s16  ;;  %1506 = vmatpush.msrb.mxu2 %v1505_v29  ;;  %v1548_v48 = vand.u32 4294901760, %v1547_v37  ;;  %v1715_v4 = vmul.f32 2.0, %v1713_v50  ;;  %v1838_v50 = vperm.slane %v1781_v43, 2 }
 0x4f6   : > { %1696 = vmatpush.msra.mxu1 %v1505_v29  ;;  %1512 = vmatmul.f32.vlgmr.msrb.gmra.mxu2 %v1511_v52  ;;  %v4011_v52 = vld [vmem:[%s5670_s12 + $0x18] sm:$0xff] }
 0x4f7   : > { %1587 = vmatpush.msra.mxu2 %v1547_v37  ;;  %1661 = vmatpush.msrb.mxu0 %v1548_v48  ;;  %v1549_v53 = vsub.f32 %v1547_v37, %v1548_v48  ;;  %v1717_v36 = vsub.f32 %v5209_v56, %v1715_v4  ;;  %v1826_v48 = vpop.permute.xlu0 %1825 }
 0x4f8   : > { %1698 = vmatmul.f32.vlgmr.msra.gmra.mxu1 %v5188_v34  ;;  %v1839_v58 = vmul.f32 %v1838_v50, %v1826_v48 }
 0x4f9   : > { %1590 = vmatpush.msra.mxu2 %v1553_v44  ;;  %1665 = vmatpush.msrb.mxu0 %v1554_v8  ;;  %v1550_v21 = vand.u32 4294901760, %v1549_v53  ;;  %v1723_v62 = vmul.f32 2.0, %v1717_v36  ;;  %v4018_v44 = vld [vmem:[#allocation9 + $0x10] sm:$0xff] }
 0x4fa   : > { %1667 = vmatmul.f32.vlgmr.msrb.gmra.mxu0 %v5188_v34 }
 0x4fb   : > { %1995 = vmatpush.bf16.msrb.mxu2 %v4023_v47  ;;  %1551 = vmatpush.msrb.mxu3 %v1550_v21  ;;  %v1725_v9 = vsub.f32 1.0, %v1723_v62  ;;  %v4009_v62 = vld [vmem:[%s5670_s12 + $0x8] sm:$0xff] }
 0x4fd   : > { %1730 = vrot.lane.b32.xlu1 %v1725_v9, %s4601_s16  ;;  %1557 = vmatpush.msrb.mxu3 %v1556_v63 }
 0x4fe   : > { %1520 = vmatmul.f32.gmra.mxu2 %v1519_v10  ;;  %1559 = vmatmul.f32.vlgmr.msrb.gmra.mxu3 %v5188_v34  ;;  %v1804_v34 = vpop.permute.xlu2 %1803  ;;  %v4229_v10 = vld [vmem:[%s5672_s26] ss:$0 sm:$0xff] }
 0x4ff   : > { %1622 = vmatpush.msra.mxu3 %v1503_v31  ;;  %1996 = vmatpush.bf16.msrb.mxu2 %v4022_v11  ;;  %v1816_v31 = vperm.slane %v1781_v43, 1  ;;  %v4008_v11 = vld [vmem:[%s5670_s12] sm:$0xff]  ;;  %v1779_v43 = vld [vmem:[#allocation8] sm:$0xff] }
 0x500   : > { %1702 = vmatmul.f32.gmra.mxu1 %v5199_v27 }
 0x501   : > { %1624 = vmatpush.msra.mxu3 %v1505_v29  ;;  %v1790_v29 = vpop.permute.xlu1 %1789  ;;  %v1817_v54 = vmul.f32 %v1816_v31, %v1804_v34 }
 0x502   : > { %1671 = vmatmul.f32.gmra.mxu0 %v5199_v27  ;;  %v1799_v37 = vmul.f32 %v1797_v38, %v1790_v29 }
 0x503   : > { %2061 = vmatpush.bf16.msrb.mxu3 %v4015_v17  ;;  %1997 = vmatpush.bf16.msrb.mxu2 %v4021_v57 }
 0x506   : > { %1528 = vmatmul.f32.gmra.mxu2 %v1527_v12  ;;  %1563 = vmatmul.f32.gmra.mxu3 %v5199_v27  ;;  %v1809_v35 = vpop.permute.xlu2 %1808  ;;  %v1798_v27 = vmul.f32 %v1797_v38, %v1785_v28 }
 0x507   : > { %1998 = vmatpush.bf16.msrb.mxu2 %v4020_v32  ;;  %2062 = vmatpush.bf16.msrb.mxu3 %v4014_v13  ;;  %v1818_v8 = vmul.f32 %v1816_v31, %v1809_v35  ;;  %v1328_v35 = vpop.f32.mrf.mxu2 }
 0x508   : > { %1706 = vmatmul.f32.gmra.mxu1 %v5217_v30  ;;  %v1820_v47 = vadd.f32 %v1817_v54, %v1798_v27 }
 0x509   : > { %v1831_v4 = vpop.permute.xlu1 %1830  ;;  %v1821_v53 = vadd.f32 %v1818_v8, %v1799_v37 }
 0x50a   : > { %1675 = vmatmul.f32.gmra.mxu0 %v5217_v30  ;;  %v1840_v36 = vmul.f32 %v1838_v50, %v1831_v4  ;;  %v1842_v63 = vadd.f32 %v1839_v58, %v1820_v47 }
 0x50b   : > { %1999 = vmatpush.bf16.msrb.mxu2 %v4019_v41  ;;  %2063 = vmatpush.bf16.msrb.mxu3 %v4013_v14  ;;  %v1778_v14 = vld [vmem:[#allocation8 + $0x10] sm:$0xff] }
 0x50c   : > { %v1843_v9 = vadd.f32 %v1840_v36, %v1821_v53  ;;  %v1849_v17 = vadd.f32 %v4229_v10, %v1842_v63  ;;  %v1283_v63 = vadd.f32 %v5178_v33, %v5176_v40 }
 0x50e   : > { %1567 = vmatmul.f32.gmra.mxu3 %v5217_v30  ;;  %1593 = vmatmul.f32.vlgmr.msra.gmra.mxu2 %v5192_v19  ;;  %v4010_v30 = vld [vmem:[%s5670_s12 + $0x10] sm:$0xff]  ;;  %v1795_v21 = vpop.permute.xlu2 %1794  ;;  %v1850_v15 = vadd.f32 %v4229_v10, %v1843_v9 }
 0x50f   : > { %2000 = vmatpush.bf16.msrb.mxu2 %v4018_v44  ;;  %2064 = vmatpush.bf16.msrb.mxu3 %v4012_v23  ;;  %v1800_v57 = vmul.f32 %v1797_v38, %v1795_v21  ;;  %v5261_v44 = vpack.c.bf16 %v1779_v43, %v1778_v14  ;;  %v1780_v38 = vld [vmem:[#allocation8 + $0x8] sm:$0xff] }
 0x510   : > { %v1853_v19 = vmax.f32 %v1850_v15, 0.0 }
 0x511   : > { %v1814_v28 = vpop.permute.xlu1 %1813 }
 0x512   : > { %v1819_v12 = vmul.f32 %v1816_v31, %v1814_v28  ;;  %v5264_v31 = vpack.c.bf16 %v1780_v38, %v1780_v38 }
 0x513   : > { %2001 = vmatpush.bf16.msrb.mxu2 %v4017_v24  ;;  %2065 = vmatpush.bf16.msrb.mxu3 %v4011_v52  ;;  %v1333_v24 = vpop.f32.mrf.mxu2 }
 0x514   : > { %v1822_v13 = vadd.f32 %v1819_v12, %v1800_v57 }
 0x516   : > { %1598 = vmatmul.f32.gmra.mxu2 %v5207_v7  ;;  %1628 = vmatmul.f32.vlgmr.msra.gmra.mxu3 %v1509_v26  ;;  %v1852_v26 = vmax.f32 %v1849_v17, 0.0  ;;  %v1836_v34 = vpop.permute.xlu2 %1835 }
 0x517   : > { %2002 = vmatpush.bf16.msrb.mxu2 %v4016_v25  ;;  %2066 = vmatpush.bf16.msrb.mxu3 %v4010_v30  ;;  %v1841_v41 = vmul.f32 %v1838_v50, %v1836_v34  ;;  %v1426_v50 = vpop.f32.mrf.mxu0  ;;  %v1466_v25 = vpop.f32.mrf.mxu1  ;;  %v1287_v34 = vadd.f32 %v5182_v49, %v5180_v45 }
 0x518   : > { %v1945_v32 = vpack.c.bf16 %v1853_v19, %v1852_v26 }
 0x519   : > { %v1844_v29 = vadd.f32 %v1841_v41, %v1822_v13  ;;  %v1334_v41 = vadd.f32 %v1333_v24, %v1287_v34 }
 0x51b   : > { %2067 = vmatpush.bf16.msrb.mxu3 %v4009_v62  ;;  %v1851_v7 = vadd.f32 %v4229_v10, %v1844_v29  ;;  %v1338_v8 = vpop.f32.mrf.mxu2 }
 0x51c   : > { %v1339_v45 = vadd.f32 %v1338_v8, %v5184_v22 }
 0x51e   : > { %1603 = vmatmul.f32.gmra.mxu2 %v5225_v39  ;;  %1634 = vmatmul.f32.gmra.mxu3 %v1517_v55  ;;  %v1854_v55 = vmax.f32 %v1851_v7, 0.0  ;;  %v1718_v39 = vmul.f32 1.442695, %v5194_v20 }
 0x51f   : > { %2068 = vmatpush.bf16.msrb.mxu3 %v4008_v11  ;;  %v1430_v53 = vpop.f32.mrf.mxu0  ;;  %v1470_v36 = vpop.f32.mrf.mxu1  ;;  %v1329_v11 = vadd.f32 %v1328_v35, %v1283_v63 }
 0x520   : > { %v1946_v23 = vpack.c.bf16 %v1854_v55, %v1854_v55  ;;  %4245 = vpow2.f32 %v1718_v39 }
 0x526   : > { %1640 = vmatmul.f32.gmra.mxu3 %v1525_v18  ;;  %2003 = vmatmul.bf16.vlgmr.msrb.gmra.mxu2 %v1945_v32  ;;  %v1376_v18 = vpop.f32.mrf.mxu3  ;;  %v4246_v27 = vpop.eup %4245 }
 0x527   : > { %v1434_v21 = vpop.f32.mrf.mxu0  ;;  %v1474_v62 = vpop.f32.mrf.mxu1  ;;  %v1377_v19 = vadd.f32 %v1376_v18, %v1329_v11 }
 0x529   : > { %v1427_v32 = vadd.f32 %v1426_v50, %v1377_v19 }
 0x52b   : > { %v1467_v43 = vadd.f32 %v1466_v25, %v1427_v32 }
 0x52e   : > { %2069 = vmatmul.bf16.vlgmr.msrb.gmra.mxu3 %v5261_v44  ;;  %v1382_v37 = vpop.f32.mrf.mxu3 }
 0x52f   : > { %v1383_v40 = vadd.f32 %v1382_v37, %v1334_v41 }
 0x531   : > { %v1431_v18 = vadd.f32 %v1430_v53, %v1383_v40  ;;  %v1720_v53 = vmul.f32 1.442695, %v5209_v56 }
 0x533   : > { %v1471_v50 = vadd.f32 %v1470_v36, %v1431_v18  ;;  %4247 = vpow2.f32 %v1720_v53 }
 0x536   : > { %2008 = vmatmul.bf16.gmra.mxu2 %v1946_v23  ;;  %v1388_v48 = vpop.f32.mrf.mxu3 }
 0x53e   : > { %2074 = vmatmul.bf16.gmra.mxu3 %v5264_v31 }
 0x567   : > { %v1729_v52 = vpop.permute.xlu0 %1728 }
 0x568   : > { %v5268_v54 = vmul.f32 %v4246_v27, %v1729_v52 }
 0x56a   : > { %1858 = vperm.xlu1 %4226, %v5268_v54  }
 0x575   : > { %v1699_v28 = vpop.f32.mrf.mxu1 }
 0x577   : > { %v1668_v15 = vpop.f32.mrf.mxu0 }
 0x579   : > { %v1513_v4 = vpop.f32.mrf.mxu2 }
 0x57d   : > { %v1703_v38 = vpop.f32.mrf.mxu1 }
 0x57f   : > { %v1672_v55 = vpop.f32.mrf.mxu0 }
 0x581   : > { %v1521_v30 = vpop.f32.mrf.mxu2  ;;  %v1560_v47 = vpop.f32.mrf.mxu3 }
 0x582   : > { %v1561_v17 = vadd.f32 %v1560_v47, %v1513_v4  ;;  %v1389_v47 = vadd.f32 %v1388_v48, %v1339_v45 }
 0x585   : > { %v1707_v36 = vpop.f32.mrf.mxu1 }
 0x589   : > { %v1529_v20 = vpop.f32.mrf.mxu2  ;;  %v1564_v58 = vpop.f32.mrf.mxu3 }
 0x58a   : > { %v1565_v29 = vadd.f32 %v1564_v58, %v1521_v30 }
 0x591   : > { %v1568_v10 = vpop.f32.mrf.mxu3  ;;  %v1594_v9 = vpop.f32.mrf.mxu2 }
 0x592   : > { %v1595_v26 = vadd.f32 %v1594_v9, %v1561_v17  ;;  %v1569_v4 = vadd.f32 %v1568_v10, %v1529_v20  ;;  %v1676_v9 = vpop.f32.mrf.mxu0  ;;  %v1435_v17 = vadd.f32 %v1434_v21, %v1389_v47 }
 0x594   : > { %v1475_v48 = vadd.f32 %v1474_v62, %v1435_v17 }
 0x599   : > { %v1599_v57 = vpop.f32.mrf.mxu2  ;;  %v1629_v12 = vpop.f32.mrf.mxu3 }
 0x59a   : > { %v1630_v13 = vadd.f32 %v1629_v12, %v1595_v26  ;;  %v1600_v33 = vadd.f32 %v1599_v57, %v1565_v29  ;;  %v1731_v12 = vpop.permute.xlu1 %1730 }
 0x59c   : > { %v1669_v14 = vadd.f32 %v1668_v15, %v1630_v13 }
 0x59e   : > { %v1700_v7 = vadd.f32 %v1699_v28, %v1669_v14  ;;  %v4248_v14 = vpop.eup %4247 }
 0x5a0   : > { %v5275_v23 = vsub.f32 %v1700_v7, %v1467_v43  ;;  %v5289_v43 = vmul.f32 %v4248_v14, %v1731_v12  ;;  %v4032_v14 = vld [vmem:[#allocation11 + $0x38] sm:$0xff] }
 0x5a1   : > { %v1604_v35 = vpop.f32.mrf.mxu2  ;;  %v1635_v39 = vpop.f32.mrf.mxu3  ;;  %2188 = vmatpush.bf16.msrb.mxu1 %v4032_v14  ;;  %v4036_v14 = vld [vmem:[#allocation17 + $0x18] sm:$0xff] }
 0x5a2   : > { %v1739_v27 = vmul.f32 0.5, %v5275_v23  ;;  %v1636_v52 = vadd.f32 %v1635_v39, %v1600_v33  ;;  %v1605_v37 = vadd.f32 %v1604_v35, %v1569_v4  ;;  %v4047_v4 = vld [vmem:[#allocation19 + $0x30] sm:$0xff]  ;;  %v1751_v12 = vmul.f32 1.442695, %v5275_v23 }
 0x5a4   : > { %v1673_v49 = vadd.f32 %v1672_v55, %v1636_v52  ;;  %v1742_v24 = vfloor.f32 %v1739_v27  ;;  %v4230_v52 = vld [vmem:[%s5673_s10] ss:$0 sm:$0xff]  ;;  %4249 = vpow2.f32 %v1751_v12 }
 0x5a6   : > { %v1704_v25 = vadd.f32 %v1703_v38, %v1673_v49  ;;  %v1745_v30 = vmul.f32 2.0, %v1742_v24  ;;  %v4048_v49 = vld [vmem:[#allocation19 + $0x38] sm:$0xff] }
 0x5a7   : > { %2286 = vmatpush.bf16.msra.mxu2 %v4048_v49  ;;  %v4027_v49 = vld [vmem:[#allocation11 + $0x10] sm:$0xff] }
 0x5a8   : > { %v5279_v58 = vsub.f32 %v1704_v25, %v1471_v50  ;;  %v1748_v63 = vsub.f32 %v5275_v23, %v1745_v30  ;;  %v4030_v23 = vld [vmem:[#allocation11 + $0x28] sm:$0xff] }
 0x5a9   : > { %v1641_v11 = vpop.f32.mrf.mxu3  ;;  %v2004_v15 = vpop.f32.mrf.mxu2 }
 0x5aa   : > { %v1740_v22 = vmul.f32 0.5, %v5279_v58  ;;  %v1642_v8 = vadd.f32 %v1641_v11, %v1605_v37  ;;  %v1757_v28 = vmul.f32 2.0, %v1748_v63 }
 0x5ab   : > { %2287 = vmatpush.bf16.msra.mxu2 %v4047_v4  ;;  %v4025_v4 = vld [vmem:[#allocation11] sm:$0xff] }
 0x5ac   : > { %v1677_v20 = vadd.f32 %v1676_v9, %v1642_v8  ;;  %v1760_v10 = vsub.f32 1.0, %v1757_v28  ;;  %v1743_v19 = vfloor.f32 %v1740_v22  ;;  %v4046_v9 = vld [vmem:[#allocation19 + $0x28] sm:$0xff]  ;;  %v4024_v22 = vld [vmem:[%s5674_s11] sm:$0xff]  ;;  %v4045_v8 = vld [vmem:[#allocation19 + $0x20] sm:$0xff] }
 0x5ad   : > { %v4049_v28 = vld [vmem:[%s5675_s30] sm:$0xff] }
 0x5ae   : > { %v1708_v26 = vadd.f32 %v1707_v36, %v1677_v20  ;;  %1766 = vrot.lane.b32.xlu2 %v1760_v10, %s4601_s16  ;;  %v1746_v57 = vmul.f32 2.0, %v1743_v19  ;;  %v2408_v36 = vld [vmem:[%s5675_s30 + $0x8] sm:$0xf]  ;;  %v4043_v19 = vld [vmem:[#allocation19 + $0x10] sm:$0xff] }
 0x5af   : > { %2288 = vmatpush.bf16.msra.mxu2 %v4046_v9  ;;  %v4044_v20 = vld [vmem:[#allocation19 + $0x18] sm:$0xff]  ;;  %v2414_v10 = vunpack.c.l.b16 %v2408_v36 }
 0x5b0   : > { %v5285_v34 = vsub.f32 %v1708_v26, %v1475_v48  ;;  %v1749_v56 = vsub.f32 %v5279_v58, %v1746_v57  ;;  %v4042_v26 = vld [vmem:[#allocation19 + $0x8] sm:$0xff]  ;;  %v4041_v57 = vld [vmem:[#allocation19] sm:$0xff] }
 0x5b1   : > { %v2006_v21 = vpop.f32.mrf.mxu2  ;;  %v2070_v32 = vpop.f32.mrf.mxu3  ;;  %v2416_v48 = vpack.c.b16 %v2414_v10, %v2414_v10 }
 0x5b2   : > { %v1741_v13 = vmul.f32 0.5, %v5285_v34  ;;  %v1758_v41 = vmul.f32 2.0, %v1749_v56  ;;  %v2071_v24 = vadd.f32 %v2070_v32, %v2004_v15  ;;  %v4250_v56 = vpop.eup %4249  ;;  %v4231_v32 = vld [vmem:[%s5676_s0] ss:$0 sm:$0xff] }
 0x5b3   : > { %2289 = vmatpush.bf16.msra.mxu2 %v4045_v8  ;;  %v4050_v8 = vld [vmem:[#allocation13] sm:$0xff] }
 0x5b4   : > { %v1761_v29 = vsub.f32 1.0, %v1758_v41  ;;  %v1744_v62 = vfloor.f32 %v1741_v13  ;;  %v2083_v47 = vadd.f32 %v4230_v52, %v2071_v24  ;;  %v4026_v24 = vld [vmem:[#allocation11 + $0x8] sm:$0xff] }
 0x5b6   : > { %1768 = vrot.lane.b32.xlu0 %v1761_v29, %s4601_s16  ;;  %1863 = vperm.xlu2 %4227, %v5289_v43   ;;  %v1747_v7 = vmul.f32 2.0, %v1744_v62  ;;  %v2086_v17 = vmax.f32 %v2083_v47, 0.0  ;;  %v4232_v29 = vld [vmem:[%s5677_s18] ss:$0 sm:$0xff]  ;;  %v4057_v47 = vld [vmem:[#allocation13 + $0x38] sm:$0xff] }
 0x5b7   : > { %2290 = vmatpush.bf16.msra.mxu2 %v4044_v20 }
 0x5b8   : > { %v1750_v55 = vsub.f32 %v5285_v34, %v1747_v7 }
 0x5b9   : > { %v2009_v40 = vpop.f32.mrf.mxu2  ;;  %v2072_v33 = vpop.f32.mrf.mxu3 }
 0x5ba   : > { %v1759_v38 = vmul.f32 2.0, %v1750_v55  ;;  %v2073_v39 = vadd.f32 %v2072_v33, %v2006_v21  ;;  %v4031_v33 = vld [vmem:[#allocation11 + $0x30] sm:$0xff] }
 0x5bb   : > { %2291 = vmatpush.bf16.msra.mxu2 %v4043_v19  ;;  %2189 = vmatpush.bf16.msrb.mxu1 %v4031_v33  ;;  %v3826_v33 = vld [vmem:[#allocation14 + $0xa8] sm:$0xf] }
 0x5bc   : > { %v1762_v35 = vsub.f32 1.0, %v1759_v38  ;;  %v2084_v25 = vadd.f32 %v4230_v52, %v2073_v39 }
 0x5be   : > { %1770 = vrot.lane.b32.xlu0 %v1762_v35, %s4601_s16  ;;  %v2087_v63 = vmax.f32 %v2084_v25, 0.0 }
 0x5bf   : > { %2292 = vmatpush.bf16.msra.mxu2 %v4042_v26  ;;  %2190 = vmatpush.bf16.msrb.mxu1 %v4030_v23  ;;  %v4080_v23 = vld [vmem:[#allocation14 + $0xb0] sm:$0xf0] }
 0x5c0   : > { %v2089_v15 = vpack.c.bf16 %v2087_v63, %v2086_v17  ;;  %v4053_v17 = vld [vmem:[#allocation13 + $0x18] sm:$0xff] }
 0x5c1   : > { %v2011_v18 = vpop.f32.mrf.mxu2  ;;  %v2075_v27 = vpop.f32.mrf.mxu3 }
 0x5c2   : > { %v2076_v45 = vadd.f32 %v2075_v27, %v2009_v40  ;;  %v4029_v27 = vld [vmem:[#allocation11 + $0x20] sm:$0xff] }
 0x5c3   : > { %2293 = vmatpush.bf16.msra.mxu2 %v4041_v57  ;;  %2191 = vmatpush.bf16.msrb.mxu1 %v4029_v27 }
 0x5c4   : > { %v2085_v50 = vadd.f32 %v4230_v52, %v2076_v45  ;;  %v4028_v52 = vld [vmem:[#allocation11 + $0x18] sm:$0xff]  ;;  %v1753_v45 = vmul.f32 1.442695, %v5279_v58  ;;  %v4056_v58 = vld [vmem:[#allocation13 + $0x30] sm:$0xff] }
 0x5c6   : > { %v2088_v30 = vmax.f32 %v2085_v50, 0.0  ;;  %4251 = vpow2.f32 %v1753_v45  ;;  %v1755_v50 = vmul.f32 1.442695, %v5285_v34  ;;  %v4054_v34 = vld [vmem:[#allocation13 + $0x20] sm:$0xff] }
 0x5c7   : > { %2192 = vmatpush.bf16.msrb.mxu1 %v4028_v52  ;;  %v3822_v52 = vld [vmem:[#allocation14 + $0x98] sm:$0xf]  ;;  %v4078_v45 = vld [vmem:[#allocation14 + $0xa0] sm:$0xf0] }
 0x5c8   : > { %v2090_v37 = vpack.c.bf16 %v2088_v30, %v2088_v30  ;;  %4253 = vpow2.f32 %v1755_v50  ;;  %v4104_v50 = vld [vmem:[#allocation16 + $0xb0] sm:$0xf0] }
 0x5c9   : > { %v2077_v53 = vpop.f32.mrf.mxu3 }
 0x5ca   : > { %v2103_v11 = vsel %vm2101_vm14, %v2090_v37, 0 }
 0x5cb   : > { %2111 = vmatpush.bf16.msra.mxu0 %v2103_v11  ;;  %2193 = vmatpush.bf16.msrb.mxu1 %v4027_v49  ;;  %v3922_v49 = vld [vmem:[#allocation16 + $0xa8] sm:$0xf] }
 0x5cc   : > { %v4252_v25 = vpop.eup %4251 }
 0x5ce   : > { %v4254_v9 = vpop.eup %4253 }
 0x5cf   : > { %2112 = vmatpush.bf16.msra.mxu0 %v2089_v15  ;;  %2194 = vmatpush.bf16.msrb.mxu1 %v4026_v24  ;;  %v3823_v24 = vor.u32 %v4078_v45, %v3822_v52  ;;  %v4067_v52 = vld [vmem:[#allocation14 + $0x4c] sm:$0xf]  ;;  %v3780_v45 = vld [vmem:[#allocation14 + $0x54] sm:$0xf0] }
 0x5d2   : > { %3603 = vmatmul.msk.bf16.vlgmr.msra.gmra.mxu0 %vm339_vm4, %v4024_v22  ;;  %v4051_v22 = vld [vmem:[#allocation13 + $0x8] sm:$0xff] }
 0x5d3   : > { %2429 = vmatpush.bf16.msrb.mxu0 %v2103_v11  ;;  %2195 = vmatpush.bf16.msrb.mxu1 %v4025_v4  ;;  %v4055_v11 = vld [vmem:[#allocation13 + $0x28] sm:$0xff]  ;;  %v3814_v4 = vld [vmem:[#allocation14 + $0x90] sm:$0xf] }
 0x5d7   : > { %2430 = vmatpush.bf16.msrb.mxu0 %v2089_v15  ;;  %2511 = vmatpush.bf16.msra.mxu1 %v4057_v47  ;;  %v4052_v15 = vld [vmem:[#allocation13 + $0x10] sm:$0xff] }
 0x5db   : > { %2512 = vmatpush.bf16.msra.mxu1 %v4056_v58  ;;  %v4076_v58 = vld [vmem:[#allocation14 + $0x94] sm:$0xf] }
 0x5dc   : > { %v1859_v41 = vpop.permute.xlu1 %1858 }
 0x5dd   : > { %v1869_v62 = vmul.f32 %v4231_v32, %v1859_v41  ;;  %v4037_v41 = vld [vmem:[#allocation17 + $0x20] sm:$0xff] }
 0x5df   : > { %v1875_v55 = vadd.f32 %v4232_v29, %v1869_v62  ;;  %2513 = vmatpush.bf16.msra.mxu1 %v4055_v11  ;;  %v4034_v62 = vld [vmem:[#allocation17 + $0x8] sm:$0xff]  ;;  %v3810_v11 = vld [vmem:[#allocation14 + $0x80] sm:$0xf] }
 0x5e1   : > { %v1877_v35 = vmax.f32 %v1875_v55, 0.0  ;;  %v3834_v55 = vld [vmem:[#allocation14 + $0xb0] sm:$0xf] }
 0x5e2   : > { %3706 = vmatmul.msk.bf16.vlgmr.msrb.gmra.mxu0 %vm339_vm4, %v4049_v28 }
 0x5e3   : > { %2514 = vmatpush.bf16.msra.mxu1 %v4054_v34  ;;  %v4075_v34 = vld [vmem:[#allocation14 + $0x88] sm:$0xf0] }
 0x5e7   : > { %2515 = vmatpush.bf16.msra.mxu1 %v4053_v17  ;;  %v3910_v17 = vld [vmem:[#allocation16 + $0x90] sm:$0xf] }
 0x5eb   : > { %2516 = vmatpush.bf16.msra.mxu1 %v4052_v15  ;;  %v3811_v15 = vor.u32 %v4075_v34, %v3810_v11  ;;  %v4064_v34 = vld [vmem:[#allocation14 + $0x34] sm:$0xf] }
 0x5ef   : > { %2517 = vmatpush.bf16.msra.mxu1 %v4051_v22  ;;  %v4101_v22 = vld [vmem:[#allocation16 + $0x98] sm:$0xf0] }
 0x5f2   : > { %3707 = vmatmul.msk.bf16.gmra.mxu0 %vm339_vm4, %v2416_v48 }
 0x5f3   : > { %2518 = vmatpush.bf16.msra.mxu1 %v4050_v8  ;;  %v3802_v8 = vld [vmem:[#allocation14 + $0x78] sm:$0xf] }
 0x608   : > { %v1767_v21 = vpop.permute.xlu2 %1766 }
 0x609   : > { %v5304_v13 = vmul.f32 %v4250_v56, %v1767_v21  ;;  %v4040_v56 = vld [vmem:[#allocation17 + $0x38] sm:$0xff]  ;;  %v4039_v21 = vld [vmem:[#allocation17 + $0x30] sm:$0xff] }
 0x60a   : > { %2348 = vmatpush.bf16.msra.mxu3 %v4040_v56 }
 0x60b   : > { %1882 = vperm.xlu1 %4226, %v5304_v13  }
 0x60e   : > { %2349 = vmatpush.bf16.msra.mxu3 %v4039_v21  ;;  %v4098_v21 = vld [vmem:[#allocation16 + $0x80] sm:$0xf0] }
 0x610   : > { %v1864_v7 = vpop.permute.xlu2 %1863 }
 0x611   : > { %v1870_v40 = vmul.f32 %v4231_v32, %v1864_v7  ;;  %v4038_v32 = vld [vmem:[#allocation17 + $0x28] sm:$0xff]  ;;  %v4033_v7 = vld [vmem:[#allocation17] sm:$0xff] }
 0x612   : > { %2350 = vmatpush.bf16.msra.mxu3 %v4038_v32  ;;  %v3790_v32 = vld [vmem:[#allocation14 + $0x60] sm:$0xf] }
 0x613   : > { %v1876_v38 = vadd.f32 %v4232_v29, %v1870_v40  ;;  %v4035_v29 = vld [vmem:[#allocation17 + $0x10] sm:$0xff]  ;;  %v4081_v40 = vld [vmem:[#allocation14 + $0xb8] sm:$0xf0] }
 0x615   : > { %v1878_v39 = vmax.f32 %v1876_v38, 0.0  ;;  %v3835_v38 = vor.u32 %v4081_v40, %v3834_v55  ;;  %v3786_v40 = vld [vmem:[#allocation14 + $0x50] sm:$0xf] }
 0x616   : > { %2351 = vmatpush.bf16.msra.mxu3 %v4037_v41  ;;  %v4071_v41 = vld [vmem:[#allocation14 + $0x68] sm:$0xf0] }
 0x617   : > { %v2237_v18 = vpack.c.bf16 %v1878_v39, %v1877_v35  ;;  %v3827_v35 = vor.u32 %v4080_v23, %v3826_v33  ;;  %v4079_v39 = vld [vmem:[#allocation14 + $0xac] sm:$0xf]  ;;  %v4069_v33 = vld [vmem:[#allocation14 + $0x58] sm:$0xf0]  ;;  %v3886_v23 = vld [vmem:[#allocation16 + $0x60] sm:$0xf] }
 0x619   : > { %2294 = vmatmul.bf16.vlgmr.msra.gmra.mxu2 %v2237_v18  ;;  %v3828_v18 = vld [vmem:[#allocation14 + $0xb4] sm:$0xf0]  ;;  %2702 = vmatpush.bf16.msra.mxu0 %v3827_v35  ;;  %v4095_v35 = vld [vmem:[#allocation16 + $0x68] sm:$0xf0] }
 0x61a   : > { %2352 = vmatpush.bf16.msra.mxu3 %v4036_v14  ;;  %v3831_v27 = vor.u32 %v4079_v39, %v3828_v18  ;;  %v3778_v39 = vld [vmem:[#allocation14 + $0x48] sm:$0xf]  ;;  %v3887_v18 = vor.u32 %v4095_v35, %v3886_v23  ;;  %v3838_v35 = vld [vmem:[#allocation16] sm:$0xf] }
 0x61c   : > { %2720 = vmatpush.bf16.msrb.mxu2 %v3831_v27  ;;  %v4068_v27 = vld [vmem:[#allocation14 + $0x50] sm:$0xf0] }
 0x61e   : > { %2353 = vmatpush.bf16.msra.mxu3 %v4035_v29  ;;  %v3791_v29 = vor.u32 %v4071_v41, %v3790_v32  ;;  %v4060_v32 = vld [vmem:[#allocation14 + $0x10] sm:$0xf0]  ;;  %v3850_v41 = vld [vmem:[#allocation16 + $0x18] sm:$0xf] }
 0x622   : > { %2354 = vmatpush.bf16.msra.mxu3 %v4034_v62  ;;  %v4070_v62 = vld [vmem:[#allocation14 + $0x64] sm:$0xf] }
 0x626   : > { %2355 = vmatpush.bf16.msra.mxu3 %v4033_v7  ;;  %v3792_v7 = vld [vmem:[#allocation14 + $0x6c] sm:$0xf0] }
 0x627   : > { %v3795_v55 = vor.u32 %v4070_v62, %v3792_v7  ;;  %v3742_v62 = vld [vmem:[#allocation14] sm:$0xf]  ;;  %v4059_v7 = vld [vmem:[#allocation14 + $0x8] sm:$0xf0] }
 0x628   : > { %v1769_v30 = vpop.permute.xlu0 %1768 }
 0x629   : > { %v5310_v37 = vmul.f32 %v4252_v25, %v1769_v30  ;;  %v4077_v25 = vld [vmem:[#allocation14 + $0x98] sm:$0xf0]  ;;  %v3923_v30 = vor.u32 %v4104_v50, %v3922_v49  ;;  %v3779_v49 = vor.u32 %v4068_v27, %v3778_v39  ;;  %v3774_v50 = vld [vmem:[#allocation14 + $0x38] sm:$0xf]  ;;  %v4083_v39 = vld [vmem:[#allocation16 + $0x8] sm:$0xf0] }
 0x62a   : > { %2738 = vmatpush.bf16.msrb.mxu3 %v3835_v38  ;;  %v3815_v47 = vor.u32 %v4077_v25, %v3814_v4  ;;  %v3787_v38 = vor.u32 %v4069_v33, %v3786_v40  ;;  %v4066_v4 = vld [vmem:[#allocation14 + $0x40] sm:$0xf0]  ;;  %v3874_v25 = vld [vmem:[#allocation16 + $0x48] sm:$0xf]  ;;  %v3743_v40 = vor.u32 %v4059_v7, %v3742_v62  ;;  %v3839_v27 = vor.u32 %v4083_v39, %v3838_v35  ;;  %v4096_v62 = vld [vmem:[#allocation16 + $0x70] sm:$0xf0] }
 0x62b   : > { %1887 = vperm.xlu2 %4227, %v5310_v37   ;;  %v4058_v33 = vld [vmem:[#allocation14 + $0x4] sm:$0xf]  ;;  %v4091_v35 = vld [vmem:[#allocation16 + $0x4c] sm:$0xf]  ;;  %v3876_v39 = vld [vmem:[#allocation16 + $0x54] sm:$0xf0] }
 0x62c   : > { %2703 = vmatpush.bf16.msra.mxu0 %v3815_v47  ;;  %v4092_v47 = vld [vmem:[#allocation16 + $0x50] sm:$0xf0] }
 0x62e   : > { %2739 = vmatpush.bf16.msrb.mxu3 %v3823_v24  ;;  %v3783_v24 = vor.u32 %v4067_v52, %v3780_v45  ;;  %v4113_v52 = vld [vmem:[#allocation20 + $0x38] sm:$0xff]  ;;  %v4103_v45 = vld [vmem:[#allocation16 + $0xac] sm:$0xf] }
 0x630   : > { %v1771_v63 = vpop.permute.xlu0 %1770 }
 0x631   : > { %v5313_v53 = vmul.f32 %v4254_v9, %v1771_v63  ;;  %v3816_v9 = vld [vmem:[#allocation14 + $0x9c] sm:$0xf0] }
 0x632   : > { %v3819_v63 = vor.u32 %v4076_v58, %v3816_v9  ;;  %2740 = vmatpush.bf16.msrb.mxu3 %v3811_v15  ;;  %v3766_v58 = vld [vmem:[#allocation14 + $0x30] sm:$0xf]  ;;  %v4065_v9 = vld [vmem:[#allocation14 + $0x38] sm:$0xf0] }
 0x633   : > { %1892 = vperm.xlu0 %4228, %v5313_v53   ;;  %v3767_v11 = vor.u32 %v4065_v9, %v3766_v58  ;;  %v3912_v58 = vld [vmem:[#allocation16 + $0x9c] sm:$0xf0] }
 0x634   : > { %2721 = vmatpush.bf16.msrb.mxu2 %v3819_v63  ;;  %v3875_v63 = vor.u32 %v4092_v47, %v3874_v25  ;;  %v4100_v47 = vld [vmem:[#allocation16 + $0x94] sm:$0xf] }
 0x635   : > { %v3915_v9 = vor.u32 %v4100_v47, %v3912_v58  ;;  %v3870_v47 = vld [vmem:[#allocation16 + $0x38] sm:$0xf]  ;;  %v4090_v58 = vld [vmem:[#allocation16 + $0x40] sm:$0xf0] }
 0x64f   : > { %v2114_v28 = vpop.f32.mrf.mxu0 }
 0x657   : > { %v2116_v36 = vpop.f32.mrf.mxu0 }
 0x658   : > { %v2135_v20 = vpack.c.bf16 %v2116_v36, %v2114_v28  ;;  %v4074_v28 = vld [vmem:[#allocation14 + $0x80] sm:$0xf0]  ;;  %v3911_v36 = vor.u32 %v4101_v22, %v3910_v17  ;;  %v3768_v17 = vld [vmem:[#allocation14 + $0x3c] sm:$0xf0] }
 0x659   : > { %v3771_v15 = vor.u32 %v4064_v34, %v3768_v17  ;;  %v3762_v22 = vld [vmem:[#allocation14 + $0x20] sm:$0xf]  ;;  %v4102_v34 = vld [vmem:[#allocation16 + $0xa0] sm:$0xf0] }
 0x65a   : > { %2196 = vmatmul.bf16.vlgmr.msrb.gmra.mxu1 %v2135_v20  ;;  %v3803_v20 = vor.u32 %v4074_v28, %v3802_v8  ;;  %v4063_v8 = vld [vmem:[#allocation14 + $0x28] sm:$0xf0]  ;;  %v3862_v28 = vld [vmem:[#allocation16 + $0x30] sm:$0xf] }
 0x65b   : > { %2924 = vmatpush.bf16.msrb.mxu1 %v3923_v30  ;;  %v3775_v30 = vor.u32 %v4066_v4, %v3774_v50  ;;  %v4105_v50 = vld [vmem:[#allocation16 + $0xb8] sm:$0xf0] }
 0x65c   : > { %2704 = vmatpush.bf16.msra.mxu0 %v3803_v20  ;;  %v4089_v20 = vld [vmem:[#allocation16 + $0x38] sm:$0xf0] }
 0x65f   : > { %v2432_v10 = vpop.f32.mrf.mxu0  ;;  %2925 = vmatpush.bf16.msrb.mxu1 %v3911_v36  ;;  %v3763_v36 = vor.u32 %v4063_v8, %v3762_v22  ;;  %v3900_v22 = vld [vmem:[#allocation16 + $0x84] sm:$0xf0] }
 0x660   : > { %2705 = vmatpush.bf16.msra.mxu0 %v3791_v29  ;;  %v4086_v29 = vld [vmem:[#allocation16 + $0x20] sm:$0xf0] }
 0x664   : > { %2706 = vmatpush.bf16.msra.mxu0 %v3779_v49  ;;  %v3924_v49 = vld [vmem:[#allocation16 + $0xb4] sm:$0xf0] }
 0x665   : > { %v3927_v4 = vor.u32 %v4103_v45, %v3924_v49  ;;  %v4088_v45 = vld [vmem:[#allocation16 + $0x34] sm:$0xf]  ;;  %v3864_v49 = vld [vmem:[#allocation16 + $0x3c] sm:$0xf0] }
 0x667   : > { %v2434_v19 = vpop.f32.mrf.mxu0 }
 0x668   : > { %v2457_v48 = vpack.c.bf16 %v2434_v19, %v2432_v10  ;;  %v4073_v10 = vld [vmem:[#allocation14 + $0x7c] sm:$0xf]  ;;  %v3804_v19 = vld [vmem:[#allocation14 + $0x84] sm:$0xf0]  ;;  %2707 = vmatpush.bf16.msra.mxu0 %v3767_v11  ;;  %v3918_v11 = vld [vmem:[#allocation16 + $0x98] sm:$0xf] }
 0x669   : > { %v3919_v8 = vor.u32 %v4102_v34, %v3918_v11  ;;  %v3852_v11 = vld [vmem:[#allocation16 + $0x24] sm:$0xf0] }
 0x66a   : > { %2519 = vmatmul.bf16.vlgmr.msra.gmra.mxu1 %v2457_v48  ;;  %v3807_v48 = vor.u32 %v4073_v10, %v3804_v19  ;;  %v3754_v10 = vld [vmem:[#allocation14 + $0x18] sm:$0xf]  ;;  %v4062_v19 = vld [vmem:[#allocation14 + $0x20] sm:$0xf0] }
 0x66c   : > { %2722 = vmatpush.bf16.msrb.mxu2 %v3807_v48  ;;  %v3863_v48 = vor.u32 %v4089_v20, %v3862_v28 }
 0x66f   : > { %v2437_v26 = vpop.f32.mrf.mxu0 }
 0x670   : > { %v2458_v57 = vpack.c.bf16 %v2437_v26, %v2437_v26  ;;  %v3798_v26 = vld [vmem:[#allocation14 + $0x68] sm:$0xf]  ;;  %2723 = vmatpush.bf16.msrb.mxu2 %v3795_v55  ;;  %v3851_v55 = vor.u32 %v4086_v29, %v3850_v41 }
 0x671   : > { %v3894_v29 = vld [vmem:[#allocation16 + $0x68] sm:$0xf] }
 0x672   : > { %v3895_v7 = vor.u32 %v4096_v62, %v3894_v29  ;;  %v4116_v62 = vld [vmem:[#allocation22 + $0x10] sm:$0xff] }
 0x674   : > { %2724 = vmatpush.bf16.msrb.mxu2 %v3783_v24  ;;  %v3930_v24 = vld [vmem:[#allocation16 + $0xb0] sm:$0xf] }
 0x675   : > { %v3931_v25 = vor.u32 %v4105_v50, %v3930_v24  ;;  %v4119_v50 = vld [vmem:[#allocation22 + $0x28] sm:$0xff] }
 0x677   : > { %v2439_v12 = vpop.f32.mrf.mxu0 }
 0x678   : > { %v3898_v12 = vld [vmem:[#allocation16 + $0x78] sm:$0xf]  ;;  %2725 = vmatpush.bf16.msrb.mxu2 %v3771_v15  ;;  %v4097_v15 = vld [vmem:[#allocation16 + $0x7c] sm:$0xf] }
 0x679   : > { %v3899_v14 = vor.u32 %v4098_v21, %v3898_v12  ;;  %v3756_v12 = vld [vmem:[#allocation14 + $0x24] sm:$0xf0]  ;;  %v3903_v20 = vor.u32 %v4097_v15, %v3900_v22 }
 0x67a   : > { %2524 = vmatmul.bf16.gmra.mxu1 %v2458_v57  ;;  %v4072_v57 = vld [vmem:[#allocation14 + $0x70] sm:$0xf0]  ;;  %v3750_v21 = vld [vmem:[#allocation14 + $0x8] sm:$0xf] }
 0x67b   : > { %v3799_v56 = vor.u32 %v4072_v57, %v3798_v26  ;;  %2926 = vmatpush.bf16.msrb.mxu1 %v3899_v14  ;;  %v3755_v26 = vor.u32 %v4062_v19, %v3754_v10  ;;  %v4061_v57 = vld [vmem:[#allocation14 + $0x1c] sm:$0xf]  ;;  %v3751_v14 = vor.u32 %v4060_v32, %v3750_v21  ;;  %v3906_v19 = vld [vmem:[#allocation16 + $0x80] sm:$0xf]  ;;  %v3888_v21 = vld [vmem:[#allocation16 + $0x6c] sm:$0xf0] }
 0x67c   : > { %v4121_v32 = vld [vmem:[#allocation22 + $0x38] sm:$0xff] }
 0x67d   : > { %2741 = vmatpush.bf16.msrb.mxu3 %v3799_v56  ;;  %v3759_v56 = vor.u32 %v4061_v57, %v3756_v12  ;;  %2708 = vmatpush.bf16.msra.mxu0 %v3755_v26 }
 0x67f   : > { %2927 = vmatpush.bf16.msrb.mxu1 %v3887_v18  ;;  %2726 = vmatpush.bf16.msrb.mxu2 %v3759_v56  ;;  %v4094_v56 = vld [vmem:[#allocation16 + $0x64] sm:$0xf] }
 0x680   : > { %v3891_v41 = vor.u32 %v4094_v56, %v3888_v21  ;;  %v3846_v21 = vld [vmem:[#allocation16 + $0x8] sm:$0xf] }
 0x681   : > { %2742 = vmatpush.bf16.msrb.mxu3 %v3787_v38  ;;  %v3744_v38 = vld [vmem:[#allocation14 + $0xc] sm:$0xf0]  ;;  %2709 = vmatpush.bf16.msra.mxu0 %v3743_v40 }
 0x682   : > { %v3747_v23 = vor.u32 %v4058_v33, %v3744_v38  ;;  %v4120_v33 = vld [vmem:[#allocation22 + $0x30] sm:$0xff] }
 0x683   : > { %2928 = vmatpush.bf16.msrb.mxu1 %v3875_v63  ;;  %v4112_v63 = vld [vmem:[#allocation20 + $0x30] sm:$0xff] }
 0x684   : > { %2727 = vmatpush.bf16.msrb.mxu2 %v3747_v23  ;;  %v4236_v38 = vld [vmem:[%s5679_s24] ss:$0 sm:$0xff]  ;;  %v4109_v23 = vld [vmem:[#allocation20 + $0x18] sm:$0xff] }
 0x685   : > { %2743 = vmatpush.bf16.msrb.mxu3 %v3775_v30  ;;  %v4235_v30 = vld [vmem:[%s5678_s2] ss:$0 sm:$0xff]  ;;  %2942 = vmatpush.bf16.msrb.mxu0 %v3927_v4 }
 0x687   : > { %2929 = vmatpush.bf16.msrb.mxu1 %v3863_v48  ;;  %v4099_v48 = vld [vmem:[#allocation16 + $0x88] sm:$0xf0] }
 0x688   : > { %2960 = vmatpush.bf16.msra.mxu2 %v3931_v25  ;;  %v3907_v26 = vor.u32 %v4099_v48, %v3906_v19  ;;  %v4108_v25 = vld [vmem:[#allocation20 + $0x10] sm:$0xff]  ;;  %v4082_v48 = vld [vmem:[#allocation16 + $0x4] sm:$0xf] }
 0x689   : > { %2744 = vmatpush.bf16.msrb.mxu3 %v3763_v36  ;;  %v4111_v36 = vld [vmem:[#allocation20 + $0x28] sm:$0xff]  ;;  %2943 = vmatpush.bf16.msrb.mxu0 %v3915_v9  ;;  %v3871_v9 = vor.u32 %v4090_v58, %v3870_v47 }
 0x68b   : > { %2930 = vmatpush.bf16.msrb.mxu1 %v3851_v55  ;;  %v4110_v55 = vld [vmem:[#allocation20 + $0x20] sm:$0xff] }
 0x68c   : > { %2961 = vmatpush.bf16.msra.mxu2 %v3919_v8  ;;  %v4107_v8 = vld [vmem:[#allocation20 + $0x8] sm:$0xff] }
 0x68d   : > { %2745 = vmatpush.bf16.msrb.mxu3 %v3751_v14  ;;  %2944 = vmatpush.bf16.msrb.mxu0 %v3903_v20  ;;  %v4087_v20 = vld [vmem:[#allocation16 + $0x28] sm:$0xf0] }
 0x68f   : > { %2931 = vmatpush.bf16.msrb.mxu1 %v3839_v27  ;;  %v4093_v27 = vld [vmem:[#allocation16 + $0x58] sm:$0xf0] }
 0x690   : > { %2962 = vmatpush.bf16.msra.mxu2 %v3907_v26  ;;  %v3840_v26 = vld [vmem:[#allocation16 + $0xc] sm:$0xf0] }
 0x691   : > { %2945 = vmatpush.bf16.msrb.mxu0 %v3891_v41  ;;  %v3843_v56 = vor.u32 %v4082_v48, %v3840_v26 }
 0x692   : > { %2932 = vmatmul.bf16.vlgmr.msrb.gmra.mxu1 %v5261_v44 }
 0x693   : > { %3267 = vmatpush.bf16.msra.mxu1 %v4113_v52  ;;  %v3879_v52 = vor.u32 %v4091_v35, %v3876_v39  ;;  %v1888_v39 = vpop.permute.xlu2 %1887 }
 0x694   : > { %2963 = vmatpush.bf16.msra.mxu2 %v3895_v7 }
 0x695   : > { %2946 = vmatpush.bf16.msrb.mxu0 %v3879_v52 }
 0x697   : > { %3268 = vmatpush.bf16.msra.mxu1 %v4112_v63  ;;  %v4085_v63 = vld [vmem:[#allocation16 + $0x1c] sm:$0xf] }
 0x69b   : > { %3269 = vmatpush.bf16.msra.mxu1 %v4111_v36  ;;  %v3858_v36 = vld [vmem:[#allocation16 + $0x20] sm:$0xf] }
 0x69f   : > { %3270 = vmatpush.bf16.msra.mxu1 %v4110_v55  ;;  %v4115_v55 = vld [vmem:[#allocation22 + $0x8] sm:$0xff] }
 0x6a2   : > { %2937 = vmatmul.bf16.gmra.mxu1 %v5264_v31 }
 0x6a3   : > { %3271 = vmatpush.bf16.msra.mxu1 %v4109_v23 }
 0x6a7   : > { %3272 = vmatpush.bf16.msra.mxu1 %v4108_v25 }
 0x6ab   : > { %3273 = vmatpush.bf16.msra.mxu1 %v4107_v8 }
 0x6d7   : > { %v2197_v18 = vpop.f32.mrf.mxu1 }
 0x6d8   : > { %v2198_v17 = vadd.f32 %v4235_v30, %v2197_v18  ;;  %v3882_v18 = vld [vmem:[#allocation16 + $0x50] sm:$0xf] }
 0x6d9   : > { %v3883_v24 = vor.u32 %v4093_v27, %v3882_v18  ;;  %v4233_v18 = vld [vmem:[%s5680_s23] ss:$0 sm:$0xff]  ;;  %v1883_v27 = vpop.permute.xlu1 %1882 }
 0x6da   : > { %v2202_v57 = vmax.f32 %v2198_v17, 0.0  ;;  %v4118_v17 = vld [vmem:[#allocation22 + $0x20] sm:$0xff]  ;;  %v1899_v52 = vmul.f32 %v4233_v18, %v1888_v39 }
 0x6db   : > { %2964 = vmatpush.bf16.msra.mxu2 %v3883_v24 }
 0x6df   : > { %v2199_v28 = vpop.f32.mrf.mxu1  ;;  %2965 = vmatpush.bf16.msra.mxu2 %v3871_v9 }
 0x6e0   : > { %v2200_v10 = vadd.f32 %v4235_v30, %v2199_v28  ;;  %v3867_v30 = vor.u32 %v4088_v45, %v3864_v49  ;;  %v3855_v28 = vor.u32 %v4085_v63, %v3852_v11  ;;  %v4234_v45 = vld [vmem:[%s5681_s17] ss:$0 sm:$0xff]  ;;  %v1898_v49 = vmul.f32 %v4233_v18, %v1883_v27 }
 0x6e2   : > { %v2203_v12 = vmax.f32 %v2200_v10, 0.0  ;;  %2947 = vmatpush.bf16.msrb.mxu0 %v3867_v30  ;;  %v3859_v10 = vor.u32 %v4087_v20, %v3858_v36  ;;  %v1905_v24 = vadd.f32 %v4234_v45, %v1898_v49  ;;  %v1893_v30 = vpop.permute.xlu0 %1892  ;;  %v5328_v36 = vld [vmem:[%s5683_s7] sm:$0x7] }
 0x6e3   : > { %v1900_v47 = vmul.f32 %v4233_v18, %v1893_v30  ;;  %v5331_v20 = vld [vmem:[%s5684_s1] sm:$0x7] }
 0x6e4   : > { %v2220_v14 = vpack.c.bf16 %v2203_v12, %v2202_v57  ;;  %v4117_v57 = vld [vmem:[#allocation22 + $0x18] sm:$0xff]  ;;  %2966 = vmatpush.bf16.msra.mxu2 %v3859_v10  ;;  %v2568_v48 = vperm.slane %v5331_v20, 0 }
 0x6e5   : > { %v1907_v58 = vadd.f32 %v4234_v45, %v1900_v47 }
 0x6e6   : > { %2356 = vmatmul.bf16.vlgmr.msra.gmra.mxu3 %v2220_v14  ;;  %2948 = vmatpush.bf16.msrb.mxu0 %v3855_v28  ;;  %v4106_v14 = vld [vmem:[#allocation20] sm:$0xff] }
 0x6e7   : > { %v2520_v40 = vpop.f32.mrf.mxu1  ;;  %3201 = vmatpush.bf16.msra.mxu3 %v4121_v32  ;;  %v4084_v32 = vld [vmem:[#allocation16 + $0x10] sm:$0xf0]  ;;  %3274 = vmatpush.bf16.msra.mxu1 %v4106_v14  ;;  %v1910_v9 = vmax.f32 %v1907_v58, 0.0 }
 0x6e8   : > { %v2521_v4 = vadd.f32 %v4236_v38, %v2520_v40  ;;  %v3847_v41 = vor.u32 %v4084_v32, %v3846_v21 }
 0x6e9   : > { %v3152_v63 = vpack.c.bf16 %v1910_v9, %v1910_v9 }
 0x6ea   : > { %v2529_v15 = vmax.f32 %v2521_v4, 0.0  ;;  %2949 = vmatpush.bf16.msrb.mxu0 %v3843_v56  ;;  %2967 = vmatpush.bf16.msra.mxu2 %v3847_v41  ;;  %v1908_v4 = vmax.f32 %v1905_v24, 0.0 }
 0x6eb   : > { %3202 = vmatpush.bf16.msra.mxu3 %v4120_v33  ;;  %v4114_v33 = vld [vmem:[#allocation22] sm:$0xff] }
 0x6ef   : > { %v2522_v34 = vpop.f32.mrf.mxu1  ;;  %3203 = vmatpush.bf16.msra.mxu3 %v4119_v50 }
 0x6f0   : > { %v2523_v22 = vadd.f32 %v4236_v38, %v2522_v34 }
 0x6f2   : > { %v2530_v19 = vmax.f32 %v2523_v22, 0.0 }
 0x6f3   : > { %3204 = vmatpush.bf16.msra.mxu3 %v4118_v17  ;;  %v2295_v17 = vpop.f32.mrf.mxu2 }
 0x6f4   : > { %v2564_v12 = vpack.c.bf16 %v2530_v19, %v2529_v15  ;;  %v4237_v15 = vld [vmem:[%s5682_s13] ss:$0 sm:$0xff]  ;;  %v2790_v19 = vperm.slane %v5328_v36, 0 }
 0x6f6   : > { %2746 = vmatmul.bf16.vlgmr.msrb.gmra.mxu3 %v2564_v12  ;;  %2710 = vmatmul.bf16.vlgmr.msra.gmra.mxu0 %v2564_v12 }
 0x6f7   : > { %v2525_v29 = vpop.f32.mrf.mxu1  ;;  %3205 = vmatpush.bf16.msra.mxu3 %v4117_v57  ;;  %2728 = vmatmul.bf16.vlgmr.msrb.gmra.mxu2 %v2564_v12 }
 0x6f8   : > { %v2526_v7 = vadd.f32 %v4236_v38, %v2525_v29  ;;  %3275 = vmatmul.bf16.vlgmr.msra.gmra.mxu1 %v2564_v12  ;;  %v1906_v38 = vadd.f32 %v4234_v45, %v1899_v52 }
 0x6fa   : > { %v2531_v40 = vmax.f32 %v2526_v7, 0.0  ;;  %v1909_v50 = vmax.f32 %v1906_v38, 0.0 }
 0x6fb   : > { %3206 = vmatpush.bf16.msra.mxu3 %v4116_v62  ;;  %v2297_v26 = vpop.f32.mrf.mxu2 }
 0x6fc   : > { %v2565_v35 = vpack.c.bf16 %v2531_v40, %v2531_v40  ;;  %v3151_v25 = vpack.c.bf16 %v1909_v50, %v1908_v4 }
 0x6ff   : > { %3207 = vmatpush.bf16.msra.mxu3 %v4115_v55  ;;  %v2527_v23 = vpop.f32.mrf.mxu1 }
 0x703   : > { %3208 = vmatpush.bf16.msra.mxu3 %v4114_v33 }
 0x706   : > { %2751 = vmatmul.bf16.gmra.mxu3 %v2565_v35  ;;  %2715 = vmatmul.bf16.gmra.mxu0 %v2565_v35 }
 0x707   : > { %2733 = vmatmul.bf16.gmra.mxu2 %v2565_v35 }
 0x708   : > { %3280 = vmatmul.bf16.gmra.mxu1 %v2565_v35 }
 0x70f   : > { %v2933_v11 = vpop.f32.mrf.mxu1 }
 0x710   : > { %v2934_v12 = vadd.f32 %v2933_v11, %v2790_v19 }
 0x716   : > { %3209 = vmatmul.bf16.vlgmr.msra.gmra.mxu3 %v3151_v25  ;;  %2950 = vmatmul.bf16.vlgmr.msrb.gmra.mxu0 %v5261_v44 }
 0x717   : > { %2968 = vmatmul.bf16.vlgmr.msra.gmra.mxu2 %v5261_v44  ;;  %v2935_v34 = vpop.f32.mrf.mxu1 }
 0x718   : > { %v2936_v33 = vadd.f32 %v2935_v34, %v2790_v19 }
 0x71f   : > { %v2938_v28 = vpop.f32.mrf.mxu1 }
 0x726   : > { %3214 = vmatmul.bf16.gmra.mxu3 %v3152_v63  ;;  %2955 = vmatmul.bf16.gmra.mxu0 %v5264_v31 }
 0x727   : > { %2973 = vmatmul.bf16.gmra.mxu2 %v5264_v31  ;;  %v2940_v56 = vpop.f32.mrf.mxu1 }
 0x769   : > { %v2357_v22 = vpop.f32.mrf.mxu3 }
 0x76a   : > { %v2358_v8 = vadd.f32 %v2357_v22, %v2295_v17  ;;  %v2939_v17 = vadd.f32 %v2938_v28, %v2790_v19 }
 0x76c   : > { %v2366_v44 = vadd.f32 %v4237_v15, %v2358_v8 }
 0x76e   : > { %v3700_v10 = vmul.f32 -1.442695, %v2366_v44 }
 0x770   : > { %4255 = vpow2.f32 %v3700_v10 }
 0x771   : > { %v2359_v31 = vpop.f32.mrf.mxu3 }
 0x772   : > { %v2360_v57 = vadd.f32 %v2359_v31, %v2297_v26 }
 0x773   : > { %v2711_v21 = vpop.f32.mrf.mxu0 }
 0x774   : > { %v2367_v32 = vadd.f32 %v4237_v15, %v2360_v57  ;;  %v2712_v41 = vadd.f32 %v2711_v21, %v2568_v48 }
 0x775   : > { %v5337_v23 = vpop.f32.mrf.mxu1 }
 0x776   : > { %v4256_v14 = vpop.eup %4255  ;;  %v3701_v29 = vmul.f32 -1.442695, %v2367_v32  ;;  %v2978_v62 = vadd.f32 %v2934_v12, %v2712_v41 }
 0x777   : > { %v2374_v7 = vadd.f32 1.0, %v4256_v14 }
 0x778   : > { %4257 = vpow2.f32 %v3701_v29  ;;  %v3932_v55 = vmul.f32 -1.442695, %v2978_v62 }
 0x779   : > { %4259 = vrcp.f32 %v2374_v7  ;;  %v5335_v40 = vpop.f32.mrf.mxu3  ;;  %v2387_v58 = vand.u32 2147483648, %v2374_v7  ;;  %v2385_v34 = vand.u32 2147483647, %v2374_v7  ;;  %vm2381_vm1 = vweird.f32 %v2374_v7 }
 0x77a   : > { %4261 = vpow2.f32 %v3932_v55  ;;  %v5339_v35 = vpop.f32.mrf.mxu2  ;;  %v5366_v55 = vperm.slane %v5331_v20, 1 }
 0x77b   : > { %v2713_v39 = vpop.f32.mrf.mxu0  ;;  %v2388_v8 = vor.u32 1.1754944e-38, %v2387_v58  ;;  %vm2386_vm3 = vcmp.eq.f32.partialorder %v2385_v34, 8.507059e+37 }
 0x77c   : > { %v2714_v18 = vadd.f32 %v2713_v39, %v2568_v48 }
 0x77d   : > { %v5347_v63 = vpop.f32.mrf.mxu1 }
 0x77e   : > { %v4258_v27 = vpop.eup %4257  ;;  %v2979_v52 = vadd.f32 %v2936_v33, %v2714_v18  ;;  %v1116_v33 = vld [vmem:[#allocation6 + $0x8] sm:$0xff] }
 0x77f   : > { %v4260_v45 = vpop.eup %4259  ;;  %v2375_v49 = vadd.f32 1.0, %v4258_v27  ;;  %v3395_v18 = vmul.f32 %v1116_v33, %v4988_v61 }
 0x780   : > { %v4262_v38 = vpop.eup %4261  ;;  %v2377_v24 = vmul.f32 %v4260_v45, %v2374_v7  ;;  %v3933_v50 = vmul.f32 -1.442695, %v2979_v52  ;;  %vm2382_vm15 = vweird.f32 %v4260_v45 }
 0x781   : > { %4263 = vrcp.f32 %v2375_v49  ;;  %v5341_v4 = vpop.f32.mrf.mxu3  ;;  %v5343_v25 = vadd.f32 1.0, %v4262_v38  ;;  %vm2383_vm2 = vmor %vm2381_vm1, %vm2382_vm15  ;;  %v2402_v41 = vand.u32 2147483648, %v2375_v49  ;;  %v2400_v62 = vand.u32 2147483647, %v2375_v49 }
 0x782   : > { %v2378_v30 = vsub.f32 1.0, %v2377_v24  ;;  %4265 = vpow2.f32 %v3933_v50  ;;  %v5345_v47 = vpop.f32.mrf.mxu2  ;;  %vm2396_vm12 = vweird.f32 %v2375_v49  ;;  %v5374_v24 = vperm.slane %v5328_v36, 1 }
 0x783   : > { %v2716_v9 = vpop.f32.mrf.mxu0  ;;  %4267 = vrcp.f32 %v5343_v25  ;;  %v2403_v52 = vor.u32 1.1754944e-38, %v2402_v41  ;;  %vm2401_vm14 = vcmp.eq.f32.partialorder %v2400_v62, 8.507059e+37  ;;  %vm2998_vm15 = vweird.f32 %v5343_v25 }
 0x784   : > { %v2379_v11 = vmul.f32 %v4260_v45, %v2378_v30  ;;  %v2717_v31 = vadd.f32 %v2716_v9, %v2568_v48  ;;  %v2730_v9 = vadd.f32 %v5339_v35, %v5366_v55  ;;  %v3004_v62 = vand.u32 2147483648, %v5343_v25 }
 0x785   : > { %v5363_v48 = vpop.f32.mrf.mxu1  ;;  %v2732_v33 = vadd.f32 %v5345_v47, %v5366_v55 }
 0x786   : > { %v2380_v15 = vadd.f32 %v4260_v45, %v2379_v11  ;;  %v2980_v19 = vadd.f32 %v2939_v17, %v2717_v31 }
 0x787   : > { %v4264_v22 = vpop.eup %4263 }
 0x788   : > { %v4266_v44 = vpop.eup %4265  ;;  %v2384_v10 = vsel %vm2383_vm2, %v4260_v45, %v2380_v15  ;;  %v2392_v26 = vmul.f32 %v4264_v22, %v2375_v49  ;;  %vm2397_vm11 = vweird.f32 %v4264_v22  ;;  %v3934_v7 = vmul.f32 -1.442695, %v2980_v19  ;;  %v5371_v45 = vld [vmem:[#allocation7 + $0x8] sm:$0xff] }
 0x789   : > { %v5350_v57 = vpop.f32.mrf.mxu3  ;;  %v5352_v12 = vsel %vm2386_vm3, %v2388_v8, %v2384_v10  ;;  %v5354_v56 = vadd.f32 1.0, %v4266_v44  ;;  %v5360_v32 = vpop.eup %4267  ;;  %vm2398_vm13 = vmor %vm2396_vm12, %vm2397_vm11  ;;  %v5377_v49 = vadd.f32 %v3395_v18, %v5371_v45 }
 0x78a   : > { %3374 = vrot.lane.b32.xlu1 %v5352_v12, %s4601_s16  ;;  %v2393_v28 = vsub.f32 1.0, %v2392_v26  ;;  %v5358_v21 = vpop.f32.mrf.mxu2  ;;  %v2994_v27 = vmul.f32 %v5360_v32, %v5343_v25  ;;  %vm2999_vm1 = vweird.f32 %v5360_v32 }
 0x78b   : > { %4269 = vrcp.f32 %v5354_v56  ;;  %v2718_v14 = vpop.f32.mrf.mxu0  ;;  %v5389_v11 = vmax.f32 %v5377_v49, %v5371_v45  ;;  %vm5420_vm2 = vmor %vm2998_vm15, %vm2999_vm1  ;;  %vm3013_vm11 = vweird.f32 %v5354_v56 }
 0x78c   : > { %v2394_v29 = vmul.f32 %v4264_v22, %v2393_v28  ;;  %4271 = vpow2.f32 %v3934_v7  ;;  %v2995_v17 = vsub.f32 1.0, %v2994_v27  ;;  %v5403_v28 = vld [vmem:[%s4768_s14] ss:$0 sm:$0xff]  ;;  %v1115_v27 = vld [vmem:[#allocation6] sm:$0xff] }
 0x78d   : > { %3436 = vst.msk [vmem:[#allocation7 + $0x8] sm:$0xff] %vm330_vm0, %v5389_v11  ;;  %3452 = vrot.lane.b32.xlu0 %v5389_v11, %s4602_s28 }
 0x78e   : > { %v2395_v39 = vadd.f32 %v4264_v22, %v2394_v29  ;;  %v2996_v31 = vmul.f32 %v5360_v32, %v2995_v17  ;;  %v3002_v29 = vand.u32 2147483647, %v5343_v25  ;;  %v5428_v17 = vperm.slane %v5328_v36, 2 }
 0x78f   : > { %v3005_v25 = vor.u32 1.1754944e-38, %v3004_v62 }
 0x790   : > { %v2399_v38 = vsel %vm2398_vm13, %v4264_v22, %v2395_v39  ;;  %v3283_v22 = vpop.f32.mrf.mxu1  ;;  %v2997_v18 = vadd.f32 %v5360_v32, %v2996_v31  ;;  %vm5433_vm3 = vcmp.eq.f32.partialorder %v3002_v29, 8.507059e+37  ;;  %v3017_v31 = vand.u32 2147483647, %v5354_v56 }
 0x791   : > { %v5379_v50 = vpop.eup %4269  ;;  %v2754_v30 = vpop.f32.mrf.mxu3  ;;  %v5381_v58 = vsel %vm2401_vm14, %v2403_v52, %v2399_v38  ;;  %v5413_v52 = vld [vmem:[#allocation7] sm:$0xff]  ;;  %v5416_v38 = vperm.slane %v5331_v20, 2 }
 0x792   : > { %3376 = vrot.lane.b32.xlu2 %v5381_v58, %s4601_s16  ;;  %v2736_v34 = vpop.f32.mrf.mxu2  ;;  %v4272_v8 = vpop.eup %4271  ;;  %v3009_v35 = vmul.f32 %v5379_v50, %v5354_v56  ;;  %v3001_v36 = vsel %vm5420_vm2, %v5360_v32, %v2997_v18  ;;  %vm3014_vm12 = vweird.f32 %v5379_v50  ;;  %vm3018_vm14 = vcmp.eq.f32.partialorder %v3017_v31, 8.507059e+37 }
 0x793   : > { %v2951_v15 = vpop.f32.mrf.mxu0  ;;  %v5398_v10 = vadd.f32 1.0, %v4272_v8  ;;  %v3006_v18 = vsel %vm5433_vm3, %v3005_v25, %v3001_v36  ;;  %vm5467_vm13 = vmor %vm3013_vm11, %vm3014_vm12 }
 0x794   : > { %v2952_v44 = vadd.f32 %v2951_v15, %v5374_v24  ;;  %v3010_v41 = vsub.f32 1.0, %v3009_v35 }
 0x795   : > { %4273 = vrcp.f32 %v5398_v10  ;;  %vm3028_vm15 = vweird.f32 %v5398_v10 }
 0x796   : > { %v3038_v26 = vadd.f32 %v2952_v44, %v2730_v9  ;;  %v3011_v15 = vmul.f32 %v5379_v50, %v3010_v41  ;;  %v2735_v9 = vadd.f32 %v5358_v21, %v5366_v55 }
 0x798   : > { %v3935_v19 = vmul.f32 -1.442695, %v3038_v26  ;;  %v3012_v32 = vadd.f32 %v5379_v50, %v3011_v15 }
 0x799   : > { %v3210_v14 = vpop.f32.mrf.mxu3 }
 0x79a   : > { %v3277_v7 = vadd.f32 %v5337_v23, %v3210_v14  ;;  %4275 = vpow2.f32 %v3935_v19  ;;  %v2969_v39 = vpop.f32.mrf.mxu2  ;;  %v3394_v23 = vmul.f32 %v1115_v27, %v5035_v60  ;;  %v3019_v19 = vand.u32 2147483648, %v5354_v56 }
 0x79b   : > { %v2953_v30 = vpop.f32.mrf.mxu0  ;;  %v5431_v20 = vpop.eup %4273  ;;  %v2970_v62 = vadd.f32 %v2969_v39, %v5428_v17  ;;  %v2748_v27 = vadd.f32 %v5335_v40, %v5416_v38  ;;  %v3016_v40 = vsel %vm5467_vm13, %v5379_v50, %v3012_v32  ;;  %v2750_v32 = vadd.f32 %v5341_v4, %v5416_v38  ;;  %v4305_v4 = vld [vmem:[#allocation8 + $0x10] sm:$0xff] }
 0x79c   : > { %v3289_v47 = vadd.f32 %v5403_v28, %v3277_v7  ;;  %v2954_v34 = vadd.f32 %v2953_v30, %v5374_v24  ;;  %v5438_v8 = vadd.f32 %v3394_v23, %v5413_v52  ;;  %v3024_v41 = vmul.f32 %v5431_v20, %v5398_v10 }
 0x79d   : > { %v3098_v22 = vmul.f32 %v3006_v18, %v2970_v62  ;;  %vm3029_vm1 = vweird.f32 %v5431_v20 }
 0x79e   : > { %v4002_v44 = vmul.f32 -1.442695, %v3289_v47  ;;  %v3039_v35 = vadd.f32 %v2954_v34, %v2732_v33  ;;  %v5447_v26 = vmax.f32 %v5438_v8, %v5413_v52  ;;  %v3020_v47 = vor.u32 1.1754944e-38, %v3019_v19  ;;  %vm5509_vm11 = vmor %vm3028_vm15, %vm3029_vm1 }
 0x79f   : > { %v3025_v56 = vsub.f32 1.0, %v3024_v41 }
 0x7a0   : > { %v4276_v14 = vpop.eup %4275  ;;  %4277 = vpow2.f32 %v4002_v44  ;;  %v3936_v29 = vmul.f32 -1.442695, %v3039_v35  ;;  %3435 = vst.msk [vmem:[#allocation7] sm:$0xff] %vm330_vm0, %v5447_v26  ;;  %3450 = vrot.lane.b32.xlu2 %v5447_v26, %s4602_s28  ;;  %v3021_v36 = vsel %vm3018_vm14, %v3020_v47, %v3016_v40 }
 0x7a1   : > { %v3212_v7 = vpop.f32.mrf.mxu3  ;;  %v5455_v33 = vadd.f32 1.0, %v4276_v14  ;;  %v3026_v31 = vmul.f32 %v5431_v20, %v3025_v56 }
 0x7a2   : > { %v3279_v30 = vadd.f32 %v5347_v63, %v3212_v7  ;;  %4279 = vpow2.f32 %v3936_v29  ;;  %v2971_v23 = vpop.f32.mrf.mxu2  ;;  %v3101_v29 = vadd.f32 %v3098_v22, %v2748_v27  ;;  %v5499_v27 = vadd.f32 %v5350_v57, %v5416_v38 }
 0x7a3   : > { %4281 = vrcp.f32 %v5455_v33  ;;  %v2956_v34 = vpop.f32.mrf.mxu0  ;;  %v2972_v35 = vadd.f32 %v2971_v23, %v5428_v17  ;;  %v3064_v41 = vand.u32 2147483648, %v5455_v33  ;;  %v3062_v14 = vand.u32 2147483647, %v5455_v33 }
 0x7a4   : > { %v3290_v15 = vadd.f32 %v5403_v28, %v3279_v30  ;;  %v2957_v63 = vadd.f32 %v2956_v34, %v5374_v24  ;;  %v3027_v23 = vadd.f32 %v5431_v20, %v3026_v31  ;;  %vm3058_vm2 = vweird.f32 %v5455_v33 }
 0x7a5   : > { %v3065_v57 = vor.u32 1.1754944e-38, %v3064_v41  ;;  %vm5513_vm12 = vcmp.eq.f32.partialorder %v3062_v14, 8.507059e+37  ;;  %v3034_v22 = vand.u32 2147483648, %v5398_v10 }
 0x7a6   : > { %v4278_v25 = vpop.eup %4277  ;;  %v4003_v44 = vmul.f32 -1.442695, %v3290_v15  ;;  %v3040_v21 = vadd.f32 %v2957_v63, %v2735_v9  ;;  %v3099_v9 = vmul.f32 %v3021_v36, %v2972_v35  ;;  %v3031_v35 = vsel %vm5509_vm11, %v5431_v20, %v3027_v23 }
 0x7a7   : > { %v5482_v55 = vadd.f32 1.0, %v4278_v25 }
 0x7a8   : > { %v4280_v19 = vpop.eup %4279  ;;  %4283 = vpow2.f32 %v4003_v44  ;;  %v3937_v39 = vmul.f32 -1.442695, %v3040_v21  ;;  %v3102_v21 = vadd.f32 %v3099_v9, %v2750_v32  ;;  %v3035_v32 = vor.u32 1.1754944e-38, %v3034_v22 }
 0x7a9   : > { %v4282_v50 = vpop.eup %4281  ;;  %4285 = vrcp.f32 %v5482_v55  ;;  %v3215_v24 = vpop.f32.mrf.mxu3  ;;  %v5489_v62 = vadd.f32 1.0, %v4280_v19  ;;  %v3313_v44 = vand.u32 2147483647, %v5482_v55  ;;  %vm3309_vm14 = vweird.f32 %v5482_v55 }
 0x7aa   : > { %v3282_v7 = vadd.f32 %v5363_v48, %v3215_v24  ;;  %v3054_v18 = vmul.f32 %v4282_v50, %v5455_v33  ;;  %v2974_v30 = vpop.f32.mrf.mxu2  ;;  %vm3059_vm3 = vweird.f32 %v4282_v50  ;;  %v3315_v14 = vand.u32 2147483648, %v5482_v55 }
 0x7ab   : > { %4287 = vrcp.f32 %v5489_v62  ;;  %v2958_v47 = vpop.f32.mrf.mxu0  ;;  %vm5521_vm13 = vmor %vm3058_vm2, %vm3059_vm3  ;;  %vm3073_vm15 = vweird.f32 %v5489_v62  ;;  %v3079_v41 = vand.u32 2147483648, %v5489_v62  ;;  %vm5538_vm2 = vcmp.eq.f32.partialorder %v3313_v44, 8.507059e+37 }
 0x7ac   : > { %v3291_v34 = vadd.f32 %v5403_v28, %v3282_v7  ;;  %v3055_v56 = vsub.f32 1.0, %v3054_v18  ;;  %4289 = vtanh.f32 %v3101_v29  ;;  %v3032_v28 = vand.u32 2147483647, %v5398_v10 }
 0x7ad   : > { %4291 = vpow2.f32 %v3937_v39 }
 0x7ae   : > { %v4284_v38 = vpop.eup %4283  ;;  %v4004_v15 = vmul.f32 -1.442695, %v3291_v34  ;;  %v3056_v33 = vmul.f32 %v4282_v50, %v3055_v56  ;;  %vm3033_vm3 = vcmp.eq.f32.partialorder %v3032_v28, 8.507059e+37  ;;  %v3077_v28 = vand.u32 2147483647, %v5489_v62 }
 0x7af   : > { %v4286_v40 = vpop.eup %4285  ;;  %v5519_v63 = vadd.f32 1.0, %v4284_v38 }
 0x7b0   : > { %4293 = vpow2.f32 %v4004_v15  ;;  %v3305_v36 = vmul.f32 %v4286_v40, %v5482_v55  ;;  %v3057_v10 = vadd.f32 %v4282_v50, %v3056_v33  ;;  %vm3310_vm1 = vweird.f32 %v4286_v40 }
 0x7b1   : > { %v4288_v31 = vpop.eup %4287  ;;  %4295 = vrcp.f32 %v5519_v63  ;;  %v3217_v19 = vpop.f32.mrf.mxu3  ;;  %v3316_v15 = vor.u32 1.1754944e-38, %v3315_v14  ;;  %v2975_v33 = vadd.f32 %v2974_v30, %v5428_v17  ;;  %v3328_v30 = vand.u32 2147483647, %v5519_v63 }
 0x7b2   : > { %v3069_v29 = vmul.f32 %v4288_v31, %v5489_v62  ;;  %v3306_v24 = vsub.f32 1.0, %v3305_v36  ;;  %v3061_v20 = vsel %vm5521_vm13, %v4282_v50, %v3057_v10  ;;  %v2976_v7 = vpop.f32.mrf.mxu2  ;;  %v4290_v18 = vpop.eup %4289  ;;  %4297 = vtanh.f32 %v3102_v21 }
 0x7b3   : > { %v3066_v9 = vsel %vm5513_vm12, %v3065_v57, %v3061_v20  ;;  %v4292_v23 = vpop.eup %4291  ;;  %v3036_v10 = vsel %vm3033_vm3, %v3035_v32, %v3031_v35  ;;  %vm3074_vm11 = vweird.f32 %v4288_v31  ;;  %vm3311_vm12 = vmor %vm3309_vm14, %vm3310_vm1  ;;  %v3080_v55 = vor.u32 1.1754944e-38, %v3079_v41 }
 0x7b4   : > { %v3070_v47 = vsub.f32 1.0, %v3069_v29  ;;  %v3307_v34 = vmul.f32 %v4286_v40, %v3306_v24  ;;  %v3107_v56 = vsub.f32 1.0, %v3066_v9  ;;  %v3113_v38 = vmul.f32 %v4305_v4, %v3066_v9  ;;  %vm3075_vm13 = vmor %vm3073_vm15, %vm3074_vm11  ;;  %v4306_v4 = vld [vmem:[#allocation8] sm:$0xff] }
 0x7b5   : > { %v5544_v50 = vadd.f32 1.0, %v4292_v23  ;;  %v3100_v29 = vmul.f32 %v3036_v10, %v2975_v33  ;;  %v3330_v24 = vand.u32 2147483648, %v5519_v63  ;;  %vm3078_vm14 = vcmp.eq.f32.partialorder %v3077_v28, 8.507059e+37 }
 0x7b6   : > { %v4294_v22 = vpop.eup %4293  ;;  %v3071_v25 = vmul.f32 %v4288_v31, %v3070_v47  ;;  %v3308_v44 = vadd.f32 %v4286_v40, %v3307_v34  ;;  %v3110_v36 = vmul.f32 %v4290_v18, %v3107_v56  ;;  %vm5567_vm3 = vcmp.eq.f32.partialorder %v3328_v30, 8.507059e+37 }
 0x7b7   : > { %v4296_v48 = vpop.eup %4295  ;;  %v5547_v57 = vadd.f32 1.0, %v4294_v22  ;;  %4299 = vrcp.f32 %v5544_v50  ;;  %v3103_v9 = vadd.f32 %v3100_v29, %v5499_v27  ;;  %v3331_v47 = vor.u32 1.1754944e-38, %v3330_v24 }
 0x7b8   : > { %v3312_v21 = vsel %vm3311_vm12, %v4286_v40, %v3308_v44  ;;  %v3116_v19 = vadd.f32 %v3113_v38, %v3110_v36  ;;  %v3320_v17 = vmul.f32 %v4296_v48, %v5519_v63  ;;  %v3072_v14 = vadd.f32 %v4288_v31, %v3071_v25  ;;  %v4298_v20 = vpop.eup %4297 }
 0x7b9   : > { %4301 = vrcp.f32 %v5547_v57  ;;  %v5559_v35 = vsel %vm5538_vm2, %v3316_v15, %v3312_v21  ;;  %vm3325_vm1 = vweird.f32 %v4296_v48  ;;  %vm3324_vm2 = vweird.f32 %v5519_v63 }
 0x7ba   : > { %3355 = vrot.lane.b32.xlu0 %v5559_v35, %s4601_s16  ;;  %3437 = vst [vmem:[#allocation8 + $0x10] sm:$0xff] %v3116_v19  ;;  %v3321_v40 = vsub.f32 1.0, %v3320_v17  ;;  %v3076_v32 = vsel %vm3075_vm13, %v4288_v31, %v3072_v14  ;;  %vm3088_vm15 = vweird.f32 %v5544_v50  ;;  %vm3326_vm11 = vmor %vm3324_vm2, %vm3325_vm1  ;;  %v3094_v63 = vand.u32 2147483648, %v5544_v50 }
 0x7bb   : > { %v3081_v18 = vsel %vm3078_vm14, %v3080_v55, %v3076_v32  ;;  %v3092_v15 = vand.u32 2147483647, %v5544_v50  ;;  %4303 = vtanh.f32 %v3103_v9  ;;  %v3343_v28 = vand.u32 2147483647, %v5547_v57  ;;  %v4307_v32 = vld [vmem:[#allocation8 + $0x8] sm:$0xff] }
 0x7bc   : > { %v3322_v7 = vmul.f32 %v4296_v48, %v3321_v40  ;;  %v3108_v41 = vsub.f32 1.0, %v3081_v18  ;;  %v3114_v38 = vmul.f32 %v4306_v4, %v3081_v18  ;;  %v3095_v21 = vor.u32 1.1754944e-38, %v3094_v63 }
 0x7bd   : > { %v4300_v39 = vpop.eup %4299  ;;  %vm3093_vm1 = vcmp.eq.f32.partialorder %v3092_v15, 8.507059e+37  ;;  %vm3339_vm2 = vweird.f32 %v5547_v57 }
 0x7be   : > { %v3323_v23 = vadd.f32 %v4296_v48, %v3322_v7  ;;  %v3084_v34 = vmul.f32 %v4300_v39, %v5544_v50  ;;  %v3111_v56 = vmul.f32 %v4298_v20, %v3108_v41  ;;  %vm3089_vm12 = vweird.f32 %v4300_v39 }
 0x7bf   : > { %v4302_v31 = vpop.eup %4301  ;;  %vm3090_vm13 = vmor %vm3088_vm15, %vm3089_vm12  ;;  %v3371_v41 = vmul.f32 %v5381_v58, %v5289_v43  ;;  %v3370_v58 = vmul.f32 %v5352_v12, %v5268_v54  ;;  %v3400_v54 = vsub.f32 %v5413_v52, %v5438_v8 }
 0x7c0   : > { %v3327_v33 = vsel %vm3326_vm11, %v4296_v48, %v3323_v23  ;;  %v3335_v22 = vmul.f32 %v4302_v31, %v5547_v57  ;;  %v3085_v25 = vsub.f32 1.0, %v3084_v34  ;;  %v3117_v44 = vadd.f32 %v3114_v38, %v3111_v56  ;;  %v1114_v23 = vld [vmem:[#allocation5 + $0x8] sm:$0xff] }
 0x7c1   : > { %v5579_v27 = vsel %vm5567_vm3, %v3331_v47, %v3327_v33  ;;  %v3345_v48 = vand.u32 2147483648, %v5547_v57  ;;  %vm3340_vm14 = vweird.f32 %v4302_v31  ;;  %v4304_v29 = vpop.eup %4303  ;;  %vm3344_vm11 = vcmp.eq.f32.partialorder %v3343_v28, 8.507059e+37  ;;  %v1113_v33 = vld [vmem:[#allocation5] sm:$0xff] }
 0x7c2   : > { %3357 = vrot.lane.b32.xlu1 %v5579_v27, %s4601_s16  ;;  %v3336_v36 = vsub.f32 1.0, %v3335_v22  ;;  %v3086_v10 = vmul.f32 %v4300_v39, %v3085_v25  ;;  %3438 = vst [vmem:[#allocation8] sm:$0xff] %v3117_v44  ;;  %vm3341_vm3 = vmor %vm3339_vm2, %vm3340_vm14  ;;  %v3401_v28 = vsub.f32 %v5371_v45, %v5377_v49  ;;  %vm3399_vm14 = vcmp.lt.f32.partialorder %v5377_v49, %v5371_v45 }
 0x7c3   : > { %v3346_v55 = vor.u32 1.1754944e-38, %v3345_v48  ;;  %v3349_v45 = vmul.f32 %v5559_v35, %v5304_v13 }
 0x7c4   : > { %v3337_v19 = vmul.f32 %v4302_v31, %v3336_v36  ;;  %v3087_v17 = vadd.f32 %v4300_v39, %v3086_v10 }
 0x7c6   : > { %v3338_v30 = vadd.f32 %v4302_v31, %v3337_v19  ;;  %v3091_v14 = vsel %vm3090_vm13, %v4300_v39, %v3087_v17  ;;  %vm3398_vm13 = vcmp.lt.f32.partialorder %v5438_v8, %v5413_v52  ;;  %v4308_v8 = vld [vmem:[#allocation3 + $0x10] sm:$0xff] }
 0x7c7   : > { %v3096_v40 = vsel %vm3093_vm1, %v3095_v21, %v3091_v14  ;;  %v3402_v12 = vsel %vm3398_vm13, %v3400_v54, 0.0  ;;  %v3415_v14 = vmul.f32 %v4308_v8, %v5043_v16 }
 0x7c8   : > { %v3342_v24 = vsel %vm3341_vm3, %v4302_v31, %v3338_v30  ;;  %v3109_v20 = vsub.f32 1.0, %v3096_v40  ;;  %v3115_v7 = vmul.f32 %v4307_v32, %v3096_v40  ;;  %v4310_v32 = vld [vmem:[#allocation3] sm:$0xff] }
 0x7c9   : > { %v3347_v50 = vsel %vm3344_vm11, %v3346_v55, %v3342_v24  ;;  %v4309_v55 = vld [vmem:[#allocation4 + $0x10] sm:$0xff] }
 0x7ca   : > { %3359 = vrot.lane.b32.xlu2 %v3347_v50, %s4601_s16  ;;  %v3112_v18 = vmul.f32 %v4304_v29, %v3109_v20  ;;  %v3351_v19 = vmul.f32 %v3347_v50, %v5313_v53 }
 0x7cc   : > { %v3118_v62 = vadd.f32 %v3115_v7, %v3112_v18  ;;  %v3413_v7 = vmul.f32 %v4310_v32, %v5053_v42  ;;  %v4311_v18 = vld [vmem:[#allocation4] sm:$0xff] }
 0x7ce   : > { %3439 = vst [vmem:[#allocation8 + $0x8] sm:$0xff] %v3118_v62 }
 0x7ec   : > { %v3377_v57 = vpop.permute.xlu2 %3376 }
 0x7ed   : > { %v3381_v39 = vadd.f32 %v3377_v57, %v3371_v41  ;;  %v3350_v41 = vmul.f32 %v5579_v27, %v5310_v37 }
 0x7ef   : > { %v3383_v9 = vmin.f32 %v3381_v39, 1.0 }
 0x7f1   : > { %v3385_v47 = vmul.f32 %v3383_v9, %v4985_v59  ;;  %v4312_v9 = vld [vmem:[#allocation3 + $0x8] sm:$0xff] }
 0x7f3   : > { %v5592_v34 = vmin.f32 %v3385_v47, %v1114_v23  ;;  %vm3387_vm15 = vcmp.gt.f32.partialorder %v3385_v47, %v1114_v23  ;;  %v3389_v31 = vsub.f32 %v3385_v47, %v1114_v23  ;;  %v3414_v23 = vmul.f32 %v4312_v9, %v5069_v46 }
 0x7f5   : > { %3432 = vst.msk [vmem:[#allocation5 + $0x8] sm:$0xff] %vm330_vm0, %v5592_v34  ;;  %v3391_v56 = vsel %vm3387_vm15, %v3389_v31, 0.0  ;;  %v3407_v4 = vsub.f32 1.0, %v5592_v34  ;;  %v4313_v31 = vld [vmem:[#allocation4 + $0x8] sm:$0xff] }
 0x7f6   : > { %3460 = vrot.lane.b32.xlu2 %v3391_v56, %s4603_s22 }
 0x7f7   : > { %v3409_v43 = vsub.f32 %v3407_v4, %v5389_v11 }
 0x7f9   : > { %3434 = vst.msk [vmem:[#allocation6 + $0x8] sm:$0xff] %vm330_vm0, %v3409_v43 }
 0x7fa   : > { %v3451_v48 = vpop.permute.xlu2 %3450 }
 0x7fc   : > { %v3375_v38 = vpop.permute.xlu1 %3374 }
 0x7fd   : > { %v3380_v63 = vadd.f32 %v3375_v38, %v3370_v58 }
 0x7ff   : > { %v3382_v15 = vmin.f32 %v3380_v63, 1.0  ;;  %v3453_v21 = vpop.permute.xlu0 %3452 }
 0x801   : > { %v3384_v22 = vmul.f32 %v3382_v15, %v5032_v51 }
 0x803   : > { %v3392_v25 = vmin.f32 %v3384_v22, %v1113_v33  ;;  %vm3386_vm12 = vcmp.gt.f32.partialorder %v3384_v22, %v1113_v33  ;;  %v3388_v44 = vsub.f32 %v3384_v22, %v1113_v33 }
 0x805   : > { %3431 = vst.msk [vmem:[#allocation5] sm:$0xff] %vm330_vm0, %v3392_v25  ;;  %v3390_v36 = vsel %vm3386_vm12, %v3388_v44, 0.0  ;;  %v3406_v10 = vsub.f32 1.0, %v3392_v25 }
 0x806   : > { %3458 = vrot.lane.b32.xlu1 %v3390_v36, %s4603_s22 }
 0x807   : > { %v3408_v11 = vsub.f32 %v3406_v10, %v5447_v26  ;;  %v3403_v26 = vsel %vm3399_vm14, %v3401_v28, 0.0 }
 0x809   : > { %3433 = vst.msk [vmem:[#allocation6] sm:$0xff] %vm330_vm0, %v3408_v11  ;;  %3442 = vrot.lane.b32.xlu0 %v3408_v11, %s4599_s15 }
 0x80e   : > { %3444 = vrot.lane.b32.xlu1 %v3409_v43, %s4599_s15 }
 0x811   : > { %3466 = vrot.lane.b32.xlu0 %v3402_v12, %s4604_s27 }
 0x816   : > { %3468 = vrot.lane.b32.xlu1 %v3403_v26, %s4604_s27 }
 0x824   : > { %v3360_v17 = vpop.permute.xlu2 %3359 }
 0x825   : > { %v3366_v30 = vadd.f32 %v3360_v17, %v3351_v19 }
 0x827   : > { %v3369_v52 = vmin.f32 %v3366_v30, 1.0 }
 0x829   : > { %v3412_v29 = vmul.f32 %v3369_v52, %v4855_v3 }
 0x82b   : > { %v3418_v40 = vsub.f32 %v3412_v29, %v4309_v55  ;;  %3430 = vst.msk [vmem:[#allocation4 + $0x10] sm:$0xff] %vm330_vm0, %v3412_v29 }
 0x82c   : > { %v3356_v49 = vpop.permute.xlu0 %3355 }
 0x82d   : > { %v3421_v24 = vsub.f32 %v3415_v14, %v3418_v40  ;;  %v3364_v20 = vadd.f32 %v3356_v49, %v3349_v45 }
 0x82f   : > { %3427 = vst.msk [vmem:[#allocation3 + $0x10] sm:$0xff] %vm330_vm0, %v3421_v24  ;;  %v3367_v53 = vmin.f32 %v3364_v20, 1.0 }
 0x831   : > { %v3410_v50 = vmul.f32 %v3367_v53, %v4862_v6 }
 0x833   : > { %v3416_v62 = vsub.f32 %v3410_v50, %v4311_v18  ;;  %3428 = vst.msk [vmem:[#allocation4] sm:$0xff] %vm330_vm0, %v3410_v50 }
 0x834   : > { %v3358_v57 = vpop.permute.xlu1 %3357 }
 0x835   : > { %v3419_v13 = vsub.f32 %v3413_v7, %v3416_v62  ;;  %v3365_v35 = vadd.f32 %v3358_v57, %v3350_v41 }
 0x837   : > { %3425 = vst.msk [vmem:[#allocation3] sm:$0xff] %vm330_vm0, %v3419_v13  ;;  %v3368_v39 = vmin.f32 %v3365_v35, 1.0 }
 0x839   : > { %v3411_v47 = vmul.f32 %v3368_v39, %v4852_v2 }
 0x83b   : > { %v3417_v56 = vsub.f32 %v3411_v47, %v4313_v31  ;;  %3429 = vst.msk [vmem:[#allocation4 + $0x8] sm:$0xff] %vm330_vm0, %v3411_v47 }
 0x83d   : > { %v3420_v4 = vsub.f32 %v3414_v23, %v3417_v56 }
 0x83f   : > { %3426 = vst.msk [vmem:[#allocation3 + $0x8] sm:$0xff] %vm330_vm0, %v3420_v4 }
 0x878   : > { %v3459_v37 = vpop.permute.xlu1 %3458 }
 0x87b   : > { %v3443_v27 = vpop.permute.xlu0 %3442 }
 0x87c   : > { %v3472_v43 = vsel %vm330_vm0, %v3392_v25, %v3443_v27  ;;  %v3461_v25 = vpop.permute.xlu2 %3460 }
 0x87d   : > { %v3474_v58 = vsel %vm1085_vm6, %v3472_v43, %v3451_v48 }
 0x87e   : > { %v3476_v15 = vsel %vm1088_vm7, %v3474_v58, %v3459_v37 }
 0x880   : > { %v3445_v38 = vpop.permute.xlu1 %3444 }
 0x881   : > { %v3473_v63 = vsel %vm330_vm0, %v5592_v34, %v3445_v38 }
 0x882   : > { %v3475_v44 = vsel %vm1085_vm6, %v3473_v63, %v3453_v21 }
 0x883   : > { %v3467_v33 = vpop.permute.xlu0 %3466  ;;  %v3477_v11 = vsel %vm1088_vm7, %v3475_v44, %v3461_v25 }
 0x884   : > { %v3478_v22 = vsel %vm1091_vm8, %v3476_v15, %v3467_v33 }
 0x885   : > { %v3480_v36 = vsel %vm1094_vm9, %v3478_v22, 0.0 }
 0x886   : > { %4006 = vst.msk [vmem:[%s3496_s21 + $0x10] sm:$0xff] %vm1097_vm10, %v3480_v36 }
 0x887   :  { %1104 = sbr.rel (!%p1102_p3) target bundleno = 943 (0x3af), region = 224 }
 0x888   : > { %v3469_v10 = vpop.permute.xlu1 %3468 }
 0x889   : > { %v3479_v54 = vsel %vm1091_vm8, %v3477_v11, %v3469_v10 }
 0x88a   : > { %v3481_v34 = vsel %vm1094_vm9, %v3479_v54, 0.0 }
 0x88b   : > { %4007 = vst.msk [vmem:[%s3496_s21 + $0x18] sm:$0xff] %vm1097_vm10, %v3481_v34 }
 0x88c   :  { %3490 = vsyncpa [#allocation10], 1 }
 0x88d   :  { %3491 = vsyncpa [#allocation12], 1 }
 0x88e   :  { %3492 = vsyncpa [#allocation15], 1 }
 0x88f   :  { %3493 = vsyncpa [#allocation18], 1 }
 0x890   :  { %3494 = vsyncpa [#allocation21], 1 }

</bundles_post_ra>
